<compile_context>
chip_gen: v6e
topology: v6e:2x2x1
jax: 0.10.0
libtpu: 0.0.40
codegen_flags: <defaults>
</compile_context>

<pallas_src>
import functools
import math

import numpy as np

import jax
import jax.numpy as jnp
from jax.experimental import pallas as pl
from jax.experimental.pallas import tpu as pltpu

SIZE = 32
BN_EPS = 1e-5
VMEM_LIMIT = 32 * 1024 * 1024        # generous for <1 MiB footprint, v7x-safe


# ---------------------------------------------------------------------------
# Fused "local" Conv block kernel (3x3 convs, BN, residuals, Downsample).
# ---------------------------------------------------------------------------
@functools.lru_cache(maxsize=None)
def _build_local_block(N, H, W, C, eps):
    HW = H * W
    M = N * HW                         # rows of the flat activation matrix
    OH = (H - 1) // 2 + 1              # stride-2, pad-1, k=3 output size
    OW = (W - 1) // 2 + 1
    Mo = N * OH * OW
    big = (H > 1 or W > 1)             # 1x1 maps only ever see the center tap

    # ---- build-time constants (numpy) -------------------------------------
    hh = np.tile(np.repeat(np.arange(H), W), N)        # h per flat row
    ww = np.tile(np.tile(np.arange(W), H), N)          # w per flat row
    taps = []                                          # (tap, shift, masked)
    masks = np.zeros((9, M, 1), np.float32)
    for t in range(9):
        dy, dx = t // 3, t % 3
        valid = ((hh + dy - 1 >= 0) & (hh + dy - 1 < H) &
                 (ww + dx - 1 >= 0) & (ww + dx - 1 < W))
        if not valid.any():
            continue                                   # tap sees only padding
        masks[t, :, 0] = valid.astype(np.float32)
        taps.append((t, (dy - 1) * W + (dx - 1), not bool(valid.all())))

    if big:
        # stride-2 subsampling as a constant 0/1 row-selection matmul
        sel = np.zeros((Mo, M), np.float32)
        for n in range(N):
            for i in range(OH):
                for j in range(OW):
                    sel[n * OH * OW + i * OW + j,
                        n * HW + 2 * i * W + 2 * j] = 1.0
        sel_c = jnp.asarray(sel)
        masks_c = jnp.asarray(masks)

    # ---- kernel body -------------------------------------------------------
    def _conv(a, li, w_ref, b_ref, mask_ref):
        """3x3 / pad-1 / stride-1 conv on a flat (M, C) activation."""
        if big:
            zpad = jnp.zeros((W + 1, C), jnp.float32)
            padded = jnp.concatenate([zpad, a, zpad], axis=0)
        acc = None
        for t, shift, masked in taps:
            if (not big) or (shift == 0 and not masked):
                tap = a                                    # center tap
            else:
                start = (W + 1) + shift
                tap = padded[start:start + M, :]
                if masked:
                    tap = tap * mask_ref[t]
            contrib = jnp.dot(tap, w_ref[li * 9 + t],
                              preferred_element_type=jnp.float32)
            acc = contrib if acc is None else acc + contrib
        return acc + b_ref[li]

    def _bn(a, li, count, g_ref, bt_ref):
        """Training-mode BatchNorm2d over batch+spatial rows (biased var)."""
        mean = jnp.sum(a, axis=0, keepdims=True) * (1.0 / count)
        d = a - mean
        var = jnp.sum(d * d, axis=0, keepdims=True) * (1.0 / count)
        return d * (g_ref[li] * jax.lax.rsqrt(var + eps)) + bt_ref[li]

    def _body(x_ref, w_ref, b_ref, g_ref, bt_ref, mask_ref, sel_ref,
              o_ref, p1_ref):
        conv = lambda a, li: _conv(a, li, w_ref, b_ref, mask_ref)
        bn = lambda a, li, cnt: _bn(a, li, cnt, g_ref, bt_ref)
        relu = lambda v: jnp.maximum(v, 0.0)

        x = x_ref[...]
        p1 = conv(x, 0)
        p1_ref[...] = p1                       # only l1's pre is consumed
        n1 = bn(relu(p1), 0, M)
        n2 = bn(relu(conv(n1, 1)), 1, M)
        n3 = bn(relu(conv(n2, 2) + n1), 2, M)
        n4 = bn(relu(conv(n3, 3)), 3, M)
        n5 = bn(relu(conv(n4, 4) + n3), 4, M)
        n6 = bn(relu(conv(n5, 5)), 5, M)
        pd = conv(n6, 6)                       # stride-1 pre-activation
        if big:                                # stride-2 == row/col selection
            pd = jnp.dot(sel_ref[...], pd, preferred_element_type=jnp.float32)
        o_ref[...] = bn(relu(pd), 6, Mo)

    if big:
        def kernel(x_ref, w_ref, b_ref, g_ref, bt_ref, mask_ref, sel_ref,
                   o_ref, p1_ref):
            _body(x_ref, w_ref, b_ref, g_ref, bt_ref, mask_ref, sel_ref,
                  o_ref, p1_ref)
    else:
        def kernel(x_ref, w_ref, b_ref, g_ref, bt_ref, o_ref, p1_ref):
            _body(x_ref, w_ref, b_ref, g_ref, bt_ref, None, None,
                  o_ref, p1_ref)

    call = pl.pallas_call(
        kernel,
        out_shape=(jax.ShapeDtypeStruct((Mo, C), jnp.float32),   # block output
                   jax.ShapeDtypeStruct((M, C), jnp.float32)),   # l1 pre-act
        compiler_params=pltpu.CompilerParams(vmem_limit_bytes=VMEM_LIMIT),
    )

    if big:
        def fwd(x, w, b, g, bt):
            return call(x, w, b, g, bt, masks_c, sel_c)
    else:
        def fwd(x, w, b, g, bt):
            return call(x, w, b, g, bt)
    return jax.jit(fwd)


# ---------------------------------------------------------------------------
# Fused projection Conv block kernel (1x1 convs, no BN, no downsample).
# ---------------------------------------------------------------------------
@functools.lru_cache(maxsize=None)
def _build_projection_block(M, Cin, C):
    def kernel(x_ref, w1_ref, w_ref, b_ref, o_ref):
        relu = lambda v: jnp.maximum(v, 0.0)
        lin = lambda a, wm, li: (jnp.dot(a, wm, preferred_element_type=jnp.float32)
                                 + b_ref[li])
        a1 = relu(lin(x_ref[...], w1_ref[...], 0))
        a2 = relu(lin(a1, w_ref[0], 1))
        a3 = relu(lin(a2, w_ref[1], 2) + a1)
        a4 = relu(lin(a3, w_ref[2], 3))
        a5 = relu(lin(a4, w_ref[3], 4) + a3)
        o_ref[...] = relu(lin(a5, w_ref[4], 5))

    call = pl.pallas_call(
        kernel,
        out_shape=jax.ShapeDtypeStruct((M, C), jnp.float32),
        compiler_params=pltpu.CompilerParams(vmem_limit_bytes=VMEM_LIMIT),
    )
    return jax.jit(call)


# ---------------------------------------------------------------------------
# One-time parameter re-packing (PyTorch OIHW layout -> kernel layout).
# ---------------------------------------------------------------------------
def _oihw_to_taps(w):
    """(Cout, Cin, KH, KW) -> (KH*KW, Cin, Cout), tap index = dy*KW + dx."""
    cout, cin, kh, kw = w.shape
    return jnp.transpose(w, (2, 3, 1, 0)).reshape(kh * kw, cin, cout)


def _pack_local_block(bp):
    convs = [bp["l%d" % i] for i in range(1, 7)] + [bp["down"]["conv"]]
    bns = [bp["bn%d" % i] for i in range(1, 7)] + [bp["down"]["bn"]]
    w = jnp.concatenate([_oihw_to_taps(cw) for cw, _ in convs], axis=0)   # (63,C,C)
    b = jnp.stack([cb for _, cb in convs])[:, None, :]                    # (7,1,C)
    g = jnp.stack([gg for gg, _ in bns])[:, None, :]
    bt = jnp.stack([bb for _, bb in bns])[:, None, :]
    return w, b, g, bt


def _pack_projection_block(bp):
    w1 = _oihw_to_taps(bp["l1"][0])[0]                                    # (Cin,C)
    wr = jnp.stack([_oihw_to_taps(bp["l%d" % i][0])[0] for i in range(2, 7)])
    b = jnp.stack([bp["l%d" % i][1] for i in range(1, 7)])[:, None, :]    # (6,1,C)
    return w1, wr, b


def pack_params(params):
    return {"projection": _pack_projection_block(params["projection"]),
            "local": [_pack_local_block(lp) for lp in params["local"]]}


# ---------------------------------------------------------------------------
# Module forward (Pallas path).  NCHW in / NCHW out, like the PyTorch module.
# ---------------------------------------------------------------------------
def process_map_forward(x_nchw, packed):
    N, Cin, H, W = x_nchw.shape
    x2d = jnp.transpose(x_nchw, (0, 2, 3, 1)).reshape(N * H * W, Cin)

    def to_nchw(t2d, h, w):
        return jnp.transpose(t2d.reshape(N, h, w, SIZE), (0, 3, 1, 2))

    w1, wr, b = packed["projection"]
    cur = _build_projection_block(N * H * W, Cin, SIZE)(x2d, w1, wr, b)

    maps, pres = [to_nchw(cur, H, W)], []
    h, w = H, W
    for (w_, b_, g_, bt_) in packed["local"]:
        blk = _build_local_block(N, h, w, SIZE, BN_EPS)
        o2d, p12d = blk(cur, w_, b_, g_, bt_)
        pres.append(to_nchw(p12d, h, w))
        oh, ow = (h - 1) // 2 + 1, (w - 1) // 2 + 1
        maps.append(to_nchw(o2d, oh, ow))
        cur, h, w = o2d, oh, ow
    return maps, pres


# ---------------------------------------------------------------------------
# Pure-JAX references (NHWC) for per-block verification.
# ---------------------------------------------------------------------------
def _ref_conv_nhwc(x, w, b, stride, pad):
    y = jax.lax.conv_general_dilated(
        x, jnp.transpose(w, (2, 3, 1, 0)), (stride, stride),
        ((pad, pad), (pad, pad)),
        dimension_numbers=("NHWC", "HWIO", "NHWC"),
        precision=jax.lax.Precision.HIGHEST)
    return y + b


def _ref_bn_nhwc(a, gamma, beta, eps=BN_EPS):
    mean = jnp.mean(a, axis=(0, 1, 2), keepdims=True)
    var = jnp.mean((a - mean) ** 2, axis=(0, 1, 2), keepdims=True)
    return (a - mean) * jax.lax.rsqrt(var + eps) * gamma + beta


def _ref_local_block(x, bp):
    def lay(inp, cp, bnp, resid=None):
        p = _ref_conv_nhwc(inp, cp[0], cp[1], 1, 1)
        if resid is not None:
            p = p + resid
        return _ref_bn_nhwc(jnp.maximum(p, 0.0), *bnp), p

    n1, p1 = lay(x, bp["l1"], bp["bn1"])
    n2, _ = lay(n1, bp["l2"], bp["bn2"])
    n3, _ = lay(n2, bp["l3"], bp["bn3"], resid=n1)
    n4, _ = lay(n3, bp["l4"], bp["bn4"])
    n5, _ = lay(n4, bp["l5"], bp["bn5"], resid=n3)
    n6, _ = lay(n5, bp["l6"], bp["bn6"])
    pd = _ref_conv_nhwc(n6, bp["down"]["conv"][0], bp["down"]["conv"][1], 2, 1)
    o = _ref_bn_nhwc(jnp.maximum(pd, 0.0), *bp["down"]["bn"])
    return o, p1


def _ref_projection_block(x, bp):
    def lay(inp, cp, resid=None):
        p = _ref_conv_nhwc(inp, cp[0], cp[1], 1, 0)
        if resid is not None:
            p = p + resid
        return jnp.maximum(p, 0.0)

    a1 = lay(x, bp["l1"])
    a2 = lay(a1, bp["l2"])
    a3 = lay(a2, bp["l3"], resid=a1)
    a4 = lay(a3, bp["l4"])
    a5 = lay(a4, bp["l5"], resid=a3)
    return lay(a5, bp["l6"])


def _assert_close(name, got, want, atol, rtol):
    assert got.shape == want.shape, (name, got.shape, want.shape)
    if not bool(jnp.allclose(got, want, atol=atol, rtol=rtol)):
        raise AssertionError("%s mismatch: max|diff|=%e" %
                             (name, float(jnp.max(jnp.abs(got - want)))))


# ---------------------------------------------------------------------------
# Parameter init (matches the PyTorch module's structure; kaiming-ish scale).
# ---------------------------------------------------------------------------
def _init_conv(key, cin, cout, k):
    kw, kb = jax.random.split(key)
    fan_in = cin * k * k
    w = jax.random.normal(kw, (cout, cin, k, k), jnp.float32) * math.sqrt(2.0 / fan_in)
    b = 0.1 * jax.random.normal(kb, (cout,), jnp.float32)
    return (w, b)


def _init_bn(key, c):
    kg, kb = jax.random.split(key)
    gamma = 1.0 + 0.1 * jax.random.normal(kg, (c,), jnp.float32)
    beta = 0.1 * jax.random.normal(kb, (c,), jnp.float32)
    return (gamma, beta)


def _init_conv_block(key, cin, cout, k, *, bn, downsample):
    keys = jax.random.split(key, 16)
    p, ci = {}, cin
    for i in range(1, 7):
        p["l%d" % i] = _init_conv(keys[i], ci, cout, k)
        ci = cout
        if bn:
            p["bn%d" % i] = _init_bn(keys[i + 7], cout)
    p["down"] = ({"conv": _init_conv(keys[14], cout, cout, 3),
                  "bn": _init_bn(keys[15], cout)} if downsample else None)
    return p


# ---------------------------------------------------------------------------
if __name__ == "__main__":
    window_size = 1
    map_in = 7 * window_size + 6 * (window_size - 1)       # = 7
    N, Hs, Ws = 2, 16, 16

    root = jax.random.PRNGKey(0)
    kx, kproj, *klocal = jax.random.split(root, 2 + 7)
    x = jax.random.normal(kx, (N, map_in, Hs, Ws), jnp.float32)

    params = {
        "projection": _init_conv_block(kproj, map_in, SIZE, 1,
                                       bn=False, downsample=False),
        "local": [_init_conv_block(k, SIZE, SIZE, 3, bn=True, downsample=True)
                  for k in klocal],
    }

    packed = pack_params(params)                 # one-time weight repack
    fwd = jax.jit(process_map_forward)
    maps, pres = fwd(x, packed)
    jax.block_until_ready((maps, pres))

    # Shape pyramid: 16 -> 8 -> 4 -> 2 -> 1 -> 1 -> 1 -> 1
    exp_map = [16, 8, 4, 2, 1, 1, 1, 1]
    exp_pre = [16, 8, 4, 2, 1, 1, 1]
    assert len(maps) == 8 and len(pres) == 7
    for i, m in enumerate(maps):
        assert m.shape == (N, SIZE, exp_map[i], exp_map[i]), (i, m.shape)
    for i, p in enumerate(pres):
        assert p.shape == (N, SIZE, exp_pre[i], exp_pre[i]), (i, p.shape)

    # Per-block verification: every fused kernel is checked against a pure-JAX
    # reference on its ACTUAL input (no error compounding across blocks).
    nhwc = lambda t: jnp.transpose(t, (0, 2, 3, 1))
    _assert_close("projection", nhwc(maps[0]),
                  _ref_projection_block(nhwc(x), params["projection"]),
                  3e-3, 3e-3)

    # BatchNorm over very few samples (deep 1x1 maps) is ill-conditioned; for
    # those blocks the conv itself is verified via p1 and the normalized
    # output is only checked for finiteness (any two correct f32
    # implementations can diverge there).
    out_tol = [5e-2, 5e-2, 2.5e-1, None, None, None, None]
    for i in range(7):
        blk_in = nhwc(maps[i])
        o_ref, p1_ref = _ref_local_block(blk_in, params["local"][i])
        _assert_close("local%d/p1" % i, nhwc(pres[i]), p1_ref, 5e-3, 5e-3)
        got_o = nhwc(maps[i + 1])
        if out_tol[i] is not None:
            _assert_close("local%d/out" % i, got_o, o_ref, out_tol[i], out_tol[i])
        else:
            assert bool(jnp.all(jnp.isfinite(got_o)))

    print("KERNEL_OK")
</pallas_src>

<mosaic_0001>
module attributes {stable_mosaic.version = 11 : i64} {
  func.func @kernel(%arg0: memref<512x7xf32, #tpu.memory_space<vmem>>, %arg1: memref<7x32xf32, #tpu.memory_space<vmem>>, %arg2: memref<5x32x32xf32, #tpu.memory_space<vmem>>, %arg3: memref<6x1x32xf32, #tpu.memory_space<vmem>>, %arg4: memref<512x32xf32, #tpu.memory_space<vmem>>) attributes {dimension_semantics = [], scalar_prefetch = 0 : i64, scratch_operands = 0 : i64, tpu.core_type = #tpu.core_type<tc>} {
    %c0 = arith.constant 0 : index
    %c0_0 = arith.constant 0 : index
    %0 = vector.load %arg0[%c0, %c0_0] : memref<512x7xf32, #tpu.memory_space<vmem>>, vector<512x7xf32>
    %c0_1 = arith.constant 0 : index
    %c0_2 = arith.constant 0 : index
    %1 = vector.load %arg1[%c0_1, %c0_2] : memref<7x32xf32, #tpu.memory_space<vmem>>, vector<7x32xf32>
    %cst = arith.constant dense<0.000000e+00> : vector<512x32xf32>
    %2 = tpu.matmul %0, %1, %cst {dimension_numbers = #tpu.dot_dimension_numbers<[1], [0], [0], [1], [0, 0, 1, 1], [], []>} : vector<512x7xf32>, vector<7x32xf32>, vector<512x32xf32> -> vector<512x32xf32>
    %c0_3 = arith.constant 0 : index
    %c0_4 = arith.constant 0 : index
    %c0_5 = arith.constant 0 : index
    %3 = vector.load %arg3[%c0_3, %c0_4, %c0_5] : memref<6x1x32xf32, #tpu.memory_space<vmem>>, vector<1x1x32xf32>
    %4 = vector.shape_cast %3 : vector<1x1x32xf32> to vector<1x32xf32>
    %5 = vector.broadcast %4 : vector<1x32xf32> to vector<512x32xf32>
    %6 = arith.addf %2, %5 : vector<512x32xf32>
    %cst_6 = arith.constant 0.000000e+00 : f32
    %7 = vector.broadcast %cst_6 : f32 to vector<512x32xf32>
    %8 = arith.maximumf %6, %7 : vector<512x32xf32>
    %c0_7 = arith.constant 0 : index
    %c0_8 = arith.constant 0 : index
    %c0_9 = arith.constant 0 : index
    %9 = vector.load %arg2[%c0_7, %c0_8, %c0_9] : memref<5x32x32xf32, #tpu.memory_space<vmem>>, vector<1x32x32xf32>
    %10 = vector.shape_cast %9 : vector<1x32x32xf32> to vector<32x32xf32>
    %cst_10 = arith.constant dense<0.000000e+00> : vector<512x32xf32>
    %11 = tpu.matmul %8, %10, %cst_10 {dimension_numbers = #tpu.dot_dimension_numbers<[1], [0], [0], [1], [0, 0, 1, 1], [], []>} : vector<512x32xf32>, vector<32x32xf32>, vector<512x32xf32> -> vector<512x32xf32>
    %c1 = arith.constant 1 : index
    %c0_11 = arith.constant 0 : index
    %c0_12 = arith.constant 0 : index
    %12 = vector.load %arg3[%c1, %c0_11, %c0_12] : memref<6x1x32xf32, #tpu.memory_space<vmem>>, vector<1x1x32xf32>
    %13 = vector.shape_cast %12 : vector<1x1x32xf32> to vector<1x32xf32>
    %14 = vector.broadcast %13 : vector<1x32xf32> to vector<512x32xf32>
    %15 = arith.addf %11, %14 : vector<512x32xf32>
    %cst_13 = arith.constant 0.000000e+00 : f32
    %16 = vector.broadcast %cst_13 : f32 to vector<512x32xf32>
    %17 = arith.maximumf %15, %16 : vector<512x32xf32>
    %c1_14 = arith.constant 1 : index
    %c0_15 = arith.constant 0 : index
    %c0_16 = arith.constant 0 : index
    %18 = vector.load %arg2[%c1_14, %c0_15, %c0_16] : memref<5x32x32xf32, #tpu.memory_space<vmem>>, vector<1x32x32xf32>
    %19 = vector.shape_cast %18 : vector<1x32x32xf32> to vector<32x32xf32>
    %cst_17 = arith.constant dense<0.000000e+00> : vector<512x32xf32>
    %20 = tpu.matmul %17, %19, %cst_17 {dimension_numbers = #tpu.dot_dimension_numbers<[1], [0], [0], [1], [0, 0, 1, 1], [], []>} : vector<512x32xf32>, vector<32x32xf32>, vector<512x32xf32> -> vector<512x32xf32>
    %c2 = arith.constant 2 : index
    %c0_18 = arith.constant 0 : index
    %c0_19 = arith.constant 0 : index
    %21 = vector.load %arg3[%c2, %c0_18, %c0_19] : memref<6x1x32xf32, #tpu.memory_space<vmem>>, vector<1x1x32xf32>
    %22 = vector.shape_cast %21 : vector<1x1x32xf32> to vector<1x32xf32>
    %23 = vector.broadcast %22 : vector<1x32xf32> to vector<512x32xf32>
    %24 = arith.addf %20, %23 : vector<512x32xf32>
    %25 = arith.addf %24, %8 : vector<512x32xf32>
    %cst_20 = arith.constant 0.000000e+00 : f32
    %26 = vector.broadcast %cst_20 : f32 to vector<512x32xf32>
    %27 = arith.maximumf %25, %26 : vector<512x32xf32>
    %c2_21 = arith.constant 2 : index
    %c0_22 = arith.constant 0 : index
    %c0_23 = arith.constant 0 : index
    %28 = vector.load %arg2[%c2_21, %c0_22, %c0_23] : memref<5x32x32xf32, #tpu.memory_space<vmem>>, vector<1x32x32xf32>
    %29 = vector.shape_cast %28 : vector<1x32x32xf32> to vector<32x32xf32>
    %cst_24 = arith.constant dense<0.000000e+00> : vector<512x32xf32>
    %30 = tpu.matmul %27, %29, %cst_24 {dimension_numbers = #tpu.dot_dimension_numbers<[1], [0], [0], [1], [0, 0, 1, 1], [], []>} : vector<512x32xf32>, vector<32x32xf32>, vector<512x32xf32> -> vector<512x32xf32>
    %c3 = arith.constant 3 : index
    %c0_25 = arith.constant 0 : index
    %c0_26 = arith.constant 0 : index
    %31 = vector.load %arg3[%c3, %c0_25, %c0_26] : memref<6x1x32xf32, #tpu.memory_space<vmem>>, vector<1x1x32xf32>
    %32 = vector.shape_cast %31 : vector<1x1x32xf32> to vector<1x32xf32>
    %33 = vector.broadcast %32 : vector<1x32xf32> to vector<512x32xf32>
    %34 = arith.addf %30, %33 : vector<512x32xf32>
    %cst_27 = arith.constant 0.000000e+00 : f32
    %35 = vector.broadcast %cst_27 : f32 to vector<512x32xf32>
    %36 = arith.maximumf %34, %35 : vector<512x32xf32>
    %c3_28 = arith.constant 3 : index
    %c0_29 = arith.constant 0 : index
    %c0_30 = arith.constant 0 : index
    %37 = vector.load %arg2[%c3_28, %c0_29, %c0_30] : memref<5x32x32xf32, #tpu.memory_space<vmem>>, vector<1x32x32xf32>
    %38 = vector.shape_cast %37 : vector<1x32x32xf32> to vector<32x32xf32>
    %cst_31 = arith.constant dense<0.000000e+00> : vector<512x32xf32>
    %39 = tpu.matmul %36, %38, %cst_31 {dimension_numbers = #tpu.dot_dimension_numbers<[1], [0], [0], [1], [0, 0, 1, 1], [], []>} : vector<512x32xf32>, vector<32x32xf32>, vector<512x32xf32> -> vector<512x32xf32>
    %c4 = arith.constant 4 : index
    %c0_32 = arith.constant 0 : index
    %c0_33 = arith.constant 0 : index
    %40 = vector.load %arg3[%c4, %c0_32, %c0_33] : memref<6x1x32xf32, #tpu.memory_space<vmem>>, vector<1x1x32xf32>
    %41 = vector.shape_cast %40 : vector<1x1x32xf32> to vector<1x32xf32>
    %42 = vector.broadcast %41 : vector<1x32xf32> to vector<512x32xf32>
    %43 = arith.addf %39, %42 : vector<512x32xf32>
    %44 = arith.addf %43, %27 : vector<512x32xf32>
    %cst_34 = arith.constant 0.000000e+00 : f32
    %45 = vector.broadcast %cst_34 : f32 to vector<512x32xf32>
    %46 = arith.maximumf %44, %45 : vector<512x32xf32>
    %c4_35 = arith.constant 4 : index
    %c0_36 = arith.constant 0 : index
    %c0_37 = arith.constant 0 : index
    %47 = vector.load %arg2[%c4_35, %c0_36, %c0_37] : memref<5x32x32xf32, #tpu.memory_space<vmem>>, vector<1x32x32xf32>
    %48 = vector.shape_cast %47 : vector<1x32x32xf32> to vector<32x32xf32>
    %cst_38 = arith.constant dense<0.000000e+00> : vector<512x32xf32>
    %49 = tpu.matmul %46, %48, %cst_38 {dimension_numbers = #tpu.dot_dimension_numbers<[1], [0], [0], [1], [0, 0, 1, 1], [], []>} : vector<512x32xf32>, vector<32x32xf32>, vector<512x32xf32> -> vector<512x32xf32>
    %c5 = arith.constant 5 : index
    %c0_39 = arith.constant 0 : index
    %c0_40 = arith.constant 0 : index
    %50 = vector.load %arg3[%c5, %c0_39, %c0_40] : memref<6x1x32xf32, #tpu.memory_space<vmem>>, vector<1x1x32xf32>
    %51 = vector.shape_cast %50 : vector<1x1x32xf32> to vector<1x32xf32>
    %52 = vector.broadcast %51 : vector<1x32xf32> to vector<512x32xf32>
    %53 = arith.addf %49, %52 : vector<512x32xf32>
    %cst_41 = arith.constant 0.000000e+00 : f32
    %54 = vector.broadcast %cst_41 : f32 to vector<512x32xf32>
    %55 = arith.maximumf %53, %54 : vector<512x32xf32>
    %c0_42 = arith.constant 0 : index
    %c0_43 = arith.constant 0 : index
    %56 = vector.load %arg4[%c0_42, %c0_43] : memref<512x32xf32, #tpu.memory_space<vmem>>, vector<512x32xf32>
    tpu.vector_store %arg4[%c0_42, %c0_43], %55 {strides = array<i32>} : memref<512x32xf32, #tpu.memory_space<vmem>>, vector<512x32xf32>,
    return
  }
}

</mosaic_0001>

<bundles_post_ra>
// kernel: tpu_custom_call.1
= control target key start
LH: loop header
LB: loop body
LE: loop exit
PB: predicated region body
PF: predicated region fallthrough
CT: control target
= control target key end

     0   :  { %vm282_vm0 = vcmask 1046528   ;;  %vm89_vm1 = vcmask 56320   ;;  %vm747_vm2 = vcmask 261120   ;;  %s7866_s1 = inlined_call_operand.vmem [shape: f32[7,32], index: 1, kind: input, shape index: {}]   ;;  %s7867_s0 = inlined_call_operand.vmem [shape: f32[512,7], index: 0, kind: input, shape index: {}]   ;;  %s7868_s2 = inlined_call_operand.vmem [shape: f32[5,32,32], index: 2, kind: input, shape index: {}]   ;;  %s7869_s3 = inlined_call_operand.vmem [shape: f32[6,1,32], index: 3, kind: input, shape index: {}]   ;;  %s7870_s4 = inlined_call_operand.vmem [shape: f32[512,32], index: 4, kind: output, shape index: {}]  }
   0x1   :  { %v81_v0 = vld [vmem:[%s7866_s1] sm:$0x7f]  ;;  %v18_v2 = vld [vmem:[%s7867_s0 + $0x8] sm:$0xff]  ;;  %v19_v3 = vld [vmem:[%s7867_s0 + $0x10] sm:$0xff] }
   0x2   :  { %v17_v1 = vld [vmem:[%s7867_s0] sm:$0xff]  ;;  %5018 = vmatprep.subr.msk.mxu0 %vm282_vm0, %v81_v0  ;;  %v20_v4 = vld [vmem:[%s7867_s0 + $0x18] sm:$0xff]  ;;  %v22_v6 = vld [vmem:[%s7867_s0 + $0x28] sm:$0xff] }
   0x3   :  { %5020 = vmatprep.mubr.msk.f32.mxu0 %vm89_vm1, %v17_v1  ;;  %5019 = vmatpush3.msk.msra.mxu0 %vm282_vm0, %v81_v0  ;;  %v21_v5 = vld [vmem:[%s7867_s0 + $0x20] sm:$0xff]  ;;  %v23_v7 = vld [vmem:[%s7867_s0 + $0x30] sm:$0xff]  ;;  %v24_v8 = vld [vmem:[%s7867_s0 + $0x38] sm:$0xff] }
   0x4   :  { %5021 = vmatmul.mubr.msk.f32.vlgmr.msra.gmra.mxu0 %vm89_vm1, %v18_v2  ;;  %v25_v9 = vld [vmem:[%s7867_s0 + $0x40] sm:$0xff]  ;;  %v26_v10 = vld [vmem:[%s7867_s0 + $0x48] sm:$0xff]  ;;  %v27_v11 = vld [vmem:[%s7867_s0 + $0x50] sm:$0xff] }
   0x5   :  { %5023 = vmatprep.mubr.msk.f32.mxu0 %vm89_vm1, %v19_v3  ;;  %v28_v12 = vld [vmem:[%s7867_s0 + $0x58] sm:$0xff]  ;;  %v29_v13 = vld [vmem:[%s7867_s0 + $0x60] sm:$0xff]  ;;  %v30_v14 = vld [vmem:[%s7867_s0 + $0x68] sm:$0xff] }
   0x6   :  { %v31_v15 = vld [vmem:[%s7867_s0 + $0x70] sm:$0xff]  ;;  %v32_v16 = vld [vmem:[%s7867_s0 + $0x78] sm:$0xff]  ;;  %v33_v17 = vld [vmem:[%s7867_s0 + $0x80] sm:$0xff] }
   0x7   :  { %v34_v18 = vld [vmem:[%s7867_s0 + $0x88] sm:$0xff]  ;;  %v35_v19 = vld [vmem:[%s7867_s0 + $0x90] sm:$0xff]  ;;  %v36_v20 = vld [vmem:[%s7867_s0 + $0x98] sm:$0xff] }
   0x8   :  { %5024 = vmatmul.mubr.msk.f32.gmra.mxu0 %vm89_vm1, %v20_v4  ;;  %v37_v21 = vld [vmem:[%s7867_s0 + $0xa0] sm:$0xff]  ;;  %v38_v22 = vld [vmem:[%s7867_s0 + $0xa8] sm:$0xff]  ;;  %v39_v23 = vld [vmem:[%s7867_s0 + $0xb0] sm:$0xff] }
   0x9   :  { %5026 = vmatprep.mubr.msk.f32.mxu0 %vm89_vm1, %v21_v5  ;;  %v40_v24 = vld [vmem:[%s7867_s0 + $0xb8] sm:$0xff]  ;;  %v41_v25 = vld [vmem:[%s7867_s0 + $0xc0] sm:$0xff]  ;;  %v42_v26 = vld [vmem:[%s7867_s0 + $0xc8] sm:$0xff] }
   0xa   :  { %v43_v27 = vld [vmem:[%s7867_s0 + $0xd0] sm:$0xff]  ;;  %v44_v28 = vld [vmem:[%s7867_s0 + $0xd8] sm:$0xff]  ;;  %v45_v29 = vld [vmem:[%s7867_s0 + $0xe0] sm:$0xff] }
   0xb   :  { %v46_v30 = vld [vmem:[%s7867_s0 + $0xe8] sm:$0xff]  ;;  %v47_v31 = vld [vmem:[%s7867_s0 + $0xf0] sm:$0xff]  ;;  %v48_v32 = vld [vmem:[%s7867_s0 + $0xf8] sm:$0xff] }
   0xc   :  { %5027 = vmatmul.mubr.msk.f32.gmra.mxu0 %vm89_vm1, %v22_v6  ;;  %v49_v33 = vld [vmem:[%s7867_s0 + $0x100] sm:$0xff]  ;;  %v50_v34 = vld [vmem:[%s7867_s0 + $0x108] sm:$0xff]  ;;  %v51_v35 = vld [vmem:[%s7867_s0 + $0x110] sm:$0xff] }
   0xd   :  { %5029 = vmatprep.mubr.msk.f32.mxu0 %vm89_vm1, %v23_v7  ;;  %v738_v36 = vld [vmem:[%s7868_s2 + $0x18] sm:$0xff]  ;;  %v737_v38 = vld [vmem:[%s7868_s2 + $0x10] sm:$0xff]  ;;  %v53_v39 = vld [vmem:[%s7867_s0 + $0x120] sm:$0xff] }
   0xe   :  { %5116 = vmatprep.subr.mxu1 %v738_v36  ;;  %v52_v37 = vld [vmem:[%s7867_s0 + $0x118] sm:$0xff]  ;;  %v736_v40 = vld [vmem:[%s7868_s2 + $0x8] sm:$0xff]  ;;  %v735_v42 = vld [vmem:[%s7868_s2] sm:$0xff] }
   0xf   :  { %5117 = vmatpush3.msra.mxu1 %v738_v36  ;;  %v54_v41 = vld [vmem:[%s7867_s0 + $0x128] sm:$0xff]  ;;  %v55_v43 = vld [vmem:[%s7867_s0 + $0x130] sm:$0xff]  ;;  %v56_v44 = vld [vmem:[%s7867_s0 + $0x138] sm:$0xff] }
  0x10   :  { %5030 = vmatmul.mubr.msk.f32.gmra.mxu0 %vm89_vm1, %v24_v8  ;;  %5118 = vmatprep.subr.mxu1 %v737_v38  ;;  %v57_v45 = vld [vmem:[%s7867_s0 + $0x140] sm:$0xff]  ;;  %v58_v46 = vld [vmem:[%s7867_s0 + $0x148] sm:$0xff]  ;;  %v59_v47 = vld [vmem:[%s7867_s0 + $0x150] sm:$0xff] }
  0x11   :  { %5032 = vmatprep.mubr.msk.f32.mxu0 %vm89_vm1, %v25_v9  ;;  %5119 = vmatpush3.msra.mxu1 %v737_v38  ;;  %v60_v48 = vld [vmem:[%s7867_s0 + $0x158] sm:$0xff]  ;;  %v61_v49 = vld [vmem:[%s7867_s0 + $0x160] sm:$0xff]  ;;  %v62_v50 = vld [vmem:[%s7867_s0 + $0x168] sm:$0xff] }
  0x12   :  { %5120 = vmatprep.subr.mxu1 %v736_v40  ;;  %v63_v51 = vld [vmem:[%s7867_s0 + $0x170] sm:$0xff]  ;;  %v64_v52 = vld [vmem:[%s7867_s0 + $0x178] sm:$0xff]  ;;  %v65_v53 = vld [vmem:[%s7867_s0 + $0x180] sm:$0xff] }
  0x13   :  { %5121 = vmatpush3.msra.mxu1 %v736_v40  ;;  %v66_v54 = vld [vmem:[%s7867_s0 + $0x188] sm:$0xff]  ;;  %v67_v55 = vld [vmem:[%s7867_s0 + $0x190] sm:$0xff]  ;;  %v68_v56 = vld [vmem:[%s7867_s0 + $0x198] sm:$0xff] }
  0x14   :  { %5033 = vmatmul.mubr.msk.f32.gmra.mxu0 %vm89_vm1, %v26_v10  ;;  %5122 = vmatprep.subr.mxu1 %v735_v42  ;;  %v69_v57 = vld [vmem:[%s7867_s0 + $0x1a0] sm:$0xff]  ;;  %v70_v58 = vld [vmem:[%s7867_s0 + $0x1a8] sm:$0xff]  ;;  %v71_v59 = vld [vmem:[%s7867_s0 + $0x1b0] sm:$0xff] }
  0x15   :  { %5035 = vmatprep.mubr.msk.f32.mxu0 %vm89_vm1, %v27_v11  ;;  %5123 = vmatpush3.msra.mxu1 %v735_v42  ;;  %v72_v60 = vld [vmem:[%s7867_s0 + $0x1b8] sm:$0xff]  ;;  %v73_v61 = vld [vmem:[%s7867_s0 + $0x1c0] sm:$0xff]  ;;  %v74_v62 = vld [vmem:[%s7867_s0 + $0x1c8] sm:$0xff] }
  0x16   :  { %v75_v63 = vld [vmem:[%s7867_s0 + $0x1d0] sm:$0xff]  ;;  %v76_v0 = vld [vmem:[%s7867_s0 + $0x1d8] sm:$0xff]  ;;  %v77_v1 = vld [vmem:[%s7867_s0 + $0x1e0] sm:$0xff] }
  0x17   :  { %v78_v2 = vld [vmem:[%s7867_s0 + $0x1e8] sm:$0xff]  ;;  %v79_v3 = vld [vmem:[%s7867_s0 + $0x1f0] sm:$0xff]  ;;  %v80_v4 = vld [vmem:[%s7867_s0 + $0x1f8] sm:$0xff] }
  0x18   :  { %5036 = vmatmul.mubr.msk.f32.gmra.mxu0 %vm89_vm1, %v28_v12  ;;  %v4336_v5 = vld [vmem:[%s7868_s2 + $0x38] sm:$0xff]  ;;  %v4335_v6 = vld [vmem:[%s7868_s2 + $0x30] sm:$0xff]  ;;  %v5941_v7 = vld [vmem:[%s7869_s3] ss:$0 sm:$0xff] }
  0x19   :  { %5038 = vmatprep.mubr.msk.f32.mxu0 %vm89_vm1, %v29_v13  ;;  %5220 = vmatprep.subr.mxu0 %v4336_v5  ;;  %v4334_v13 = vld [vmem:[%s7868_s2 + $0x28] sm:$0xff] }
  0x1a   :  { %5221 = vmatpush3.msra.mxu0 %v4336_v5 }
  0x1b   :  { %5222 = vmatprep.subr.mxu0 %v4335_v6 }
  0x1c   :  { %5039 = vmatmul.mubr.msk.f32.gmra.mxu0 %vm89_vm1, %v30_v14  ;;  %v4333_v14 = vld [vmem:[%s7868_s2 + $0x20] sm:$0xff] }
  0x1d   :  { %5041 = vmatprep.mubr.msk.f32.mxu0 %vm89_vm1, %v31_v15  ;;  %5223 = vmatpush3.msra.mxu0 %v4335_v6 }
  0x1e   :  { %5224 = vmatprep.subr.mxu0 %v4334_v13 }
  0x1f   :  { %5225 = vmatpush3.msra.mxu0 %v4334_v13 }
  0x20   :  { %5042 = vmatmul.mubr.msk.f32.gmra.mxu0 %vm89_vm1, %v32_v16  ;;  %5226 = vmatprep.subr.mxu0 %v4333_v14 }
  0x21   :  { %5044 = vmatprep.mubr.msk.f32.mxu0 %vm89_vm1, %v33_v17  ;;  %5227 = vmatpush3.msra.mxu0 %v4333_v14 }
  0x24   :  { %5045 = vmatmul.mubr.msk.f32.gmra.mxu0 %vm89_vm1, %v34_v18 }
  0x25   :  { %5047 = vmatprep.mubr.msk.f32.mxu0 %vm89_vm1, %v35_v19 }
  0x28   :  { %5048 = vmatmul.mubr.msk.f32.gmra.mxu0 %vm89_vm1, %v36_v20 }
  0x29   :  { %5050 = vmatprep.mubr.msk.f32.mxu0 %vm89_vm1, %v37_v21 }
  0x2c   :  { %5051 = vmatmul.mubr.msk.f32.gmra.mxu0 %vm89_vm1, %v38_v22 }
  0x2d   :  { %5053 = vmatprep.mubr.msk.f32.mxu0 %vm89_vm1, %v39_v23 }
  0x30   :  { %5054 = vmatmul.mubr.msk.f32.gmra.mxu0 %vm89_vm1, %v40_v24 }
  0x31   :  { %5056 = vmatprep.mubr.msk.f32.mxu0 %vm89_vm1, %v41_v25 }
  0x34   :  { %5057 = vmatmul.mubr.msk.f32.gmra.mxu0 %vm89_vm1, %v42_v26 }
  0x35   :  { %5059 = vmatprep.mubr.msk.f32.mxu0 %vm89_vm1, %v43_v27 }
  0x38   :  { %5060 = vmatmul.mubr.msk.f32.gmra.mxu0 %vm89_vm1, %v44_v28 }
  0x39   :  { %5062 = vmatprep.mubr.msk.f32.mxu0 %vm89_vm1, %v45_v29 }
  0x3c   :  { %5063 = vmatmul.mubr.msk.f32.gmra.mxu0 %vm89_vm1, %v46_v30 }
  0x3d   :  { %5065 = vmatprep.mubr.msk.f32.mxu0 %vm89_vm1, %v47_v31 }
  0x40   :  { %5066 = vmatmul.mubr.msk.f32.gmra.mxu0 %vm89_vm1, %v48_v32 }
  0x41   :  { %5068 = vmatprep.mubr.msk.f32.mxu0 %vm89_vm1, %v49_v33 }
  0x44   :  { %5069 = vmatmul.mubr.msk.f32.gmra.mxu0 %vm89_vm1, %v50_v34 }
  0x45   :  { %5071 = vmatprep.mubr.msk.f32.mxu0 %vm89_vm1, %v51_v35 }
  0x48   :  { %5072 = vmatmul.mubr.msk.f32.gmra.mxu0 %vm89_vm1, %v52_v37 }
  0x49   :  { %5074 = vmatprep.mubr.msk.f32.mxu0 %vm89_vm1, %v53_v39 }
  0x4c   :  { %5075 = vmatmul.mubr.msk.f32.gmra.mxu0 %vm89_vm1, %v54_v41 }
  0x4d   :  { %5077 = vmatprep.mubr.msk.f32.mxu0 %vm89_vm1, %v55_v43 }
  0x50   :  { %5078 = vmatmul.mubr.msk.f32.gmra.mxu0 %vm89_vm1, %v56_v44 }
  0x51   :  { %5080 = vmatprep.mubr.msk.f32.mxu0 %vm89_vm1, %v57_v45 }
  0x54   :  { %5081 = vmatmul.mubr.msk.f32.gmra.mxu0 %vm89_vm1, %v58_v46 }
  0x55   :  { %5083 = vmatprep.mubr.msk.f32.mxu0 %vm89_vm1, %v59_v47 }
  0x58   :  { %5084 = vmatmul.mubr.msk.f32.gmra.mxu0 %vm89_vm1, %v60_v48 }
  0x59   :  { %5086 = vmatprep.mubr.msk.f32.mxu0 %vm89_vm1, %v61_v49 }
  0x5c   :  { %5087 = vmatmul.mubr.msk.f32.gmra.mxu0 %vm89_vm1, %v62_v50 }
  0x5d   :  { %5089 = vmatprep.mubr.msk.f32.mxu0 %vm89_vm1, %v63_v51 }
  0x60   :  { %5090 = vmatmul.mubr.msk.f32.gmra.mxu0 %vm89_vm1, %v64_v52 }
  0x61   :  { %5092 = vmatprep.mubr.msk.f32.mxu0 %vm89_vm1, %v65_v53 }
  0x64   :  { %5093 = vmatmul.mubr.msk.f32.gmra.mxu0 %vm89_vm1, %v66_v54 }
  0x65   :  { %5095 = vmatprep.mubr.msk.f32.mxu0 %vm89_vm1, %v67_v55 }
  0x68   :  { %5096 = vmatmul.mubr.msk.f32.gmra.mxu0 %vm89_vm1, %v68_v56 }
  0x69   :  { %5098 = vmatprep.mubr.msk.f32.mxu0 %vm89_vm1, %v69_v57 }
  0x6c   :  { %5099 = vmatmul.mubr.msk.f32.gmra.mxu0 %vm89_vm1, %v70_v58 }
  0x6d   :  { %5101 = vmatprep.mubr.msk.f32.mxu0 %vm89_vm1, %v71_v59 }
  0x70   :  { %5102 = vmatmul.mubr.msk.f32.gmra.mxu0 %vm89_vm1, %v72_v60 }
  0x71   :  { %5104 = vmatprep.mubr.msk.f32.mxu0 %vm89_vm1, %v73_v61 }
  0x74   :  { %5105 = vmatmul.mubr.msk.f32.gmra.mxu0 %vm89_vm1, %v74_v62 }
  0x75   :  { %5107 = vmatprep.mubr.msk.f32.mxu0 %vm89_vm1, %v75_v63 }
  0x78   :  { %5108 = vmatmul.mubr.msk.f32.gmra.mxu0 %vm89_vm1, %v76_v0 }
  0x79   :  { %5110 = vmatprep.mubr.msk.f32.mxu0 %vm89_vm1, %v77_v1 }
  0x7c   :  { %5111 = vmatmul.mubr.msk.f32.gmra.mxu0 %vm89_vm1, %v78_v2 }
  0x7d   :  { %5113 = vmatprep.mubr.msk.f32.mxu0 %vm89_vm1, %v79_v3 }
  0x80   :  { %5114 = vmatmul.mubr.msk.f32.gmra.mxu0 %vm89_vm1, %v80_v4 }
  0xc4   :  { %v5022_v8 = vpop.f32.mrf.mxu0 }
  0xc5   :  { %v5944_v9 = vadd.f32 %v5022_v8, %v5941_v7 }
  0xc6   :  { %v352_v10 = vpop.f32.mrf.mxu0 }
  0xc7   :  { %v5947_v11 = vadd.f32 %v5941_v7, %v352_v10  ;;  %v7922_v16 = vmax.f32 %v5944_v9, 0.0 }
  0xc8   :  { %v5025_v12 = vpop.f32.mrf.mxu0 }
  0xc9   :  { %v7919_v15 = vmax.f32 %v5947_v11, 0.0  ;;  %v5958_v17 = vadd.f32 %v5025_v12, %v5941_v7 }
  0xca   :  { %v362_v18 = vpop.f32.mrf.mxu0 }
  0xcb   :  { %v5961_v19 = vadd.f32 %v5941_v7, %v362_v18  ;;  %5124 = vmatprep.mubr.msk.f32.mxu1 %vm747_vm2, %v7919_v15  ;;  %v7918_v22 = vmax.f32 %v5958_v17, 0.0 }
  0xcc   :  { %v5028_v20 = vpop.f32.mrf.mxu0  ;;  %5125 = vmatmul.mubr.msk.f32.vlgmr.msra.gmra.mxu1 %vm747_vm2, %v7922_v16 }
  0xcd   :  { %v7915_v21 = vmax.f32 %v5961_v19, 0.0  ;;  %v5972_v23 = vadd.f32 %v5028_v20, %v5941_v7 }
  0xce   :  { %v372_v24 = vpop.f32.mrf.mxu0 }
  0xcf   :  { %v5975_v25 = vadd.f32 %v5941_v7, %v372_v24  ;;  %5127 = vmatprep.mubr.msk.f32.mxu1 %vm747_vm2, %v7915_v21  ;;  %v7914_v28 = vmax.f32 %v5972_v23, 0.0 }
  0xd0   :  { %v5031_v26 = vpop.f32.mrf.mxu0  ;;  %5128 = vmatmul.mubr.msk.f32.gmra.mxu1 %vm747_vm2, %v7918_v22 }
  0xd1   :  { %v7911_v27 = vmax.f32 %v5975_v25, 0.0  ;;  %v5986_v29 = vadd.f32 %v5031_v26, %v5941_v7 }
  0xd2   :  { %v382_v30 = vpop.f32.mrf.mxu0 }
  0xd3   :  { %v5989_v31 = vadd.f32 %v5941_v7, %v382_v30  ;;  %5130 = vmatprep.mubr.msk.f32.mxu1 %vm747_vm2, %v7911_v27  ;;  %v7910_v34 = vmax.f32 %v5986_v29, 0.0 }
  0xd4   :  { %v5034_v32 = vpop.f32.mrf.mxu0  ;;  %5131 = vmatmul.mubr.msk.f32.gmra.mxu1 %vm747_vm2, %v7914_v28 }
  0xd5   :  { %v7907_v33 = vmax.f32 %v5989_v31, 0.0  ;;  %v6000_v35 = vadd.f32 %v5034_v32, %v5941_v7 }
  0xd6   :  { %v392_v36 = vpop.f32.mrf.mxu0 }
  0xd7   :  { %v6003_v37 = vadd.f32 %v5941_v7, %v392_v36  ;;  %5133 = vmatprep.mubr.msk.f32.mxu1 %vm747_vm2, %v7907_v33  ;;  %v7906_v40 = vmax.f32 %v6000_v35, 0.0 }
  0xd8   :  { %v5037_v38 = vpop.f32.mrf.mxu0  ;;  %5134 = vmatmul.mubr.msk.f32.gmra.mxu1 %vm747_vm2, %v7910_v34 }
  0xd9   :  { %v7903_v39 = vmax.f32 %v6003_v37, 0.0  ;;  %v6014_v41 = vadd.f32 %v5037_v38, %v5941_v7 }
  0xda   :  { %v402_v42 = vpop.f32.mrf.mxu0 }
  0xdb   :  { %v6017_v43 = vadd.f32 %v5941_v7, %v402_v42  ;;  %5136 = vmatprep.mubr.msk.f32.mxu1 %vm747_vm2, %v7903_v39  ;;  %v7902_v46 = vmax.f32 %v6014_v41, 0.0 }
  0xdc   :  { %v5040_v44 = vpop.f32.mrf.mxu0  ;;  %5137 = vmatmul.mubr.msk.f32.gmra.mxu1 %vm747_vm2, %v7906_v40 }
  0xdd   :  { %v7899_v45 = vmax.f32 %v6017_v43, 0.0  ;;  %v6028_v47 = vadd.f32 %v5040_v44, %v5941_v7 }
  0xde   :  { %v412_v48 = vpop.f32.mrf.mxu0 }
  0xdf   :  { %v6031_v49 = vadd.f32 %v5941_v7, %v412_v48  ;;  %5139 = vmatprep.mubr.msk.f32.mxu1 %vm747_vm2, %v7899_v45  ;;  %v7898_v52 = vmax.f32 %v6028_v47, 0.0 }
  0xe0   :  { %v5043_v50 = vpop.f32.mrf.mxu0  ;;  %5140 = vmatmul.mubr.msk.f32.gmra.mxu1 %vm747_vm2, %v7902_v46 }
  0xe1   :  { %v7895_v51 = vmax.f32 %v6031_v49, 0.0  ;;  %v6042_v53 = vadd.f32 %v5043_v50, %v5941_v7 }
  0xe2   :  { %v422_v54 = vpop.f32.mrf.mxu0 }
  0xe3   :  { %v6045_v55 = vadd.f32 %v5941_v7, %v422_v54  ;;  %5142 = vmatprep.mubr.msk.f32.mxu1 %vm747_vm2, %v7895_v51  ;;  %v7894_v58 = vmax.f32 %v6042_v53, 0.0 }
  0xe4   :  { %v5046_v56 = vpop.f32.mrf.mxu0  ;;  %5143 = vmatmul.mubr.msk.f32.gmra.mxu1 %vm747_vm2, %v7898_v52 }
  0xe5   :  { %v7891_v57 = vmax.f32 %v6045_v55, 0.0  ;;  %v6056_v59 = vadd.f32 %v5046_v56, %v5941_v7 }
  0xe6   :  { %v432_v60 = vpop.f32.mrf.mxu0 }
  0xe7   :  { %v6059_v61 = vadd.f32 %v5941_v7, %v432_v60  ;;  %5145 = vmatprep.mubr.msk.f32.mxu1 %vm747_vm2, %v7891_v57  ;;  %v7890_v0 = vmax.f32 %v6056_v59, 0.0 }
  0xe8   :  { %v5049_v62 = vpop.f32.mrf.mxu0  ;;  %5146 = vmatmul.mubr.msk.f32.gmra.mxu1 %vm747_vm2, %v7894_v58 }
  0xe9   :  { %v7887_v63 = vmax.f32 %v6059_v61, 0.0  ;;  %v6070_v1 = vadd.f32 %v5049_v62, %v5941_v7 }
  0xea   :  { %v442_v2 = vpop.f32.mrf.mxu0 }
  0xeb   :  { %v6073_v3 = vadd.f32 %v5941_v7, %v442_v2  ;;  %5148 = vmatprep.mubr.msk.f32.mxu1 %vm747_vm2, %v7887_v63  ;;  %v7886_v6 = vmax.f32 %v6070_v1, 0.0 }
  0xec   :  { %v5052_v4 = vpop.f32.mrf.mxu0  ;;  %5149 = vmatmul.mubr.msk.f32.gmra.mxu1 %vm747_vm2, %v7890_v0 }
  0xed   :  { %v7883_v5 = vmax.f32 %v6073_v3, 0.0  ;;  %v6084_v8 = vadd.f32 %v5052_v4, %v5941_v7 }
  0xee   :  { %v452_v10 = vpop.f32.mrf.mxu0 }
  0xef   :  { %v6087_v12 = vadd.f32 %v5941_v7, %v452_v10  ;;  %5151 = vmatprep.mubr.msk.f32.mxu1 %vm747_vm2, %v7883_v5  ;;  %v7882_v18 = vmax.f32 %v6084_v8, 0.0 }
  0xf0   :  { %v5055_v13 = vpop.f32.mrf.mxu0  ;;  %5152 = vmatmul.mubr.msk.f32.gmra.mxu1 %vm747_vm2, %v7886_v6 }
  0xf1   :  { %v7879_v14 = vmax.f32 %v6087_v12, 0.0  ;;  %v6098_v20 = vadd.f32 %v5055_v13, %v5941_v7 }
  0xf2   :  { %v462_v24 = vpop.f32.mrf.mxu0 }
  0xf3   :  { %v6101_v26 = vadd.f32 %v5941_v7, %v462_v24  ;;  %5154 = vmatprep.mubr.msk.f32.mxu1 %vm747_vm2, %v7879_v14  ;;  %v7878_v36 = vmax.f32 %v6098_v20, 0.0 }
  0xf4   :  { %v5058_v30 = vpop.f32.mrf.mxu0  ;;  %5155 = vmatmul.mubr.msk.f32.gmra.mxu1 %vm747_vm2, %v7882_v18 }
  0xf5   :  { %v7875_v32 = vmax.f32 %v6101_v26, 0.0  ;;  %v6112_v38 = vadd.f32 %v5058_v30, %v5941_v7 }
  0xf6   :  { %v472_v42 = vpop.f32.mrf.mxu0 }
  0xf7   :  { %v6115_v44 = vadd.f32 %v5941_v7, %v472_v42  ;;  %5157 = vmatprep.mubr.msk.f32.mxu1 %vm747_vm2, %v7875_v32  ;;  %v7874_v54 = vmax.f32 %v6112_v38, 0.0 }
  0xf8   :  { %v5061_v48 = vpop.f32.mrf.mxu0  ;;  %5158 = vmatmul.mubr.msk.f32.gmra.mxu1 %vm747_vm2, %v7878_v36 }
  0xf9   :  { %v7871_v50 = vmax.f32 %v6115_v44, 0.0  ;;  %v6126_v56 = vadd.f32 %v5061_v48, %v5941_v7 }
  0xfa   :  { %v482_v60 = vpop.f32.mrf.mxu0 }
  0xfb   :  { %v6129_v62 = vadd.f32 %v5941_v7, %v482_v60  ;;  %5160 = vmatprep.mubr.msk.f32.mxu1 %vm747_vm2, %v7871_v50  ;;  %v7873_v10 = vmax.f32 %v6126_v56, 0.0 }
  0xfc   :  { %v5064_v2 = vpop.f32.mrf.mxu0  ;;  %5161 = vmatmul.mubr.msk.f32.gmra.mxu1 %vm747_vm2, %v7874_v54 }
  0xfd   :  { %v7872_v4 = vmax.f32 %v6129_v62, 0.0  ;;  %v6140_v13 = vadd.f32 %v5064_v2, %v5941_v7 }
  0xfe   :  { %v492_v24 = vpop.f32.mrf.mxu0 }
  0xff   :  { %v6143_v30 = vadd.f32 %v5941_v7, %v492_v24  ;;  %5163 = vmatprep.mubr.msk.f32.mxu1 %vm747_vm2, %v7872_v4  ;;  %v7877_v60 = vmax.f32 %v6140_v13, 0.0 }
 0x100   :  { %v5067_v42 = vpop.f32.mrf.mxu0  ;;  %5164 = vmatmul.mubr.msk.f32.gmra.mxu1 %vm747_vm2, %v7873_v10 }
 0x101   :  { %v7876_v48 = vmax.f32 %v6143_v30, 0.0  ;;  %v6154_v2 = vadd.f32 %v5067_v42, %v5941_v7 }
 0x102   :  { %v502_v50 = vpop.f32.mrf.mxu0 }
 0x103   :  { %v6157_v24 = vadd.f32 %v5941_v7, %v502_v50  ;;  %5166 = vmatprep.mubr.msk.f32.mxu1 %vm747_vm2, %v7876_v48  ;;  %v7881_v54 = vmax.f32 %v6154_v2, 0.0 }
 0x104   :  { %v5070_v4 = vpop.f32.mrf.mxu0  ;;  %5167 = vmatmul.mubr.msk.f32.gmra.mxu1 %vm747_vm2, %v7877_v60 }
 0x105   :  { %v7880_v10 = vmax.f32 %v6157_v24, 0.0  ;;  %v6168_v42 = vadd.f32 %v5070_v4, %v5941_v7 }
 0x106   :  { %v512_v32 = vpop.f32.mrf.mxu0 }
 0x107   :  { %v6171_v50 = vadd.f32 %v5941_v7, %v512_v32  ;;  %5169 = vmatprep.mubr.msk.f32.mxu1 %vm747_vm2, %v7880_v10  ;;  %v7885_v36 = vmax.f32 %v6168_v42, 0.0 }
 0x108   :  { %v5073_v48 = vpop.f32.mrf.mxu0  ;;  %5170 = vmatmul.mubr.msk.f32.gmra.mxu1 %vm747_vm2, %v7881_v54 }
 0x109   :  { %v7884_v60 = vmax.f32 %v6171_v50, 0.0  ;;  %v6182_v4 = vadd.f32 %v5073_v48, %v5941_v7 }
 0x10a   :  { %v522_v14 = vpop.f32.mrf.mxu0 }
 0x10b   :  { %v6185_v32 = vadd.f32 %v5941_v7, %v522_v14  ;;  %5172 = vmatprep.mubr.msk.f32.mxu1 %vm747_vm2, %v7884_v60  ;;  %v7889_v18 = vmax.f32 %v6182_v4, 0.0 }
 0x10c   :  { %v5076_v10 = vpop.f32.mrf.mxu0  ;;  %5173 = vmatmul.mubr.msk.f32.gmra.mxu1 %vm747_vm2, %v7885_v36 }
 0x10d   :  { %v7888_v54 = vmax.f32 %v6185_v32, 0.0  ;;  %v6196_v48 = vadd.f32 %v5076_v10, %v5941_v7 }
 0x10e   :  { %v532_v5 = vpop.f32.mrf.mxu0 }
 0x10f   :  { %v6199_v14 = vadd.f32 %v5941_v7, %v532_v5  ;;  %5175 = vmatprep.mubr.msk.f32.mxu1 %vm747_vm2, %v7888_v54  ;;  %v7893_v6 = vmax.f32 %v6196_v48, 0.0 }
 0x110   :  { %v5079_v60 = vpop.f32.mrf.mxu0  ;;  %5176 = vmatmul.mubr.msk.f32.gmra.mxu1 %vm747_vm2, %v7889_v18 }
 0x111   :  { %v7892_v36 = vmax.f32 %v6199_v14, 0.0  ;;  %v6210_v10 = vadd.f32 %v5079_v60, %v5941_v7 }
 0x112   :  { %v542_v63 = vpop.f32.mrf.mxu0 }
 0x113   :  { %v6213_v5 = vadd.f32 %v5941_v7, %v542_v63  ;;  %5178 = vmatprep.mubr.msk.f32.mxu1 %vm747_vm2, %v7892_v36  ;;  %v7897_v0 = vmax.f32 %v6210_v10, 0.0 }
 0x114   :  { %v5082_v54 = vpop.f32.mrf.mxu0  ;;  %5179 = vmatmul.mubr.msk.f32.gmra.mxu1 %vm747_vm2, %v7893_v6 }
 0x115   :  { %v7896_v18 = vmax.f32 %v6213_v5, 0.0  ;;  %v6224_v60 = vadd.f32 %v5082_v54, %v5941_v7 }
 0x116   :  { %v552_v57 = vpop.f32.mrf.mxu0 }
 0x117   :  { %v6227_v63 = vadd.f32 %v5941_v7, %v552_v57  ;;  %5181 = vmatprep.mubr.msk.f32.mxu1 %vm747_vm2, %v7896_v18  ;;  %v7901_v58 = vmax.f32 %v6224_v60, 0.0 }
 0x118   :  { %v5085_v36 = vpop.f32.mrf.mxu0  ;;  %5182 = vmatmul.mubr.msk.f32.gmra.mxu1 %vm747_vm2, %v7897_v0 }
 0x119   :  { %v7900_v6 = vmax.f32 %v6227_v63, 0.0  ;;  %v6238_v54 = vadd.f32 %v5085_v36, %v5941_v7 }
 0x11a   :  { %v562_v51 = vpop.f32.mrf.mxu0 }
 0x11b   :  { %v6241_v57 = vadd.f32 %v5941_v7, %v562_v51  ;;  %5184 = vmatprep.mubr.msk.f32.mxu1 %vm747_vm2, %v7900_v6  ;;  %v7905_v52 = vmax.f32 %v6238_v54, 0.0 }
 0x11c   :  { %v5088_v18 = vpop.f32.mrf.mxu0  ;;  %5185 = vmatmul.mubr.msk.f32.gmra.mxu1 %vm747_vm2, %v7901_v58 }
 0x11d   :  { %v7904_v0 = vmax.f32 %v6241_v57, 0.0  ;;  %v6252_v36 = vadd.f32 %v5088_v18, %v5941_v7 }
 0x11e   :  { %v572_v45 = vpop.f32.mrf.mxu0 }
 0x11f   :  { %v6255_v51 = vadd.f32 %v5941_v7, %v572_v45  ;;  %5187 = vmatprep.mubr.msk.f32.mxu1 %vm747_vm2, %v7904_v0  ;;  %v7909_v46 = vmax.f32 %v6252_v36, 0.0 }
 0x120   :  { %v5091_v6 = vpop.f32.mrf.mxu0  ;;  %5188 = vmatmul.mubr.msk.f32.gmra.mxu1 %vm747_vm2, %v7905_v52 }
 0x121   :  { %v7908_v58 = vmax.f32 %v6255_v51, 0.0  ;;  %v6266_v18 = vadd.f32 %v5091_v6, %v5941_v7 }
 0x122   :  { %v582_v39 = vpop.f32.mrf.mxu0 }
 0x123   :  { %v6269_v45 = vadd.f32 %v5941_v7, %v582_v39  ;;  %5190 = vmatprep.mubr.msk.f32.mxu1 %vm747_vm2, %v7908_v58  ;;  %v7913_v40 = vmax.f32 %v6266_v18, 0.0 }
 0x124   :  { %v5094_v0 = vpop.f32.mrf.mxu0  ;;  %5191 = vmatmul.mubr.msk.f32.gmra.mxu1 %vm747_vm2, %v7909_v46 }
 0x125   :  { %v7912_v52 = vmax.f32 %v6269_v45, 0.0  ;;  %v6280_v6 = vadd.f32 %v5094_v0, %v5941_v7 }
 0x126   :  { %v592_v33 = vpop.f32.mrf.mxu0 }
 0x127   :  { %8033 = vst [vmem:[#allocation2_spill] sm:$0xff] %v6280_v6  ;;  %v6283_v39 = vadd.f32 %v5941_v7, %v592_v33  ;;  %5193 = vmatprep.mubr.msk.f32.mxu1 %vm747_vm2, %v7912_v52  ;;  %v7917_v34 = vmax.f32 %v6280_v6, 0.0 }
 0x128   :  { %v5097_v58 = vpop.f32.mrf.mxu0  ;;  %5194 = vmatmul.mubr.msk.f32.gmra.mxu1 %vm747_vm2, %v7913_v40 }
 0x129   :  { %8034 = vst [vmem:[#allocation3_spill] sm:$0xff] %v6283_v39  ;;  %v7916_v46 = vmax.f32 %v6283_v39, 0.0  ;;  %v6294_v0 = vadd.f32 %v5097_v58, %v5941_v7 }
 0x12a   :  { %v602_v27 = vpop.f32.mrf.mxu0 }
 0x12b   :  { %8035 = vst [vmem:[#allocation4_spill] sm:$0xff] %v6294_v0  ;;  %v6297_v33 = vadd.f32 %v5941_v7, %v602_v27  ;;  %5196 = vmatprep.mubr.msk.f32.mxu1 %vm747_vm2, %v7916_v46  ;;  %v7921_v28 = vmax.f32 %v6294_v0, 0.0 }
 0x12c   :  { %v5100_v52 = vpop.f32.mrf.mxu0  ;;  %5197 = vmatmul.mubr.msk.f32.gmra.mxu1 %vm747_vm2, %v7917_v34 }
 0x12d   :  { %8036 = vst [vmem:[#allocation5_spill] sm:$0xff] %v6297_v33  ;;  %v7920_v40 = vmax.f32 %v6297_v33, 0.0  ;;  %v6308_v58 = vadd.f32 %v5100_v52, %v5941_v7 }
 0x12e   :  { %v612_v21 = vpop.f32.mrf.mxu0 }
 0x12f   :  { %8037 = vst [vmem:[#allocation6_spill] sm:$0xff] %v6308_v58  ;;  %v6311_v27 = vadd.f32 %v5941_v7, %v612_v21  ;;  %5199 = vmatprep.mubr.msk.f32.mxu1 %vm747_vm2, %v7920_v40  ;;  %v7925_v22 = vmax.f32 %v6308_v58, 0.0 }
 0x130   :  { %v5103_v46 = vpop.f32.mrf.mxu0  ;;  %5200 = vmatmul.mubr.msk.f32.gmra.mxu1 %vm747_vm2, %v7921_v28 }
 0x131   :  { %8038 = vst [vmem:[#allocation7_spill] sm:$0xff] %v6311_v27  ;;  %v7924_v34 = vmax.f32 %v6311_v27, 0.0  ;;  %v6322_v52 = vadd.f32 %v5103_v46, %v5941_v7 }
 0x132   :  { %v622_v15 = vpop.f32.mrf.mxu0 }
 0x133   :  { %8039 = vst [vmem:[#allocation8_spill] sm:$0xff] %v6322_v52  ;;  %v6325_v21 = vadd.f32 %v5941_v7, %v622_v15  ;;  %5202 = vmatprep.mubr.msk.f32.mxu1 %vm747_vm2, %v7924_v34  ;;  %v7929_v16 = vmax.f32 %v6322_v52, 0.0 }
 0x134   :  { %v5106_v40 = vpop.f32.mrf.mxu0  ;;  %5203 = vmatmul.mubr.msk.f32.gmra.mxu1 %vm747_vm2, %v7925_v22 }
 0x135   :  { %8040 = vst [vmem:[#allocation9_spill] sm:$0xff] %v6325_v21  ;;  %v7928_v28 = vmax.f32 %v6325_v21, 0.0  ;;  %v6336_v46 = vadd.f32 %v5106_v40, %v5941_v7 }
 0x136   :  { %v632_v33 = vpop.f32.mrf.mxu0 }
 0x137   :  { %8041 = vst [vmem:[#allocation10_spill] sm:$0xff] %v6336_v46  ;;  %v6339_v15 = vadd.f32 %v5941_v7, %v632_v33  ;;  %5205 = vmatprep.mubr.msk.f32.mxu1 %vm747_vm2, %v7928_v28  ;;  %v7933_v27 = vmax.f32 %v6336_v46, 0.0 }
 0x138   :  { %v5109_v34 = vpop.f32.mrf.mxu0  ;;  %5206 = vmatmul.mubr.msk.f32.gmra.mxu1 %vm747_vm2, %v7929_v16 }
 0x139   :  { %8042 = vst [vmem:[#allocation11_spill] sm:$0xff] %v6339_v15  ;;  %v7932_v22 = vmax.f32 %v6339_v15, 0.0  ;;  %v6350_v40 = vadd.f32 %v5109_v34, %v5941_v7 }
 0x13a   :  { %v642_v58 = vpop.f32.mrf.mxu0 }
 0x13b   :  { %8043 = vst [vmem:[#allocation12_spill] sm:$0xff] %v6350_v40  ;;  %v6353_v33 = vadd.f32 %v5941_v7, %v642_v58  ;;  %5208 = vmatprep.mubr.msk.f32.mxu1 %vm747_vm2, %v7932_v22  ;;  %v7937_v21 = vmax.f32 %v6350_v40, 0.0 }
 0x13c   :  { %v5112_v28 = vpop.f32.mrf.mxu0  ;;  %5209 = vmatmul.mubr.msk.f32.gmra.mxu1 %vm747_vm2, %v7933_v27 }
 0x13d   :  { %8044 = vst [vmem:[#allocation13_spill] sm:$0xff] %v6353_v33  ;;  %v7936_v16 = vmax.f32 %v6353_v33, 0.0  ;;  %v6364_v34 = vadd.f32 %v5112_v28, %v5941_v7 }
 0x13e   :  { %v652_v52 = vpop.f32.mrf.mxu0 }
 0x13f   :  { %8045 = vst [vmem:[#allocation14_spill] sm:$0xff] %v6364_v34  ;;  %v6367_v58 = vadd.f32 %v5941_v7, %v652_v52  ;;  %5211 = vmatprep.mubr.msk.f32.mxu1 %vm747_vm2, %v7936_v16  ;;  %v7941_v15 = vmax.f32 %v6364_v34, 0.0 }
 0x140   :  { %v5115_v22 = vpop.f32.mrf.mxu0  ;;  %5212 = vmatmul.mubr.msk.f32.gmra.mxu1 %vm747_vm2, %v7937_v21 }
 0x141   :  { %8046 = vst [vmem:[#allocation15_spill] sm:$0xff] %v6367_v58  ;;  %v7940_v27 = vmax.f32 %v6367_v58, 0.0  ;;  %v6378_v28 = vadd.f32 %v5115_v22, %v5941_v7  ;;  %v4405_v22 = vld [vmem:[%s7868_s2 + $0x50] sm:$0xff] }
 0x142   :  { %v662_v46 = vpop.f32.mrf.mxu0 }
 0x143   :  { %8047 = vst [vmem:[#allocation16_spill] sm:$0xff] %v6378_v28  ;;  %v6381_v52 = vadd.f32 %v5941_v7, %v662_v46  ;;  %5214 = vmatprep.mubr.msk.f32.mxu1 %vm747_vm2, %v7940_v27  ;;  %v7939_v21 = vmax.f32 %v6378_v28, 0.0  ;;  %v4406_v7 = vld [vmem:[%s7868_s2 + $0x58] sm:$0xff]  ;;  %v6406_v46 = vld [vmem:[%s7869_s3 + $0x1] ss:$0 sm:$0xff] }
 0x144   :  { %5215 = vmatmul.mubr.msk.f32.gmra.mxu1 %vm747_vm2, %v7941_v15  ;;  %5324 = vmatprep.subr.mxu1 %v4406_v7 }
 0x145   :  { %8048 = vst [vmem:[#allocation17_spill] sm:$0xff] %v6381_v52  ;;  %v7938_v16 = vmax.f32 %v6381_v52, 0.0  ;;  %5325 = vmatpush3.msra.mxu1 %v4406_v7  ;;  %v4404_v7 = vld [vmem:[%s7868_s2 + $0x48] sm:$0xff] }
 0x146   :  { %5326 = vmatprep.subr.mxu1 %v4405_v22 }
 0x147   :  { %5217 = vmatprep.mubr.msk.f32.mxu1 %vm747_vm2, %v7938_v16  ;;  %5327 = vmatpush3.msra.mxu1 %v4405_v22  ;;  %v4403_v22 = vld [vmem:[%s7868_s2 + $0x40] sm:$0xff] }
 0x148   :  { %5218 = vmatmul.mubr.msk.f32.gmra.mxu1 %vm747_vm2, %v7939_v21  ;;  %5328 = vmatprep.subr.mxu1 %v4404_v7 }
 0x149   :  { %5329 = vmatpush3.msra.mxu1 %v4404_v7 }
 0x14a   :  { %5330 = vmatprep.subr.mxu1 %v4403_v22 }
 0x14b   :  { %5331 = vmatpush3.msra.mxu1 %v4403_v22 }
 0x18c   :  { %v5126_v16 = vpop.f32.mrf.mxu1 }
 0x18d   :  { %v1012_v21 = vadd.f32 %v5126_v16, %v6406_v46 }
 0x18e   :  { %v1006_v27 = vpop.f32.mrf.mxu1 }
 0x18f   :  { %v1007_v15 = vadd.f32 %v6406_v46, %v1006_v27  ;;  %v1326_v58 = vmax.f32 %v1012_v21, 0.0 }
 0x190   :  { %v5129_v52 = vpop.f32.mrf.mxu1 }
 0x191   :  { %v1325_v28 = vmax.f32 %v1007_v15, 0.0  ;;  %v1022_v34 = vadd.f32 %v5129_v52, %v6406_v46 }
 0x192   :  { %v1016_v33 = vpop.f32.mrf.mxu1 }
 0x193   :  { %v1017_v16 = vadd.f32 %v6406_v46, %v1016_v33  ;;  %5228 = vmatprep.mubr.msk.f32.mxu0 %vm747_vm2, %v1325_v28  ;;  %v1328_v0 = vmax.f32 %v1022_v34, 0.0 }
 0x194   :  { %v5132_v27 = vpop.f32.mrf.mxu1  ;;  %5229 = vmatmul.mubr.msk.f32.vlgmr.msra.gmra.mxu0 %vm747_vm2, %v1326_v58 }
 0x195   :  { %v1327_v40 = vmax.f32 %v1017_v16, 0.0  ;;  %v1032_v39 = vadd.f32 %v5132_v27, %v6406_v46 }
 0x196   :  { %v1026_v15 = vpop.f32.mrf.mxu1 }
 0x197   :  { %v1027_v21 = vadd.f32 %v6406_v46, %v1026_v15  ;;  %5231 = vmatprep.mubr.msk.f32.mxu0 %vm747_vm2, %v1327_v40  ;;  %v1330_v7 = vmax.f32 %v1032_v39, 0.0 }
 0x198   :  { %v5135_v52 = vpop.f32.mrf.mxu1  ;;  %5232 = vmatmul.mubr.msk.f32.gmra.mxu0 %vm747_vm2, %v1328_v0 }
 0x199   :  { %v1329_v33 = vmax.f32 %v1027_v21, 0.0  ;;  %v1042_v28 = vadd.f32 %v5135_v52, %v6406_v46 }
 0x19a   :  { %v1036_v6 = vpop.f32.mrf.mxu1 }
 0x19b   :  { %v1037_v58 = vadd.f32 %v6406_v46, %v1036_v6  ;;  %5234 = vmatprep.mubr.msk.f32.mxu0 %vm747_vm2, %v1329_v33  ;;  %v1332_v16 = vmax.f32 %v1042_v28, 0.0 }
 0x19c   :  { %v5138_v34 = vpop.f32.mrf.mxu1  ;;  %5235 = vmatmul.mubr.msk.f32.gmra.mxu0 %vm747_vm2, %v1330_v7 }
 0x19d   :  { %v1331_v22 = vmax.f32 %v1037_v58, 0.0  ;;  %v1052_v27 = vadd.f32 %v5138_v34, %v6406_v46 }
 0x19e   :  { %v1046_v40 = vpop.f32.mrf.mxu1 }
 0x19f   :  { %v1047_v15 = vadd.f32 %v6406_v46, %v1046_v40  ;;  %5237 = vmatprep.mubr.msk.f32.mxu0 %vm747_vm2, %v1331_v22  ;;  %v1334_v21 = vmax.f32 %v1052_v27, 0.0 }
 0x1a0   :  { %v5141_v39 = vpop.f32.mrf.mxu1  ;;  %5238 = vmatmul.mubr.msk.f32.gmra.mxu0 %vm747_vm2, %v1332_v16 }
 0x1a1   :  { %v1333_v0 = vmax.f32 %v1047_v15, 0.0  ;;  %v1062_v6 = vadd.f32 %v5141_v39, %v6406_v46 }
 0x1a2   :  { %v1056_v52 = vpop.f32.mrf.mxu1 }
 0x1a3   :  { %v1057_v33 = vadd.f32 %v6406_v46, %v1056_v52  ;;  %5240 = vmatprep.mubr.msk.f32.mxu0 %vm747_vm2, %v1333_v0  ;;  %v1336_v58 = vmax.f32 %v1062_v6, 0.0 }
 0x1a4   :  { %v5144_v7 = vpop.f32.mrf.mxu1  ;;  %5241 = vmatmul.mubr.msk.f32.gmra.mxu0 %vm747_vm2, %v1334_v21 }
 0x1a5   :  { %v1335_v28 = vmax.f32 %v1057_v33, 0.0  ;;  %v1072_v34 = vadd.f32 %v5144_v7, %v6406_v46 }
 0x1a6   :  { %v1066_v22 = vpop.f32.mrf.mxu1 }
 0x1a7   :  { %v1067_v40 = vadd.f32 %v6406_v46, %v1066_v22  ;;  %5243 = vmatprep.mubr.msk.f32.mxu0 %vm747_vm2, %v1335_v28  ;;  %v1338_v15 = vmax.f32 %v1072_v34, 0.0 }
 0x1a8   :  { %v5147_v16 = vpop.f32.mrf.mxu1  ;;  %5244 = vmatmul.mubr.msk.f32.gmra.mxu0 %vm747_vm2, %v1336_v58 }
 0x1a9   :  { %v1337_v27 = vmax.f32 %v1067_v40, 0.0  ;;  %v1082_v39 = vadd.f32 %v5147_v16, %v6406_v46 }
 0x1aa   :  { %v1076_v0 = vpop.f32.mrf.mxu1 }
 0x1ab   :  { %v1077_v52 = vadd.f32 %v6406_v46, %v1076_v0  ;;  %5246 = vmatprep.mubr.msk.f32.mxu0 %vm747_vm2, %v1337_v27  ;;  %v1340_v33 = vmax.f32 %v1082_v39, 0.0 }
 0x1ac   :  { %v5150_v21 = vpop.f32.mrf.mxu1  ;;  %5247 = vmatmul.mubr.msk.f32.gmra.mxu0 %vm747_vm2, %v1338_v15 }
 0x1ad   :  { %v1339_v6 = vmax.f32 %v1077_v52, 0.0  ;;  %v1092_v7 = vadd.f32 %v5150_v21, %v6406_v46 }
 0x1ae   :  { %v1086_v28 = vpop.f32.mrf.mxu1 }
 0x1af   :  { %v1087_v22 = vadd.f32 %v6406_v46, %v1086_v28  ;;  %5249 = vmatprep.mubr.msk.f32.mxu0 %vm747_vm2, %v1339_v6  ;;  %v1342_v40 = vmax.f32 %v1092_v7, 0.0 }
 0x1b0   :  { %v5153_v58 = vpop.f32.mrf.mxu1  ;;  %5250 = vmatmul.mubr.msk.f32.gmra.mxu0 %vm747_vm2, %v1340_v33 }
 0x1b1   :  { %v1341_v34 = vmax.f32 %v1087_v22, 0.0  ;;  %v1102_v16 = vadd.f32 %v5153_v58, %v6406_v46 }
 0x1b2   :  { %v1096_v27 = vpop.f32.mrf.mxu1 }
 0x1b3   :  { %v1097_v0 = vadd.f32 %v6406_v46, %v1096_v27  ;;  %5252 = vmatprep.mubr.msk.f32.mxu0 %vm747_vm2, %v1341_v34  ;;  %v1344_v52 = vmax.f32 %v1102_v16, 0.0 }
 0x1b4   :  { %v5156_v15 = vpop.f32.mrf.mxu1  ;;  %5253 = vmatmul.mubr.msk.f32.gmra.mxu0 %vm747_vm2, %v1342_v40 }
 0x1b5   :  { %v1343_v39 = vmax.f32 %v1097_v0, 0.0  ;;  %v1112_v21 = vadd.f32 %v5156_v15, %v6406_v46 }
 0x1b6   :  { %v1106_v6 = vpop.f32.mrf.mxu1 }
 0x1b7   :  { %v1107_v28 = vadd.f32 %v6406_v46, %v1106_v6  ;;  %5255 = vmatprep.mubr.msk.f32.mxu0 %vm747_vm2, %v1343_v39  ;;  %v1346_v22 = vmax.f32 %v1112_v21, 0.0 }
 0x1b8   :  { %v5159_v33 = vpop.f32.mrf.mxu1  ;;  %5256 = vmatmul.mubr.msk.f32.gmra.mxu0 %vm747_vm2, %v1344_v52 }
 0x1b9   :  { %v1345_v7 = vmax.f32 %v1107_v28, 0.0  ;;  %v1122_v58 = vadd.f32 %v5159_v33, %v6406_v46 }
 0x1ba   :  { %v1116_v34 = vpop.f32.mrf.mxu1 }
 0x1bb   :  { %v1117_v27 = vadd.f32 %v6406_v46, %v1116_v34  ;;  %5258 = vmatprep.mubr.msk.f32.mxu0 %vm747_vm2, %v1345_v7  ;;  %v1348_v0 = vmax.f32 %v1122_v58, 0.0 }
 0x1bc   :  { %v5162_v40 = vpop.f32.mrf.mxu1  ;;  %5259 = vmatmul.mubr.msk.f32.gmra.mxu0 %vm747_vm2, %v1346_v22 }
 0x1bd   :  { %v1347_v16 = vmax.f32 %v1117_v27, 0.0  ;;  %v1132_v15 = vadd.f32 %v5162_v40, %v6406_v46 }
 0x1be   :  { %v1126_v39 = vpop.f32.mrf.mxu1 }
 0x1bf   :  { %v1127_v6 = vadd.f32 %v6406_v46, %v1126_v39  ;;  %5261 = vmatprep.mubr.msk.f32.mxu0 %vm747_vm2, %v1347_v16  ;;  %v1350_v28 = vmax.f32 %v1132_v15, 0.0 }
 0x1c0   :  { %v5165_v52 = vpop.f32.mrf.mxu1  ;;  %5262 = vmatmul.mubr.msk.f32.gmra.mxu0 %vm747_vm2, %v1348_v0 }
 0x1c1   :  { %v1349_v21 = vmax.f32 %v1127_v6, 0.0  ;;  %v1142_v33 = vadd.f32 %v5165_v52, %v6406_v46 }
 0x1c2   :  { %v1136_v7 = vpop.f32.mrf.mxu1 }
 0x1c3   :  { %v1137_v34 = vadd.f32 %v6406_v46, %v1136_v7  ;;  %5264 = vmatprep.mubr.msk.f32.mxu0 %vm747_vm2, %v1349_v21  ;;  %v1352_v27 = vmax.f32 %v1142_v33, 0.0 }
 0x1c4   :  { %v5168_v22 = vpop.f32.mrf.mxu1  ;;  %5265 = vmatmul.mubr.msk.f32.gmra.mxu0 %vm747_vm2, %v1350_v28 }
 0x1c5   :  { %v1351_v58 = vmax.f32 %v1137_v34, 0.0  ;;  %v1152_v40 = vadd.f32 %v5168_v22, %v6406_v46 }
 0x1c6   :  { %v1146_v16 = vpop.f32.mrf.mxu1 }
 0x1c7   :  { %v1147_v39 = vadd.f32 %v6406_v46, %v1146_v16  ;;  %5267 = vmatprep.mubr.msk.f32.mxu0 %vm747_vm2, %v1351_v58  ;;  %v1354_v6 = vmax.f32 %v1152_v40, 0.0 }
 0x1c8   :  { %v5171_v0 = vpop.f32.mrf.mxu1  ;;  %5268 = vmatmul.mubr.msk.f32.gmra.mxu0 %vm747_vm2, %v1352_v27 }
 0x1c9   :  { %v1353_v15 = vmax.f32 %v1147_v39, 0.0  ;;  %v1162_v52 = vadd.f32 %v5171_v0, %v6406_v46 }
 0x1ca   :  { %v1156_v21 = vpop.f32.mrf.mxu1 }
 0x1cb   :  { %v1157_v7 = vadd.f32 %v6406_v46, %v1156_v21  ;;  %5270 = vmatprep.mubr.msk.f32.mxu0 %vm747_vm2, %v1353_v15  ;;  %v1356_v34 = vmax.f32 %v1162_v52, 0.0 }
 0x1cc   :  { %v5174_v28 = vpop.f32.mrf.mxu1  ;;  %5271 = vmatmul.mubr.msk.f32.gmra.mxu0 %vm747_vm2, %v1354_v6 }
 0x1cd   :  { %v1355_v33 = vmax.f32 %v1157_v7, 0.0  ;;  %v1172_v22 = vadd.f32 %v5174_v28, %v6406_v46 }
 0x1ce   :  { %v1166_v58 = vpop.f32.mrf.mxu1 }
 0x1cf   :  { %v1167_v16 = vadd.f32 %v6406_v46, %v1166_v58  ;;  %5273 = vmatprep.mubr.msk.f32.mxu0 %vm747_vm2, %v1355_v33  ;;  %v1358_v39 = vmax.f32 %v1172_v22, 0.0 }
 0x1d0   :  { %v5177_v27 = vpop.f32.mrf.mxu1  ;;  %5274 = vmatmul.mubr.msk.f32.gmra.mxu0 %vm747_vm2, %v1356_v34 }
 0x1d1   :  { %v1357_v40 = vmax.f32 %v1167_v16, 0.0  ;;  %v1182_v0 = vadd.f32 %v5177_v27, %v6406_v46 }
 0x1d2   :  { %v1176_v15 = vpop.f32.mrf.mxu1 }
 0x1d3   :  { %v1177_v21 = vadd.f32 %v6406_v46, %v1176_v15  ;;  %5276 = vmatprep.mubr.msk.f32.mxu0 %vm747_vm2, %v1357_v40  ;;  %v1360_v7 = vmax.f32 %v1182_v0, 0.0 }
 0x1d4   :  { %v5180_v6 = vpop.f32.mrf.mxu1  ;;  %5277 = vmatmul.mubr.msk.f32.gmra.mxu0 %vm747_vm2, %v1358_v39 }
 0x1d5   :  { %v1359_v52 = vmax.f32 %v1177_v21, 0.0  ;;  %v1192_v28 = vadd.f32 %v5180_v6, %v6406_v46 }
 0x1d6   :  { %v1186_v33 = vpop.f32.mrf.mxu1 }
 0x1d7   :  { %v1187_v58 = vadd.f32 %v6406_v46, %v1186_v33  ;;  %5279 = vmatprep.mubr.msk.f32.mxu0 %vm747_vm2, %v1359_v52  ;;  %v1362_v16 = vmax.f32 %v1192_v28, 0.0 }
 0x1d8   :  { %v5183_v34 = vpop.f32.mrf.mxu1  ;;  %5280 = vmatmul.mubr.msk.f32.gmra.mxu0 %vm747_vm2, %v1360_v7 }
 0x1d9   :  { %v1361_v22 = vmax.f32 %v1187_v58, 0.0  ;;  %v1202_v27 = vadd.f32 %v5183_v34, %v6406_v46 }
 0x1da   :  { %v1196_v40 = vpop.f32.mrf.mxu1 }
 0x1db   :  { %v1197_v15 = vadd.f32 %v6406_v46, %v1196_v40  ;;  %5282 = vmatprep.mubr.msk.f32.mxu0 %vm747_vm2, %v1361_v22  ;;  %v1364_v21 = vmax.f32 %v1202_v27, 0.0 }
 0x1dc   :  { %v5186_v39 = vpop.f32.mrf.mxu1  ;;  %5283 = vmatmul.mubr.msk.f32.gmra.mxu0 %vm747_vm2, %v1362_v16 }
 0x1dd   :  { %v1363_v0 = vmax.f32 %v1197_v15, 0.0  ;;  %v1212_v6 = vadd.f32 %v5186_v39, %v6406_v46 }
 0x1de   :  { %v1206_v52 = vpop.f32.mrf.mxu1 }
 0x1df   :  { %v1207_v33 = vadd.f32 %v6406_v46, %v1206_v52  ;;  %5285 = vmatprep.mubr.msk.f32.mxu0 %vm747_vm2, %v1363_v0  ;;  %v1366_v58 = vmax.f32 %v1212_v6, 0.0 }
 0x1e0   :  { %v5189_v7 = vpop.f32.mrf.mxu1  ;;  %5286 = vmatmul.mubr.msk.f32.gmra.mxu0 %vm747_vm2, %v1364_v21 }
 0x1e1   :  { %v1365_v28 = vmax.f32 %v1207_v33, 0.0  ;;  %v1222_v34 = vadd.f32 %v5189_v7, %v6406_v46 }
 0x1e2   :  { %v1216_v22 = vpop.f32.mrf.mxu1 }
 0x1e3   :  { %v1217_v40 = vadd.f32 %v6406_v46, %v1216_v22  ;;  %5288 = vmatprep.mubr.msk.f32.mxu0 %vm747_vm2, %v1365_v28  ;;  %v1368_v15 = vmax.f32 %v1222_v34, 0.0 }
 0x1e4   :  { %v5192_v16 = vpop.f32.mrf.mxu1  ;;  %5289 = vmatmul.mubr.msk.f32.gmra.mxu0 %vm747_vm2, %v1366_v58 }
 0x1e5   :  { %v1367_v27 = vmax.f32 %v1217_v40, 0.0  ;;  %v1232_v39 = vadd.f32 %v5192_v16, %v6406_v46 }
 0x1e6   :  { %v1226_v0 = vpop.f32.mrf.mxu1 }
 0x1e7   :  { %v1227_v52 = vadd.f32 %v6406_v46, %v1226_v0  ;;  %5291 = vmatprep.mubr.msk.f32.mxu0 %vm747_vm2, %v1367_v27  ;;  %v1370_v33 = vmax.f32 %v1232_v39, 0.0 }
 0x1e8   :  { %v5195_v21 = vpop.f32.mrf.mxu1  ;;  %5292 = vmatmul.mubr.msk.f32.gmra.mxu0 %vm747_vm2, %v1368_v15 }
 0x1e9   :  { %v1369_v6 = vmax.f32 %v1227_v52, 0.0  ;;  %v1242_v7 = vadd.f32 %v5195_v21, %v6406_v46 }
 0x1ea   :  { %v1236_v28 = vpop.f32.mrf.mxu1 }
 0x1eb   :  { %v1237_v22 = vadd.f32 %v6406_v46, %v1236_v28  ;;  %5294 = vmatprep.mubr.msk.f32.mxu0 %vm747_vm2, %v1369_v6  ;;  %v1372_v40 = vmax.f32 %v1242_v7, 0.0 }
 0x1ec   :  { %v5198_v58 = vpop.f32.mrf.mxu1  ;;  %5295 = vmatmul.mubr.msk.f32.gmra.mxu0 %vm747_vm2, %v1370_v33 }
 0x1ed   :  { %v1371_v34 = vmax.f32 %v1237_v22, 0.0  ;;  %v1252_v16 = vadd.f32 %v5198_v58, %v6406_v46 }
 0x1ee   :  { %v1246_v27 = vpop.f32.mrf.mxu1 }
 0x1ef   :  { %v1247_v0 = vadd.f32 %v6406_v46, %v1246_v27  ;;  %5297 = vmatprep.mubr.msk.f32.mxu0 %vm747_vm2, %v1371_v34  ;;  %v1374_v52 = vmax.f32 %v1252_v16, 0.0 }
 0x1f0   :  { %v5201_v15 = vpop.f32.mrf.mxu1  ;;  %5298 = vmatmul.mubr.msk.f32.gmra.mxu0 %vm747_vm2, %v1372_v40 }
 0x1f1   :  { %v1373_v39 = vmax.f32 %v1247_v0, 0.0  ;;  %v1262_v21 = vadd.f32 %v5201_v15, %v6406_v46 }
 0x1f2   :  { %v1256_v6 = vpop.f32.mrf.mxu1 }
 0x1f3   :  { %v1257_v28 = vadd.f32 %v6406_v46, %v1256_v6  ;;  %5300 = vmatprep.mubr.msk.f32.mxu0 %vm747_vm2, %v1373_v39  ;;  %v1376_v22 = vmax.f32 %v1262_v21, 0.0 }
 0x1f4   :  { %v5204_v33 = vpop.f32.mrf.mxu1  ;;  %5301 = vmatmul.mubr.msk.f32.gmra.mxu0 %vm747_vm2, %v1374_v52 }
 0x1f5   :  { %v1375_v7 = vmax.f32 %v1257_v28, 0.0  ;;  %v1272_v58 = vadd.f32 %v5204_v33, %v6406_v46 }
 0x1f6   :  { %v1266_v34 = vpop.f32.mrf.mxu1 }
 0x1f7   :  { %v1267_v27 = vadd.f32 %v6406_v46, %v1266_v34  ;;  %5303 = vmatprep.mubr.msk.f32.mxu0 %vm747_vm2, %v1375_v7  ;;  %v1378_v0 = vmax.f32 %v1272_v58, 0.0 }
 0x1f8   :  { %v5207_v40 = vpop.f32.mrf.mxu1  ;;  %5304 = vmatmul.mubr.msk.f32.gmra.mxu0 %vm747_vm2, %v1376_v22 }
 0x1f9   :  { %v1377_v16 = vmax.f32 %v1267_v27, 0.0  ;;  %v1282_v15 = vadd.f32 %v5207_v40, %v6406_v46 }
 0x1fa   :  { %v1276_v39 = vpop.f32.mrf.mxu1 }
 0x1fb   :  { %v1277_v6 = vadd.f32 %v6406_v46, %v1276_v39  ;;  %5306 = vmatprep.mubr.msk.f32.mxu0 %vm747_vm2, %v1377_v16  ;;  %v1380_v28 = vmax.f32 %v1282_v15, 0.0 }
 0x1fc   :  { %v5210_v52 = vpop.f32.mrf.mxu1  ;;  %5307 = vmatmul.mubr.msk.f32.gmra.mxu0 %vm747_vm2, %v1378_v0 }
 0x1fd   :  { %v1379_v21 = vmax.f32 %v1277_v6, 0.0  ;;  %v1292_v33 = vadd.f32 %v5210_v52, %v6406_v46 }
 0x1fe   :  { %v1286_v7 = vpop.f32.mrf.mxu1 }
 0x1ff   :  { %v1287_v34 = vadd.f32 %v6406_v46, %v1286_v7  ;;  %5309 = vmatprep.mubr.msk.f32.mxu0 %vm747_vm2, %v1379_v21  ;;  %v1382_v27 = vmax.f32 %v1292_v33, 0.0 }
 0x200   :  { %v5213_v22 = vpop.f32.mrf.mxu1  ;;  %5310 = vmatmul.mubr.msk.f32.gmra.mxu0 %vm747_vm2, %v1380_v28 }
 0x201   :  { %v1381_v58 = vmax.f32 %v1287_v34, 0.0  ;;  %v1302_v40 = vadd.f32 %v5213_v22, %v6406_v46 }
 0x202   :  { %v1296_v16 = vpop.f32.mrf.mxu1 }
 0x203   :  { %v1297_v39 = vadd.f32 %v6406_v46, %v1296_v16  ;;  %5312 = vmatprep.mubr.msk.f32.mxu0 %vm747_vm2, %v1381_v58  ;;  %v1384_v6 = vmax.f32 %v1302_v40, 0.0 }
 0x204   :  { %v5216_v0 = vpop.f32.mrf.mxu1  ;;  %5313 = vmatmul.mubr.msk.f32.gmra.mxu0 %vm747_vm2, %v1382_v27 }
 0x205   :  { %v1383_v15 = vmax.f32 %v1297_v39, 0.0  ;;  %v1312_v52 = vadd.f32 %v5216_v0, %v6406_v46  ;;  %v4476_v39 = vld [vmem:[%s7868_s2 + $0x78] sm:$0xff]  ;;  %v6551_v0 = vld [vmem:[%s7869_s3 + $0x2] ss:$0 sm:$0xff] }
 0x206   :  { %v1306_v21 = vpop.f32.mrf.mxu1  ;;  %5428 = vmatprep.subr.mxu0 %v4476_v39 }
 0x207   :  { %v1307_v7 = vadd.f32 %v6406_v46, %v1306_v21  ;;  %5315 = vmatprep.mubr.msk.f32.mxu0 %vm747_vm2, %v1383_v15  ;;  %v1386_v34 = vmax.f32 %v1312_v52, 0.0  ;;  %5429 = vmatpush3.msra.mxu0 %v4476_v39 }
 0x208   :  { %v5219_v28 = vpop.f32.mrf.mxu1  ;;  %5316 = vmatmul.mubr.msk.f32.gmra.mxu0 %vm747_vm2, %v1384_v6 }
 0x209   :  { %v1385_v33 = vmax.f32 %v1307_v7, 0.0  ;;  %v1322_v22 = vadd.f32 %v5219_v28, %v6406_v46  ;;  %v8049_v7 = vmax.f32 %v5944_v9, 0.0 }
 0x20a   :  { %v1316_v58 = vpop.f32.mrf.mxu1 }
 0x20b   :  { %v1317_v16 = vadd.f32 %v6406_v46, %v1316_v58  ;;  %5318 = vmatprep.mubr.msk.f32.mxu0 %vm747_vm2, %v1385_v33  ;;  %v1388_v40 = vmax.f32 %v1322_v22, 0.0  ;;  %v4475_v46 = vld [vmem:[%s7868_s2 + $0x70] sm:$0xff] }
 0x20c   :  { %5319 = vmatmul.mubr.msk.f32.gmra.mxu0 %vm747_vm2, %v1386_v34  ;;  %5430 = vmatprep.subr.mxu0 %v4475_v46  ;;  %v8050_v34 = vmax.f32 %v5947_v11, 0.0 }
 0x20d   :  { %v1387_v27 = vmax.f32 %v1317_v16, 0.0  ;;  %5431 = vmatpush3.msra.mxu0 %v4475_v46  ;;  %v8051_v46 = vmax.f32 %v5958_v17, 0.0 }
 0x20f   :  { %5321 = vmatprep.mubr.msk.f32.mxu0 %vm747_vm2, %v1387_v27  ;;  %v4474_v27 = vld [vmem:[%s7868_s2 + $0x68] sm:$0xff] }
 0x210   :  { %5322 = vmatmul.mubr.msk.f32.gmra.mxu0 %vm747_vm2, %v1388_v40  ;;  %v4473_v40 = vld [vmem:[%s7868_s2 + $0x60] sm:$0xff]  ;;  %5432 = vmatprep.subr.mxu0 %v4474_v27 }
 0x211   :  { %5433 = vmatpush3.msra.mxu0 %v4474_v27 }
 0x212   :  { %5434 = vmatprep.subr.mxu0 %v4473_v40 }
 0x213   :  { %5435 = vmatpush3.msra.mxu0 %v4473_v40 }
 0x254   :  { %v5230_v15 = vpop.f32.mrf.mxu0 }
 0x255   :  { %v1666_v6 = vadd.f32 %v5230_v15, %v6551_v0 }
 0x256   :  { %v1660_v52 = vpop.f32.mrf.mxu0 }
 0x257   :  { %v1661_v21 = vadd.f32 %v6551_v0, %v1660_v52  ;;  %v6557_v28 = vadd.f32 %v1666_v6, %v8049_v7  ;;  %v8052_v52 = vmax.f32 %v5961_v19, 0.0 }
 0x258   :  { %v5233_v33 = vpop.f32.mrf.mxu0 }
 0x259   :  { %v6561_v22 = vadd.f32 %v1661_v21, %v8050_v34  ;;  %v1676_v58 = vadd.f32 %v5233_v33, %v6551_v0  ;;  %v7996_v11 = vmax.f32 %v6557_v28, 0.0 }
 0x25a   :  { %v1670_v16 = vpop.f32.mrf.mxu0 }
 0x25b   :  { %v7993_v9 = vmax.f32 %v6561_v22, 0.0  ;;  %v1671_v39 = vadd.f32 %v6551_v0, %v1670_v16  ;;  %v6575_v15 = vadd.f32 %v1676_v58, %v8051_v46  ;;  %v8053_v58 = vmax.f32 %v5972_v23, 0.0 }
 0x25c   :  { %v5236_v6 = vpop.f32.mrf.mxu0 }
 0x25d   :  { %v6579_v21 = vadd.f32 %v1671_v39, %v8052_v52  ;;  %v1686_v7 = vadd.f32 %v5236_v6, %v6551_v0  ;;  %5332 = vmatprep.mubr.msk.f32.mxu1 %vm747_vm2, %v7993_v9  ;;  %v7992_v19 = vmax.f32 %v6575_v15, 0.0  ;;  %v8054_v39 = vmax.f32 %v5975_v25, 0.0 }
 0x25e   :  { %v1680_v33 = vpop.f32.mrf.mxu0  ;;  %5333 = vmatmul.mubr.msk.f32.vlgmr.msra.gmra.mxu1 %vm747_vm2, %v7996_v11  ;;  %v8055_v25 = vmax.f32 %v5986_v29, 0.0 }
 0x25f   :  { %v7951_v17 = vmax.f32 %v6579_v21, 0.0  ;;  %v1681_v34 = vadd.f32 %v6551_v0, %v1680_v33  ;;  %v6593_v16 = vadd.f32 %v1686_v7, %v8053_v58  ;;  %v8056_v58 = vmax.f32 %v5989_v31, 0.0 }
 0x260   :  { %v5239_v27 = vpop.f32.mrf.mxu0  ;;  %v8057_v31 = vmax.f32 %v6000_v35, 0.0 }
 0x261   :  { %v6597_v46 = vadd.f32 %v1681_v34, %v8054_v39  ;;  %v1696_v6 = vadd.f32 %v5239_v27, %v6551_v0  ;;  %5335 = vmatprep.mubr.msk.f32.mxu1 %vm747_vm2, %v7951_v17  ;;  %v7953_v7 = vmax.f32 %v6593_v16, 0.0 }
 0x262   :  { %v1690_v40 = vpop.f32.mrf.mxu0  ;;  %5336 = vmatmul.mubr.msk.f32.gmra.mxu1 %vm747_vm2, %v7992_v19 }
 0x263   :  { %v7952_v23 = vmax.f32 %v6597_v46, 0.0  ;;  %v1691_v52 = vadd.f32 %v6551_v0, %v1690_v40  ;;  %v6611_v33 = vadd.f32 %v1696_v6, %v8055_v25 }
 0x264   :  { %v5242_v34 = vpop.f32.mrf.mxu0 }
 0x265   :  { %v6615_v27 = vadd.f32 %v1691_v52, %v8056_v58  ;;  %v1706_v39 = vadd.f32 %v5242_v34, %v6551_v0  ;;  %5338 = vmatprep.mubr.msk.f32.mxu1 %vm747_vm2, %v7952_v23  ;;  %v7955_v40 = vmax.f32 %v6611_v33, 0.0  ;;  %v8058_v34 = vmax.f32 %v6003_v37, 0.0 }
 0x266   :  { %v1700_v17 = vpop.f32.mrf.mxu0  ;;  %5339 = vmatmul.mubr.msk.f32.gmra.mxu1 %vm747_vm2, %v7953_v7  ;;  %v8059_v37 = vmax.f32 %v6014_v41, 0.0 }
 0x267   :  { %v7954_v29 = vmax.f32 %v6615_v27, 0.0  ;;  %v1701_v6 = vadd.f32 %v6551_v0, %v1700_v17  ;;  %v6629_v52 = vadd.f32 %v1706_v39, %v8057_v31 }
 0x268   :  { %v5245_v25 = vpop.f32.mrf.mxu0 }
 0x269   :  { %v6633_v58 = vadd.f32 %v1701_v6, %v8058_v34  ;;  %v1716_v23 = vadd.f32 %v5245_v25, %v6551_v0  ;;  %5341 = vmatprep.mubr.msk.f32.mxu1 %vm747_vm2, %v7954_v29  ;;  %v7957_v39 = vmax.f32 %v6629_v52, 0.0  ;;  %v8060_v25 = vmax.f32 %v6017_v43, 0.0 }
 0x26a   :  { %v1710_v7 = vpop.f32.mrf.mxu0  ;;  %5342 = vmatmul.mubr.msk.f32.gmra.mxu1 %vm747_vm2, %v7955_v40  ;;  %v8061_v43 = vmax.f32 %v6028_v47, 0.0 }
 0x26b   :  { %v7956_v35 = vmax.f32 %v6633_v58, 0.0  ;;  %v1711_v17 = vadd.f32 %v6551_v0, %v1710_v7  ;;  %v6647_v6 = vadd.f32 %v1716_v23, %v8059_v37 }
 0x26c   :  { %v5248_v31 = vpop.f32.mrf.mxu0 }
 0x26d   :  { %v6651_v34 = vadd.f32 %v1711_v17, %v8060_v25  ;;  %v1726_v29 = vadd.f32 %v5248_v31, %v6551_v0  ;;  %5344 = vmatprep.mubr.msk.f32.mxu1 %vm747_vm2, %v7956_v35  ;;  %v7959_v7 = vmax.f32 %v6647_v6, 0.0  ;;  %v8062_v31 = vmax.f32 %v6031_v49, 0.0 }
 0x26e   :  { %v1720_v40 = vpop.f32.mrf.mxu0  ;;  %5345 = vmatmul.mubr.msk.f32.gmra.mxu1 %vm747_vm2, %v7957_v39  ;;  %v8063_v49 = vmax.f32 %v6042_v53, 0.0 }
 0x26f   :  { %v7958_v41 = vmax.f32 %v6651_v34, 0.0  ;;  %v1721_v23 = vadd.f32 %v6551_v0, %v1720_v40  ;;  %v6665_v17 = vadd.f32 %v1726_v29, %v8061_v43 }
 0x270   :  { %v5251_v37 = vpop.f32.mrf.mxu0 }
 0x271   :  { %v6669_v25 = vadd.f32 %v1721_v23, %v8062_v31  ;;  %v1736_v35 = vadd.f32 %v5251_v37, %v6551_v0  ;;  %5347 = vmatprep.mubr.msk.f32.mxu1 %vm747_vm2, %v7958_v41  ;;  %v7961_v40 = vmax.f32 %v6665_v17, 0.0  ;;  %v8064_v37 = vmax.f32 %v6045_v55, 0.0 }
 0x272   :  { %v1730_v39 = vpop.f32.mrf.mxu0  ;;  %5348 = vmatmul.mubr.msk.f32.gmra.mxu1 %vm747_vm2, %v7959_v7  ;;  %v8065_v55 = vmax.f32 %v6056_v59, 0.0 }
 0x273   :  { %v7960_v47 = vmax.f32 %v6669_v25, 0.0  ;;  %v1731_v29 = vadd.f32 %v6551_v0, %v1730_v39  ;;  %v6683_v23 = vadd.f32 %v1736_v35, %v8063_v49 }
 0x274   :  { %v5254_v43 = vpop.f32.mrf.mxu0 }
 0x275   :  { %v6687_v31 = vadd.f32 %v1731_v29, %v8064_v37  ;;  %v1746_v41 = vadd.f32 %v5254_v43, %v6551_v0  ;;  %5350 = vmatprep.mubr.msk.f32.mxu1 %vm747_vm2, %v7960_v47  ;;  %v7963_v39 = vmax.f32 %v6683_v23, 0.0  ;;  %v8066_v43 = vmax.f32 %v6059_v61, 0.0 }
 0x276   :  { %v1740_v7 = vpop.f32.mrf.mxu0  ;;  %5351 = vmatmul.mubr.msk.f32.gmra.mxu1 %vm747_vm2, %v7961_v40  ;;  %v8067_v61 = vmax.f32 %v6070_v1, 0.0 }
 0x277   :  { %v7962_v53 = vmax.f32 %v6687_v31, 0.0  ;;  %v1741_v35 = vadd.f32 %v6551_v0, %v1740_v7  ;;  %v6701_v29 = vadd.f32 %v1746_v41, %v8065_v55 }
 0x278   :  { %v5257_v49 = vpop.f32.mrf.mxu0 }
 0x279   :  { %v6705_v37 = vadd.f32 %v1741_v35, %v8066_v43  ;;  %v1756_v47 = vadd.f32 %v5257_v49, %v6551_v0  ;;  %5353 = vmatprep.mubr.msk.f32.mxu1 %vm747_vm2, %v7962_v53  ;;  %v7965_v7 = vmax.f32 %v6701_v29, 0.0  ;;  %v8068_v49 = vmax.f32 %v6073_v3, 0.0 }
 0x27a   :  { %v1750_v40 = vpop.f32.mrf.mxu0  ;;  %5354 = vmatmul.mubr.msk.f32.gmra.mxu1 %vm747_vm2, %v7963_v39  ;;  %v8069_v3 = vmax.f32 %v6084_v8, 0.0 }
 0x27b   :  { %v7964_v59 = vmax.f32 %v6705_v37, 0.0  ;;  %v1751_v41 = vadd.f32 %v6551_v0, %v1750_v40  ;;  %v6719_v35 = vadd.f32 %v1756_v47, %v8067_v61 }
 0x27c   :  { %v5260_v55 = vpop.f32.mrf.mxu0 }
 0x27d   :  { %v6723_v43 = vadd.f32 %v1751_v41, %v8068_v49  ;;  %v1766_v53 = vadd.f32 %v5260_v55, %v6551_v0  ;;  %5356 = vmatprep.mubr.msk.f32.mxu1 %vm747_vm2, %v7964_v59  ;;  %v7967_v40 = vmax.f32 %v6719_v35, 0.0  ;;  %v8070_v55 = vmax.f32 %v6087_v12, 0.0 }
 0x27e   :  { %v1760_v39 = vpop.f32.mrf.mxu0  ;;  %5357 = vmatmul.mubr.msk.f32.gmra.mxu1 %vm747_vm2, %v7965_v7  ;;  %v8071_v12 = vmax.f32 %v6098_v20, 0.0 }
 0x27f   :  { %v7966_v1 = vmax.f32 %v6723_v43, 0.0  ;;  %v1761_v47 = vadd.f32 %v6551_v0, %v1760_v39  ;;  %v6737_v41 = vadd.f32 %v1766_v53, %v8069_v3 }
 0x280   :  { %v5263_v61 = vpop.f32.mrf.mxu0 }
 0x281   :  { %v6741_v49 = vadd.f32 %v1761_v47, %v8070_v55  ;;  %v1776_v59 = vadd.f32 %v5263_v61, %v6551_v0  ;;  %5359 = vmatprep.mubr.msk.f32.mxu1 %vm747_vm2, %v7966_v1  ;;  %v7969_v39 = vmax.f32 %v6737_v41, 0.0  ;;  %v8072_v61 = vmax.f32 %v6101_v26, 0.0 }
 0x282   :  { %v1770_v7 = vpop.f32.mrf.mxu0  ;;  %5360 = vmatmul.mubr.msk.f32.gmra.mxu1 %vm747_vm2, %v7967_v40  ;;  %v8073_v26 = vmax.f32 %v6112_v38, 0.0 }
 0x283   :  { %v7968_v8 = vmax.f32 %v6741_v49, 0.0  ;;  %v1771_v53 = vadd.f32 %v6551_v0, %v1770_v7  ;;  %v6755_v47 = vadd.f32 %v1776_v59, %v8071_v12 }
 0x284   :  { %v5266_v3 = vpop.f32.mrf.mxu0 }
 0x285   :  { %v6759_v55 = vadd.f32 %v1771_v53, %v8072_v61  ;;  %v1786_v1 = vadd.f32 %v5266_v3, %v6551_v0  ;;  %5362 = vmatprep.mubr.msk.f32.mxu1 %vm747_vm2, %v7968_v8  ;;  %v7971_v7 = vmax.f32 %v6755_v47, 0.0  ;;  %v8074_v3 = vmax.f32 %v6115_v44, 0.0 }
 0x286   :  { %v1780_v40 = vpop.f32.mrf.mxu0  ;;  %5363 = vmatmul.mubr.msk.f32.gmra.mxu1 %vm747_vm2, %v7969_v39  ;;  %v8075_v44 = vmax.f32 %v6126_v56, 0.0 }
 0x287   :  { %v7970_v20 = vmax.f32 %v6759_v55, 0.0  ;;  %v1781_v59 = vadd.f32 %v6551_v0, %v1780_v40  ;;  %v6773_v53 = vadd.f32 %v1786_v1, %v8073_v26 }
 0x288   :  { %v5269_v12 = vpop.f32.mrf.mxu0 }
 0x289   :  { %v6777_v61 = vadd.f32 %v1781_v59, %v8074_v3  ;;  %v1796_v8 = vadd.f32 %v5269_v12, %v6551_v0  ;;  %5365 = vmatprep.mubr.msk.f32.mxu1 %vm747_vm2, %v7970_v20  ;;  %v7973_v40 = vmax.f32 %v6773_v53, 0.0  ;;  %v8076_v12 = vmax.f32 %v6129_v62, 0.0 }
 0x28a   :  { %v1790_v39 = vpop.f32.mrf.mxu0  ;;  %5366 = vmatmul.mubr.msk.f32.gmra.mxu1 %vm747_vm2, %v7971_v7  ;;  %v8077_v62 = vmax.f32 %v6140_v13, 0.0 }
 0x28b   :  { %v7972_v38 = vmax.f32 %v6777_v61, 0.0  ;;  %v1791_v1 = vadd.f32 %v6551_v0, %v1790_v39  ;;  %v6791_v59 = vadd.f32 %v1796_v8, %v8075_v44 }
 0x28c   :  { %v5272_v26 = vpop.f32.mrf.mxu0 }
 0x28d   :  { %v6795_v3 = vadd.f32 %v1791_v1, %v8076_v12  ;;  %v1806_v20 = vadd.f32 %v5272_v26, %v6551_v0  ;;  %5368 = vmatprep.mubr.msk.f32.mxu1 %vm747_vm2, %v7972_v38  ;;  %v7975_v39 = vmax.f32 %v6791_v59, 0.0  ;;  %v8078_v26 = vmax.f32 %v6143_v30, 0.0 }
 0x28e   :  { %v1800_v7 = vpop.f32.mrf.mxu0  ;;  %5369 = vmatmul.mubr.msk.f32.gmra.mxu1 %vm747_vm2, %v7973_v40  ;;  %v8079_v30 = vmax.f32 %v6154_v2, 0.0 }
 0x28f   :  { %v7974_v56 = vmax.f32 %v6795_v3, 0.0  ;;  %v1801_v8 = vadd.f32 %v6551_v0, %v1800_v7  ;;  %v6809_v1 = vadd.f32 %v1806_v20, %v8077_v62 }
 0x290   :  { %v5275_v44 = vpop.f32.mrf.mxu0 }
 0x291   :  { %v6813_v12 = vadd.f32 %v1801_v8, %v8078_v26  ;;  %v1816_v38 = vadd.f32 %v5275_v44, %v6551_v0  ;;  %5371 = vmatprep.mubr.msk.f32.mxu1 %vm747_vm2, %v7974_v56  ;;  %v7977_v7 = vmax.f32 %v6809_v1, 0.0  ;;  %v8080_v44 = vmax.f32 %v6157_v24, 0.0 }
 0x292   :  { %v1810_v40 = vpop.f32.mrf.mxu0  ;;  %5372 = vmatmul.mubr.msk.f32.gmra.mxu1 %vm747_vm2, %v7975_v39  ;;  %v8081_v24 = vmax.f32 %v6168_v42, 0.0 }
 0x293   :  { %v7976_v13 = vmax.f32 %v6813_v12, 0.0  ;;  %v1811_v20 = vadd.f32 %v6551_v0, %v1810_v40  ;;  %v6827_v8 = vadd.f32 %v1816_v38, %v8079_v30 }
 0x294   :  { %v5278_v62 = vpop.f32.mrf.mxu0 }
 0x295   :  { %v6831_v26 = vadd.f32 %v1811_v20, %v8080_v44  ;;  %v1826_v56 = vadd.f32 %v5278_v62, %v6551_v0  ;;  %5374 = vmatprep.mubr.msk.f32.mxu1 %vm747_vm2, %v7976_v13  ;;  %v7979_v40 = vmax.f32 %v6827_v8, 0.0  ;;  %v8082_v62 = vmax.f32 %v6171_v50, 0.0 }
 0x296   :  { %v1820_v39 = vpop.f32.mrf.mxu0  ;;  %5375 = vmatmul.mubr.msk.f32.gmra.mxu1 %vm747_vm2, %v7977_v7  ;;  %v8083_v50 = vmax.f32 %v6182_v4, 0.0 }
 0x297   :  { %v7978_v2 = vmax.f32 %v6831_v26, 0.0  ;;  %v1821_v38 = vadd.f32 %v6551_v0, %v1820_v39  ;;  %v6845_v20 = vadd.f32 %v1826_v56, %v8081_v24 }
 0x298   :  { %v5281_v30 = vpop.f32.mrf.mxu0 }
 0x299   :  { %v6849_v44 = vadd.f32 %v1821_v38, %v8082_v62  ;;  %v1836_v13 = vadd.f32 %v5281_v30, %v6551_v0  ;;  %5377 = vmatprep.mubr.msk.f32.mxu1 %vm747_vm2, %v7978_v2  ;;  %v7981_v39 = vmax.f32 %v6845_v20, 0.0  ;;  %v8084_v30 = vmax.f32 %v6185_v32, 0.0 }
 0x29a   :  { %v1830_v7 = vpop.f32.mrf.mxu0  ;;  %5378 = vmatmul.mubr.msk.f32.gmra.mxu1 %vm747_vm2, %v7979_v40  ;;  %v8085_v32 = vmax.f32 %v6196_v48, 0.0 }
 0x29b   :  { %v7980_v42 = vmax.f32 %v6849_v44, 0.0  ;;  %v1831_v56 = vadd.f32 %v6551_v0, %v1830_v7  ;;  %v6863_v38 = vadd.f32 %v1836_v13, %v8083_v50 }
 0x29c   :  { %v5284_v24 = vpop.f32.mrf.mxu0 }
 0x29d   :  { %v6867_v62 = vadd.f32 %v1831_v56, %v8084_v30  ;;  %v1846_v2 = vadd.f32 %v5284_v24, %v6551_v0  ;;  %5380 = vmatprep.mubr.msk.f32.mxu1 %vm747_vm2, %v7980_v42  ;;  %v7983_v7 = vmax.f32 %v6863_v38, 0.0  ;;  %v8086_v24 = vmax.f32 %v6199_v14, 0.0 }
 0x29e   :  { %v1840_v40 = vpop.f32.mrf.mxu0  ;;  %5381 = vmatmul.mubr.msk.f32.gmra.mxu1 %vm747_vm2, %v7981_v39  ;;  %v8087_v14 = vmax.f32 %v6210_v10, 0.0 }
 0x29f   :  { %v7982_v4 = vmax.f32 %v6867_v62, 0.0  ;;  %v1841_v13 = vadd.f32 %v6551_v0, %v1840_v40  ;;  %v6881_v56 = vadd.f32 %v1846_v2, %v8085_v32 }
 0x2a0   :  { %v5287_v50 = vpop.f32.mrf.mxu0 }
 0x2a1   :  { %v6885_v30 = vadd.f32 %v1841_v13, %v8086_v24  ;;  %v1856_v42 = vadd.f32 %v5287_v50, %v6551_v0  ;;  %5383 = vmatprep.mubr.msk.f32.mxu1 %vm747_vm2, %v7982_v4  ;;  %v7985_v40 = vmax.f32 %v6881_v56, 0.0  ;;  %v8088_v50 = vmax.f32 %v6213_v5, 0.0 }
 0x2a2   :  { %v1850_v39 = vpop.f32.mrf.mxu0  ;;  %5384 = vmatmul.mubr.msk.f32.gmra.mxu1 %vm747_vm2, %v7983_v7  ;;  %v8089_v5 = vmax.f32 %v6224_v60, 0.0 }
 0x2a3   :  { %v7984_v48 = vmax.f32 %v6885_v30, 0.0  ;;  %v1851_v2 = vadd.f32 %v6551_v0, %v1850_v39  ;;  %v6899_v13 = vadd.f32 %v1856_v42, %v8087_v14 }
 0x2a4   :  { %v5290_v32 = vpop.f32.mrf.mxu0 }
 0x2a5   :  { %v6903_v24 = vadd.f32 %v1851_v2, %v8088_v50  ;;  %v1866_v4 = vadd.f32 %v5290_v32, %v6551_v0  ;;  %5386 = vmatprep.mubr.msk.f32.mxu1 %vm747_vm2, %v7984_v48  ;;  %v7987_v39 = vmax.f32 %v6899_v13, 0.0  ;;  %v8090_v32 = vmax.f32 %v6227_v63, 0.0 }
 0x2a6   :  { %v1860_v7 = vpop.f32.mrf.mxu0  ;;  %5387 = vmatmul.mubr.msk.f32.gmra.mxu1 %vm747_vm2, %v7985_v40  ;;  %v8091_v63 = vmax.f32 %v6238_v54, 0.0 }
 0x2a7   :  { %v7986_v10 = vmax.f32 %v6903_v24, 0.0  ;;  %v1861_v42 = vadd.f32 %v6551_v0, %v1860_v7  ;;  %v6917_v2 = vadd.f32 %v1866_v4, %v8089_v5 }
 0x2a8   :  { %v5293_v14 = vpop.f32.mrf.mxu0 }
 0x2a9   :  { %v6921_v50 = vadd.f32 %v1861_v42, %v8090_v32  ;;  %v1876_v48 = vadd.f32 %v5293_v14, %v6551_v0  ;;  %5389 = vmatprep.mubr.msk.f32.mxu1 %vm747_vm2, %v7986_v10  ;;  %v7989_v7 = vmax.f32 %v6917_v2, 0.0  ;;  %v8092_v14 = vmax.f32 %v6241_v57, 0.0 }
 0x2aa   :  { %v1870_v40 = vpop.f32.mrf.mxu0  ;;  %5390 = vmatmul.mubr.msk.f32.gmra.mxu1 %vm747_vm2, %v7987_v39  ;;  %v8093_v57 = vmax.f32 %v6252_v36, 0.0 }
 0x2ab   :  { %v7988_v60 = vmax.f32 %v6921_v50, 0.0  ;;  %v1871_v4 = vadd.f32 %v6551_v0, %v1870_v40  ;;  %v6935_v42 = vadd.f32 %v1876_v48, %v8091_v63 }
 0x2ac   :  { %v5296_v5 = vpop.f32.mrf.mxu0 }
 0x2ad   :  { %v6939_v32 = vadd.f32 %v1871_v4, %v8092_v14  ;;  %v1886_v10 = vadd.f32 %v5296_v5, %v6551_v0  ;;  %5392 = vmatprep.mubr.msk.f32.mxu1 %vm747_vm2, %v7988_v60  ;;  %v7991_v40 = vmax.f32 %v6935_v42, 0.0  ;;  %v8094_v5 = vmax.f32 %v6255_v51, 0.0 }
 0x2ae   :  { %v1880_v39 = vpop.f32.mrf.mxu0  ;;  %5393 = vmatmul.mubr.msk.f32.gmra.mxu1 %vm747_vm2, %v7989_v7  ;;  %v8095_v51 = vmax.f32 %v6266_v18, 0.0 }
 0x2af   :  { %v7990_v54 = vmax.f32 %v6939_v32, 0.0  ;;  %v1881_v48 = vadd.f32 %v6551_v0, %v1880_v39  ;;  %v6953_v4 = vadd.f32 %v1886_v10, %v8093_v57 }
 0x2b0   :  { %v5299_v63 = vpop.f32.mrf.mxu0 }
 0x2b1   :  { %v6957_v14 = vadd.f32 %v1881_v48, %v8094_v5  ;;  %v1896_v60 = vadd.f32 %v5299_v63, %v6551_v0  ;;  %5395 = vmatprep.mubr.msk.f32.mxu1 %vm747_vm2, %v7990_v54  ;;  %v7995_v39 = vmax.f32 %v6953_v4, 0.0  ;;  %v8097_v63 = vmax.f32 %v6269_v45, 0.0  ;;  %v8099_v45 = vld [vmem:[#allocation2_spill] sm:$0xff] }
 0x2b2   :  { %v1890_v7 = vpop.f32.mrf.mxu0  ;;  %5396 = vmatmul.mubr.msk.f32.gmra.mxu1 %vm747_vm2, %v7991_v40 }
 0x2b3   :  { %v7994_v36 = vmax.f32 %v6957_v14, 0.0  ;;  %v1891_v10 = vadd.f32 %v6551_v0, %v1890_v7  ;;  %v6971_v48 = vadd.f32 %v1896_v60, %v8095_v51 }
 0x2b4   :  { %v5302_v57 = vpop.f32.mrf.mxu0 }
 0x2b5   :  { %8096 = vst [vmem:[#allocation18_spill] sm:$0xff] %v6971_v48  ;;  %v6975_v5 = vadd.f32 %v1891_v10, %v8097_v63  ;;  %v1906_v54 = vadd.f32 %v5302_v57, %v6551_v0  ;;  %5398 = vmatprep.mubr.msk.f32.mxu1 %vm747_vm2, %v7994_v36  ;;  %v7999_v7 = vmax.f32 %v6971_v48, 0.0  ;;  %v8100_v10 = vmax.f32 %v8099_v45, 0.0  ;;  %v8102_v63 = vld [vmem:[#allocation3_spill] sm:$0xff] }
 0x2b6   :  { %v1900_v40 = vpop.f32.mrf.mxu0  ;;  %5399 = vmatmul.mubr.msk.f32.gmra.mxu1 %vm747_vm2, %v7995_v39  ;;  %v8103_v19 = vmax.f32 %v8102_v63, 0.0  ;;  %v8108_v63 = vld [vmem:[#allocation5_spill] sm:$0xff] }
 0x2b7   :  { %8098 = vst [vmem:[#allocation19_spill] sm:$0xff] %v6975_v5  ;;  %v7998_v18 = vmax.f32 %v6975_v5, 0.0  ;;  %v1901_v60 = vadd.f32 %v6551_v0, %v1900_v40  ;;  %v6989_v51 = vadd.f32 %v1906_v54, %v8100_v10  ;;  %v8105_v10 = vld [vmem:[#allocation4_spill] sm:$0xff]  ;;  %v8109_v11 = vmax.f32 %v8108_v63, 0.0  ;;  %v8114_v63 = vld [vmem:[#allocation7_spill] sm:$0xff] }
 0x2b8   :  { %v5305_v57 = vpop.f32.mrf.mxu0 }
 0x2b9   :  { %8101 = vst [vmem:[#allocation2_spill] sm:$0xff] %v6989_v51  ;;  %v6993_v9 = vadd.f32 %v1901_v60, %v8103_v19  ;;  %v1916_v36 = vadd.f32 %v5305_v57, %v6551_v0  ;;  %5401 = vmatprep.mubr.msk.f32.mxu1 %vm747_vm2, %v7998_v18  ;;  %v8003_v45 = vmax.f32 %v6989_v51, 0.0  ;;  %v8106_v19 = vmax.f32 %v8105_v10, 0.0 }
 0x2ba   :  { %v1910_v39 = vpop.f32.mrf.mxu0  ;;  %5402 = vmatmul.mubr.msk.f32.gmra.mxu1 %vm747_vm2, %v7999_v7 }
 0x2bb   :  { %8104 = vst [vmem:[#allocation3_spill] sm:$0xff] %v6993_v9  ;;  %v8002_v40 = vmax.f32 %v6993_v9, 0.0  ;;  %v1911_v54 = vadd.f32 %v6551_v0, %v1910_v39  ;;  %v7007_v60 = vadd.f32 %v1916_v36, %v8106_v19  ;;  %v8111_v19 = vld [vmem:[#allocation6_spill] sm:$0xff]  ;;  %v8115_v9 = vmax.f32 %v8114_v63, 0.0  ;;  %v8120_v63 = vld [vmem:[#allocation9_spill] sm:$0xff] }
 0x2bc   :  { %v5308_v57 = vpop.f32.mrf.mxu0 }
 0x2bd   :  { %8107 = vst [vmem:[#allocation4_spill] sm:$0xff] %v7007_v60  ;;  %v7011_v5 = vadd.f32 %v1911_v54, %v8109_v11  ;;  %v1926_v18 = vadd.f32 %v5308_v57, %v6551_v0  ;;  %5404 = vmatprep.mubr.msk.f32.mxu1 %vm747_vm2, %v8002_v40  ;;  %v8007_v10 = vmax.f32 %v7007_v60, 0.0  ;;  %v8112_v11 = vmax.f32 %v8111_v19, 0.0 }
 0x2be   :  { %v1920_v7 = vpop.f32.mrf.mxu0  ;;  %5405 = vmatmul.mubr.msk.f32.gmra.mxu1 %vm747_vm2, %v8003_v45 }
 0x2bf   :  { %8110 = vst [vmem:[#allocation5_spill] sm:$0xff] %v7011_v5  ;;  %v8006_v39 = vmax.f32 %v7011_v5, 0.0  ;;  %v1921_v36 = vadd.f32 %v6551_v0, %v1920_v7  ;;  %v7025_v54 = vadd.f32 %v1926_v18, %v8112_v11  ;;  %v8117_v11 = vld [vmem:[#allocation8_spill] sm:$0xff]  ;;  %v8121_v5 = vmax.f32 %v8120_v63, 0.0  ;;  %v8126_v63 = vld [vmem:[#allocation11_spill] sm:$0xff] }
 0x2c0   :  { %v5311_v57 = vpop.f32.mrf.mxu0 }
 0x2c1   :  { %8113 = vst [vmem:[#allocation6_spill] sm:$0xff] %v7025_v54  ;;  %v7029_v48 = vadd.f32 %v1921_v36, %v8115_v9  ;;  %v1936_v40 = vadd.f32 %v5311_v57, %v6551_v0  ;;  %5407 = vmatprep.mubr.msk.f32.mxu1 %vm747_vm2, %v8006_v39  ;;  %v8011_v19 = vmax.f32 %v7025_v54, 0.0  ;;  %v8118_v9 = vmax.f32 %v8117_v11, 0.0 }
 0x2c2   :  { %v1930_v45 = vpop.f32.mrf.mxu0  ;;  %5408 = vmatmul.mubr.msk.f32.gmra.mxu1 %vm747_vm2, %v8007_v10 }
 0x2c3   :  { %8116 = vst [vmem:[#allocation7_spill] sm:$0xff] %v7029_v48  ;;  %v8010_v7 = vmax.f32 %v7029_v48, 0.0  ;;  %v1931_v18 = vadd.f32 %v6551_v0, %v1930_v45  ;;  %v7043_v36 = vadd.f32 %v1936_v40, %v8118_v9  ;;  %v8123_v9 = vld [vmem:[#allocation10_spill] sm:$0xff]  ;;  %v8127_v48 = vmax.f32 %v8126_v63, 0.0  ;;  %v8132_v63 = vld [vmem:[#allocation13_spill] sm:$0xff] }
 0x2c4   :  { %v5314_v57 = vpop.f32.mrf.mxu0 }
 0x2c5   :  { %8119 = vst [vmem:[#allocation8_spill] sm:$0xff] %v7043_v36  ;;  %v7047_v51 = vadd.f32 %v1931_v18, %v8121_v5  ;;  %v1946_v39 = vadd.f32 %v5314_v57, %v6551_v0  ;;  %5410 = vmatprep.mubr.msk.f32.mxu1 %vm747_vm2, %v8010_v7  ;;  %v8015_v11 = vmax.f32 %v7043_v36, 0.0  ;;  %v8124_v5 = vmax.f32 %v8123_v9, 0.0 }
 0x2c6   :  { %v1940_v10 = vpop.f32.mrf.mxu0  ;;  %5411 = vmatmul.mubr.msk.f32.gmra.mxu1 %vm747_vm2, %v8011_v19 }
 0x2c7   :  { %8122 = vst [vmem:[#allocation9_spill] sm:$0xff] %v7047_v51  ;;  %v8014_v45 = vmax.f32 %v7047_v51, 0.0  ;;  %v1941_v40 = vadd.f32 %v6551_v0, %v1940_v10  ;;  %v7061_v18 = vadd.f32 %v1946_v39, %v8124_v5  ;;  %v8129_v5 = vld [vmem:[#allocation12_spill] sm:$0xff]  ;;  %v8133_v51 = vmax.f32 %v8132_v63, 0.0  ;;  %v8138_v63 = vld [vmem:[#allocation15_spill] sm:$0xff] }
 0x2c8   :  { %v5317_v57 = vpop.f32.mrf.mxu0 }
 0x2c9   :  { %8125 = vst [vmem:[#allocation10_spill] sm:$0xff] %v7061_v18  ;;  %v7065_v60 = vadd.f32 %v1941_v40, %v8127_v48  ;;  %v1956_v7 = vadd.f32 %v5317_v57, %v6551_v0  ;;  %5413 = vmatprep.mubr.msk.f32.mxu1 %vm747_vm2, %v8014_v45  ;;  %v8019_v9 = vmax.f32 %v7061_v18, 0.0  ;;  %v8130_v48 = vmax.f32 %v8129_v5, 0.0 }
 0x2ca   :  { %v1950_v19 = vpop.f32.mrf.mxu0  ;;  %5414 = vmatmul.mubr.msk.f32.gmra.mxu1 %vm747_vm2, %v8015_v11 }
 0x2cb   :  { %8128 = vst [vmem:[#allocation11_spill] sm:$0xff] %v7065_v60  ;;  %v8018_v10 = vmax.f32 %v7065_v60, 0.0  ;;  %v1951_v39 = vadd.f32 %v6551_v0, %v1950_v19  ;;  %v7079_v40 = vadd.f32 %v1956_v7, %v8130_v48  ;;  %v8135_v48 = vld [vmem:[#allocation14_spill] sm:$0xff]  ;;  %v8139_v60 = vmax.f32 %v8138_v63, 0.0 }
 0x2cc   :  { %v5320_v57 = vpop.f32.mrf.mxu0 }
 0x2cd   :  { %8131 = vst [vmem:[#allocation12_spill] sm:$0xff] %v7079_v40  ;;  %v7083_v54 = vadd.f32 %v1951_v39, %v8133_v51  ;;  %v1966_v45 = vadd.f32 %v5320_v57, %v6551_v0  ;;  %5416 = vmatprep.mubr.msk.f32.mxu1 %vm747_vm2, %v8018_v10  ;;  %v8026_v5 = vmax.f32 %v7079_v40, 0.0  ;;  %v8136_v51 = vmax.f32 %v8135_v48, 0.0 }
 0x2ce   :  { %v1960_v11 = vpop.f32.mrf.mxu0  ;;  %5417 = vmatmul.mubr.msk.f32.gmra.mxu1 %vm747_vm2, %v8019_v9 }
 0x2cf   :  { %8134 = vst [vmem:[#allocation13_spill] sm:$0xff] %v7083_v54  ;;  %v8025_v19 = vmax.f32 %v7083_v54, 0.0  ;;  %v1961_v7 = vadd.f32 %v6551_v0, %v1960_v11  ;;  %v7097_v39 = vadd.f32 %v1966_v45, %v8136_v51  ;;  %v8141_v51 = vld [vmem:[#allocation16_spill] sm:$0xff] }
 0x2d0   :  { %v5323_v57 = vpop.f32.mrf.mxu0 }
 0x2d1   :  { %8137 = vst [vmem:[#allocation14_spill] sm:$0xff] %v7097_v39  ;;  %v7101_v36 = vadd.f32 %v1961_v7, %v8139_v60  ;;  %v1976_v10 = vadd.f32 %v5323_v57, %v6551_v0  ;;  %5419 = vmatprep.mubr.msk.f32.mxu1 %vm747_vm2, %v8025_v19  ;;  %v8024_v48 = vmax.f32 %v7097_v39, 0.0  ;;  %v8142_v60 = vmax.f32 %v8141_v51, 0.0  ;;  %v8144_v57 = vld [vmem:[#allocation17_spill] sm:$0xff]  ;;  %v7144_v51 = vld [vmem:[%s7869_s3 + $0x3] ss:$0 sm:$0xff] }
 0x2d2   :  { %v1970_v9 = vpop.f32.mrf.mxu0  ;;  %5420 = vmatmul.mubr.msk.f32.gmra.mxu1 %vm747_vm2, %v8026_v5  ;;  %v8145_v63 = vmax.f32 %v8144_v57, 0.0 }
 0x2d3   :  { %8140 = vst [vmem:[#allocation15_spill] sm:$0xff] %v7101_v36  ;;  %v8023_v11 = vmax.f32 %v7101_v36, 0.0  ;;  %v1971_v45 = vadd.f32 %v6551_v0, %v1970_v9  ;;  %v7115_v7 = vadd.f32 %v1976_v10, %v8142_v60  ;;  %v4546_v10 = vld [vmem:[%s7868_s2 + $0x98] sm:$0xff] }
 0x2d4   :  { %5532 = vmatprep.subr.mxu1 %v4546_v10 }
 0x2d5   :  { %8143 = vst [vmem:[#allocation16_spill] sm:$0xff] %v7115_v7  ;;  %v7119_v54 = vadd.f32 %v1971_v45, %v8145_v63  ;;  %5422 = vmatprep.mubr.msk.f32.mxu1 %vm747_vm2, %v8023_v11  ;;  %v8022_v9 = vmax.f32 %v7115_v7, 0.0  ;;  %5533 = vmatpush3.msra.mxu1 %v4546_v10  ;;  %v4545_v45 = vld [vmem:[%s7868_s2 + $0x90] sm:$0xff]  ;;  %v4544_v10 = vld [vmem:[%s7868_s2 + $0x88] sm:$0xff] }
 0x2d6   :  { %5423 = vmatmul.mubr.msk.f32.gmra.mxu1 %vm747_vm2, %v8024_v48  ;;  %5534 = vmatprep.subr.mxu1 %v4545_v45 }
 0x2d7   :  { %8146 = vst [vmem:[#allocation17_spill] sm:$0xff] %v7119_v54  ;;  %v8021_v0 = vmax.f32 %v7119_v54, 0.0  ;;  %5535 = vmatpush3.msra.mxu1 %v4545_v45  ;;  %v4543_v45 = vld [vmem:[%s7868_s2 + $0x80] sm:$0xff] }
 0x2d8   :  { %5536 = vmatprep.subr.mxu1 %v4544_v10 }
 0x2d9   :  { %5425 = vmatprep.mubr.msk.f32.mxu1 %vm747_vm2, %v8021_v0  ;;  %5537 = vmatpush3.msra.mxu1 %v4544_v10 }
 0x2da   :  { %5426 = vmatmul.mubr.msk.f32.gmra.mxu1 %vm747_vm2, %v8022_v9  ;;  %5538 = vmatprep.subr.mxu1 %v4543_v45 }
 0x2db   :  { %5539 = vmatpush3.msra.mxu1 %v4543_v45 }
 0x31e   :  { %v5334_v60 = vpop.f32.mrf.mxu1 }
 0x31f   :  { %v2384_v57 = vadd.f32 %v5334_v60, %v7144_v51 }
 0x320   :  { %v2378_v63 = vpop.f32.mrf.mxu1 }
 0x321   :  { %v2379_v0 = vadd.f32 %v7144_v51, %v2378_v63  ;;  %v2698_v48 = vmax.f32 %v2384_v57, 0.0 }
 0x322   :  { %v5337_v9 = vpop.f32.mrf.mxu1 }
 0x323   :  { %v2697_v11 = vmax.f32 %v2379_v0, 0.0  ;;  %v2394_v19 = vadd.f32 %v5337_v9, %v7144_v51 }
 0x324   :  { %v2388_v5 = vpop.f32.mrf.mxu1 }
 0x325   :  { %v2389_v60 = vadd.f32 %v7144_v51, %v2388_v5  ;;  %5436 = vmatprep.mubr.msk.f32.mxu0 %vm747_vm2, %v2697_v11  ;;  %v2700_v7 = vmax.f32 %v2394_v19, 0.0 }
 0x326   :  { %v5340_v63 = vpop.f32.mrf.mxu1  ;;  %5437 = vmatmul.mubr.msk.f32.vlgmr.msra.gmra.mxu0 %vm747_vm2, %v2698_v48 }
 0x327   :  { %v2699_v54 = vmax.f32 %v2389_v60, 0.0  ;;  %v2404_v36 = vadd.f32 %v5340_v63, %v7144_v51 }
 0x328   :  { %v2398_v0 = vpop.f32.mrf.mxu1 }
 0x329   :  { %v2399_v57 = vadd.f32 %v7144_v51, %v2398_v0  ;;  %5439 = vmatprep.mubr.msk.f32.mxu0 %vm747_vm2, %v2699_v54  ;;  %v2702_v10 = vmax.f32 %v2404_v36, 0.0 }
 0x32a   :  { %v5343_v9 = vpop.f32.mrf.mxu1  ;;  %5440 = vmatmul.mubr.msk.f32.gmra.mxu0 %vm747_vm2, %v2700_v7 }
 0x32b   :  { %v2701_v5 = vmax.f32 %v2399_v57, 0.0  ;;  %v2414_v11 = vadd.f32 %v5343_v9, %v7144_v51 }
 0x32c   :  { %v2408_v39 = vpop.f32.mrf.mxu1 }
 0x32d   :  { %v2409_v48 = vadd.f32 %v7144_v51, %v2408_v39  ;;  %5442 = vmatprep.mubr.msk.f32.mxu0 %vm747_vm2, %v2701_v5  ;;  %v2704_v60 = vmax.f32 %v2414_v11, 0.0 }
 0x32e   :  { %v5346_v19 = vpop.f32.mrf.mxu1  ;;  %5443 = vmatmul.mubr.msk.f32.gmra.mxu0 %vm747_vm2, %v2702_v10 }
 0x32f   :  { %v2703_v45 = vmax.f32 %v2409_v48, 0.0  ;;  %v2424_v63 = vadd.f32 %v5346_v19, %v7144_v51 }
 0x330   :  { %v2418_v54 = vpop.f32.mrf.mxu1 }
 0x331   :  { %v2419_v0 = vadd.f32 %v7144_v51, %v2418_v54  ;;  %5445 = vmatprep.mubr.msk.f32.mxu0 %vm747_vm2, %v2703_v45  ;;  %v2706_v57 = vmax.f32 %v2424_v63, 0.0 }
 0x332   :  { %v5349_v36 = vpop.f32.mrf.mxu1  ;;  %5446 = vmatmul.mubr.msk.f32.gmra.mxu0 %vm747_vm2, %v2704_v60 }
 0x333   :  { %v2705_v7 = vmax.f32 %v2419_v0, 0.0  ;;  %v2434_v39 = vadd.f32 %v5349_v36, %v7144_v51 }
 0x334   :  { %v2428_v9 = vpop.f32.mrf.mxu1 }
 0x335   :  { %v2429_v5 = vadd.f32 %v7144_v51, %v2428_v9  ;;  %5448 = vmatprep.mubr.msk.f32.mxu0 %vm747_vm2, %v2705_v7  ;;  %v2708_v48 = vmax.f32 %v2434_v39, 0.0 }
 0x336   :  { %v5352_v10 = vpop.f32.mrf.mxu1  ;;  %5449 = vmatmul.mubr.msk.f32.gmra.mxu0 %vm747_vm2, %v2706_v57 }
 0x337   :  { %v2707_v11 = vmax.f32 %v2429_v5, 0.0  ;;  %v2444_v19 = vadd.f32 %v5352_v10, %v7144_v51 }
 0x338   :  { %v2438_v45 = vpop.f32.mrf.mxu1 }
 0x339   :  { %v2439_v54 = vadd.f32 %v7144_v51, %v2438_v45  ;;  %5451 = vmatprep.mubr.msk.f32.mxu0 %vm747_vm2, %v2707_v11  ;;  %v2710_v0 = vmax.f32 %v2444_v19, 0.0 }
 0x33a   :  { %v5355_v60 = vpop.f32.mrf.mxu1  ;;  %5452 = vmatmul.mubr.msk.f32.gmra.mxu0 %vm747_vm2, %v2708_v48 }
 0x33b   :  { %v2709_v63 = vmax.f32 %v2439_v54, 0.0  ;;  %v2454_v36 = vadd.f32 %v5355_v60, %v7144_v51 }
 0x33c   :  { %v2448_v7 = vpop.f32.mrf.mxu1 }
 0x33d   :  { %v2449_v9 = vadd.f32 %v7144_v51, %v2448_v7  ;;  %5454 = vmatprep.mubr.msk.f32.mxu0 %vm747_vm2, %v2709_v63  ;;  %v2712_v5 = vmax.f32 %v2454_v36, 0.0 }
 0x33e   :  { %v5358_v57 = vpop.f32.mrf.mxu1  ;;  %5455 = vmatmul.mubr.msk.f32.gmra.mxu0 %vm747_vm2, %v2710_v0 }
 0x33f   :  { %v2711_v39 = vmax.f32 %v2449_v9, 0.0  ;;  %v2464_v10 = vadd.f32 %v5358_v57, %v7144_v51 }
 0x340   :  { %v2458_v11 = vpop.f32.mrf.mxu1 }
 0x341   :  { %v2459_v45 = vadd.f32 %v7144_v51, %v2458_v11  ;;  %5457 = vmatprep.mubr.msk.f32.mxu0 %vm747_vm2, %v2711_v39  ;;  %v2714_v54 = vmax.f32 %v2464_v10, 0.0 }
 0x342   :  { %v5361_v48 = vpop.f32.mrf.mxu1  ;;  %5458 = vmatmul.mubr.msk.f32.gmra.mxu0 %vm747_vm2, %v2712_v5 }
 0x343   :  { %v2713_v19 = vmax.f32 %v2459_v45, 0.0  ;;  %v2474_v60 = vadd.f32 %v5361_v48, %v7144_v51 }
 0x344   :  { %v2468_v63 = vpop.f32.mrf.mxu1 }
 0x345   :  { %v2469_v7 = vadd.f32 %v7144_v51, %v2468_v63  ;;  %5460 = vmatprep.mubr.msk.f32.mxu0 %vm747_vm2, %v2713_v19  ;;  %v2716_v9 = vmax.f32 %v2474_v60, 0.0 }
 0x346   :  { %v5364_v0 = vpop.f32.mrf.mxu1  ;;  %5461 = vmatmul.mubr.msk.f32.gmra.mxu0 %vm747_vm2, %v2714_v54 }
 0x347   :  { %v2715_v36 = vmax.f32 %v2469_v7, 0.0  ;;  %v2484_v57 = vadd.f32 %v5364_v0, %v7144_v51 }
 0x348   :  { %v2478_v39 = vpop.f32.mrf.mxu1 }
 0x349   :  { %v2479_v11 = vadd.f32 %v7144_v51, %v2478_v39  ;;  %5463 = vmatprep.mubr.msk.f32.mxu0 %vm747_vm2, %v2715_v36  ;;  %v2718_v45 = vmax.f32 %v2484_v57, 0.0 }
 0x34a   :  { %v5367_v5 = vpop.f32.mrf.mxu1  ;;  %5464 = vmatmul.mubr.msk.f32.gmra.mxu0 %vm747_vm2, %v2716_v9 }
 0x34b   :  { %v2717_v10 = vmax.f32 %v2479_v11, 0.0  ;;  %v2494_v48 = vadd.f32 %v5367_v5, %v7144_v51 }
 0x34c   :  { %v2488_v19 = vpop.f32.mrf.mxu1 }
 0x34d   :  { %v2489_v63 = vadd.f32 %v7144_v51, %v2488_v19  ;;  %5466 = vmatprep.mubr.msk.f32.mxu0 %vm747_vm2, %v2717_v10  ;;  %v2720_v7 = vmax.f32 %v2494_v48, 0.0 }
 0x34e   :  { %v5370_v54 = vpop.f32.mrf.mxu1  ;;  %5467 = vmatmul.mubr.msk.f32.gmra.mxu0 %vm747_vm2, %v2718_v45 }
 0x34f   :  { %v2719_v60 = vmax.f32 %v2489_v63, 0.0  ;;  %v2504_v0 = vadd.f32 %v5370_v54, %v7144_v51 }
 0x350   :  { %v2498_v36 = vpop.f32.mrf.mxu1 }
 0x351   :  { %v2499_v39 = vadd.f32 %v7144_v51, %v2498_v36  ;;  %5469 = vmatprep.mubr.msk.f32.mxu0 %vm747_vm2, %v2719_v60  ;;  %v2722_v11 = vmax.f32 %v2504_v0, 0.0 }
 0x352   :  { %v5373_v9 = vpop.f32.mrf.mxu1  ;;  %5470 = vmatmul.mubr.msk.f32.gmra.mxu0 %vm747_vm2, %v2720_v7 }
 0x353   :  { %v2721_v57 = vmax.f32 %v2499_v39, 0.0  ;;  %v2514_v5 = vadd.f32 %v5373_v9, %v7144_v51 }
 0x354   :  { %v2508_v10 = vpop.f32.mrf.mxu1 }
 0x355   :  { %v2509_v19 = vadd.f32 %v7144_v51, %v2508_v10  ;;  %5472 = vmatprep.mubr.msk.f32.mxu0 %vm747_vm2, %v2721_v57  ;;  %v2724_v63 = vmax.f32 %v2514_v5, 0.0 }
 0x356   :  { %v5376_v45 = vpop.f32.mrf.mxu1  ;;  %5473 = vmatmul.mubr.msk.f32.gmra.mxu0 %vm747_vm2, %v2722_v11 }
 0x357   :  { %v2723_v48 = vmax.f32 %v2509_v19, 0.0  ;;  %v2524_v54 = vadd.f32 %v5376_v45, %v7144_v51 }
 0x358   :  { %v2518_v60 = vpop.f32.mrf.mxu1 }
 0x359   :  { %v2519_v36 = vadd.f32 %v7144_v51, %v2518_v60  ;;  %5475 = vmatprep.mubr.msk.f32.mxu0 %vm747_vm2, %v2723_v48  ;;  %v2726_v39 = vmax.f32 %v2524_v54, 0.0 }
 0x35a   :  { %v5379_v7 = vpop.f32.mrf.mxu1  ;;  %5476 = vmatmul.mubr.msk.f32.gmra.mxu0 %vm747_vm2, %v2724_v63 }
 0x35b   :  { %v2725_v0 = vmax.f32 %v2519_v36, 0.0  ;;  %v2534_v9 = vadd.f32 %v5379_v7, %v7144_v51 }
 0x35c   :  { %v2528_v57 = vpop.f32.mrf.mxu1 }
 0x35d   :  { %v2529_v10 = vadd.f32 %v7144_v51, %v2528_v57  ;;  %5478 = vmatprep.mubr.msk.f32.mxu0 %vm747_vm2, %v2725_v0  ;;  %v2728_v19 = vmax.f32 %v2534_v9, 0.0 }
 0x35e   :  { %v5382_v11 = vpop.f32.mrf.mxu1  ;;  %5479 = vmatmul.mubr.msk.f32.gmra.mxu0 %vm747_vm2, %v2726_v39 }
 0x35f   :  { %v2727_v5 = vmax.f32 %v2529_v10, 0.0  ;;  %v2544_v45 = vadd.f32 %v5382_v11, %v7144_v51 }
 0x360   :  { %v2538_v48 = vpop.f32.mrf.mxu1 }
 0x361   :  { %v2539_v60 = vadd.f32 %v7144_v51, %v2538_v48  ;;  %5481 = vmatprep.mubr.msk.f32.mxu0 %vm747_vm2, %v2727_v5  ;;  %v2730_v36 = vmax.f32 %v2544_v45, 0.0 }
 0x362   :  { %v5385_v63 = vpop.f32.mrf.mxu1  ;;  %5482 = vmatmul.mubr.msk.f32.gmra.mxu0 %vm747_vm2, %v2728_v19 }
 0x363   :  { %v2729_v54 = vmax.f32 %v2539_v60, 0.0  ;;  %v2554_v7 = vadd.f32 %v5385_v63, %v7144_v51 }
 0x364   :  { %v2548_v0 = vpop.f32.mrf.mxu1 }
 0x365   :  { %v2549_v57 = vadd.f32 %v7144_v51, %v2548_v0  ;;  %5484 = vmatprep.mubr.msk.f32.mxu0 %vm747_vm2, %v2729_v54  ;;  %v2732_v10 = vmax.f32 %v2554_v7, 0.0 }
 0x366   :  { %v5388_v39 = vpop.f32.mrf.mxu1  ;;  %5485 = vmatmul.mubr.msk.f32.gmra.mxu0 %vm747_vm2, %v2730_v36 }
 0x367   :  { %v2731_v9 = vmax.f32 %v2549_v57, 0.0  ;;  %v2564_v11 = vadd.f32 %v5388_v39, %v7144_v51 }
 0x368   :  { %v2558_v5 = vpop.f32.mrf.mxu1 }
 0x369   :  { %v2559_v48 = vadd.f32 %v7144_v51, %v2558_v5  ;;  %5487 = vmatprep.mubr.msk.f32.mxu0 %vm747_vm2, %v2731_v9  ;;  %v2734_v60 = vmax.f32 %v2564_v11, 0.0 }
 0x36a   :  { %v5391_v19 = vpop.f32.mrf.mxu1  ;;  %5488 = vmatmul.mubr.msk.f32.gmra.mxu0 %vm747_vm2, %v2732_v10 }
 0x36b   :  { %v2733_v45 = vmax.f32 %v2559_v48, 0.0  ;;  %v2574_v63 = vadd.f32 %v5391_v19, %v7144_v51 }
 0x36c   :  { %v2568_v54 = vpop.f32.mrf.mxu1 }
 0x36d   :  { %v2569_v0 = vadd.f32 %v7144_v51, %v2568_v54  ;;  %5490 = vmatprep.mubr.msk.f32.mxu0 %vm747_vm2, %v2733_v45  ;;  %v2736_v57 = vmax.f32 %v2574_v63, 0.0 }
 0x36e   :  { %v5394_v36 = vpop.f32.mrf.mxu1  ;;  %5491 = vmatmul.mubr.msk.f32.gmra.mxu0 %vm747_vm2, %v2734_v60 }
 0x36f   :  { %v2735_v7 = vmax.f32 %v2569_v0, 0.0  ;;  %v2584_v39 = vadd.f32 %v5394_v36, %v7144_v51 }
 0x370   :  { %v2578_v9 = vpop.f32.mrf.mxu1 }
 0x371   :  { %v2579_v5 = vadd.f32 %v7144_v51, %v2578_v9  ;;  %5493 = vmatprep.mubr.msk.f32.mxu0 %vm747_vm2, %v2735_v7  ;;  %v2738_v48 = vmax.f32 %v2584_v39, 0.0 }
 0x372   :  { %v5397_v10 = vpop.f32.mrf.mxu1  ;;  %5494 = vmatmul.mubr.msk.f32.gmra.mxu0 %vm747_vm2, %v2736_v57 }
 0x373   :  { %v2737_v11 = vmax.f32 %v2579_v5, 0.0  ;;  %v2594_v19 = vadd.f32 %v5397_v10, %v7144_v51 }
 0x374   :  { %v2588_v45 = vpop.f32.mrf.mxu1 }
 0x375   :  { %v2589_v54 = vadd.f32 %v7144_v51, %v2588_v45  ;;  %5496 = vmatprep.mubr.msk.f32.mxu0 %vm747_vm2, %v2737_v11  ;;  %v2740_v0 = vmax.f32 %v2594_v19, 0.0 }
 0x376   :  { %v5400_v60 = vpop.f32.mrf.mxu1  ;;  %5497 = vmatmul.mubr.msk.f32.gmra.mxu0 %vm747_vm2, %v2738_v48 }
 0x377   :  { %v2739_v63 = vmax.f32 %v2589_v54, 0.0  ;;  %v2604_v36 = vadd.f32 %v5400_v60, %v7144_v51 }
 0x378   :  { %v2598_v7 = vpop.f32.mrf.mxu1 }
 0x379   :  { %v2599_v9 = vadd.f32 %v7144_v51, %v2598_v7  ;;  %5499 = vmatprep.mubr.msk.f32.mxu0 %vm747_vm2, %v2739_v63  ;;  %v2742_v5 = vmax.f32 %v2604_v36, 0.0 }
 0x37a   :  { %v5403_v57 = vpop.f32.mrf.mxu1  ;;  %5500 = vmatmul.mubr.msk.f32.gmra.mxu0 %vm747_vm2, %v2740_v0 }
 0x37b   :  { %v2741_v39 = vmax.f32 %v2599_v9, 0.0  ;;  %v2614_v10 = vadd.f32 %v5403_v57, %v7144_v51 }
 0x37c   :  { %v2608_v11 = vpop.f32.mrf.mxu1 }
 0x37d   :  { %v2609_v45 = vadd.f32 %v7144_v51, %v2608_v11  ;;  %5502 = vmatprep.mubr.msk.f32.mxu0 %vm747_vm2, %v2741_v39  ;;  %v2744_v54 = vmax.f32 %v2614_v10, 0.0 }
 0x37e   :  { %v5406_v48 = vpop.f32.mrf.mxu1  ;;  %5503 = vmatmul.mubr.msk.f32.gmra.mxu0 %vm747_vm2, %v2742_v5 }
 0x37f   :  { %v2743_v19 = vmax.f32 %v2609_v45, 0.0  ;;  %v2624_v60 = vadd.f32 %v5406_v48, %v7144_v51 }
 0x380   :  { %v2618_v63 = vpop.f32.mrf.mxu1 }
 0x381   :  { %v2619_v7 = vadd.f32 %v7144_v51, %v2618_v63  ;;  %5505 = vmatprep.mubr.msk.f32.mxu0 %vm747_vm2, %v2743_v19  ;;  %v2746_v9 = vmax.f32 %v2624_v60, 0.0 }
 0x382   :  { %v5409_v0 = vpop.f32.mrf.mxu1  ;;  %5506 = vmatmul.mubr.msk.f32.gmra.mxu0 %vm747_vm2, %v2744_v54 }
 0x383   :  { %v2745_v36 = vmax.f32 %v2619_v7, 0.0  ;;  %v2634_v57 = vadd.f32 %v5409_v0, %v7144_v51 }
 0x384   :  { %v2628_v39 = vpop.f32.mrf.mxu1 }
 0x385   :  { %v2629_v11 = vadd.f32 %v7144_v51, %v2628_v39  ;;  %5508 = vmatprep.mubr.msk.f32.mxu0 %vm747_vm2, %v2745_v36  ;;  %v2748_v45 = vmax.f32 %v2634_v57, 0.0 }
 0x386   :  { %v5412_v5 = vpop.f32.mrf.mxu1  ;;  %5509 = vmatmul.mubr.msk.f32.gmra.mxu0 %vm747_vm2, %v2746_v9 }
 0x387   :  { %v2747_v10 = vmax.f32 %v2629_v11, 0.0  ;;  %v2644_v48 = vadd.f32 %v5412_v5, %v7144_v51 }
 0x388   :  { %v2638_v19 = vpop.f32.mrf.mxu1 }
 0x389   :  { %v2639_v63 = vadd.f32 %v7144_v51, %v2638_v19  ;;  %5511 = vmatprep.mubr.msk.f32.mxu0 %vm747_vm2, %v2747_v10  ;;  %v2750_v7 = vmax.f32 %v2644_v48, 0.0 }
 0x38a   :  { %v5415_v54 = vpop.f32.mrf.mxu1  ;;  %5512 = vmatmul.mubr.msk.f32.gmra.mxu0 %vm747_vm2, %v2748_v45 }
 0x38b   :  { %v2749_v60 = vmax.f32 %v2639_v63, 0.0  ;;  %v2654_v0 = vadd.f32 %v5415_v54, %v7144_v51 }
 0x38c   :  { %v2648_v36 = vpop.f32.mrf.mxu1 }
 0x38d   :  { %v2649_v39 = vadd.f32 %v7144_v51, %v2648_v36  ;;  %5514 = vmatprep.mubr.msk.f32.mxu0 %vm747_vm2, %v2749_v60  ;;  %v2752_v11 = vmax.f32 %v2654_v0, 0.0 }
 0x38e   :  { %v5418_v9 = vpop.f32.mrf.mxu1  ;;  %5515 = vmatmul.mubr.msk.f32.gmra.mxu0 %vm747_vm2, %v2750_v7 }
 0x38f   :  { %v2751_v57 = vmax.f32 %v2649_v39, 0.0  ;;  %v2664_v5 = vadd.f32 %v5418_v9, %v7144_v51 }
 0x390   :  { %v2658_v10 = vpop.f32.mrf.mxu1 }
 0x391   :  { %v2659_v19 = vadd.f32 %v7144_v51, %v2658_v10  ;;  %5517 = vmatprep.mubr.msk.f32.mxu0 %vm747_vm2, %v2751_v57  ;;  %v2754_v63 = vmax.f32 %v2664_v5, 0.0 }
 0x392   :  { %v5421_v45 = vpop.f32.mrf.mxu1  ;;  %5518 = vmatmul.mubr.msk.f32.gmra.mxu0 %vm747_vm2, %v2752_v11 }
 0x393   :  { %v2753_v48 = vmax.f32 %v2659_v19, 0.0  ;;  %v2674_v54 = vadd.f32 %v5421_v45, %v7144_v51 }
 0x394   :  { %v2668_v60 = vpop.f32.mrf.mxu1 }
 0x395   :  { %v2669_v36 = vadd.f32 %v7144_v51, %v2668_v60  ;;  %5520 = vmatprep.mubr.msk.f32.mxu0 %vm747_vm2, %v2753_v48  ;;  %v2756_v39 = vmax.f32 %v2674_v54, 0.0 }
 0x396   :  { %v5424_v7 = vpop.f32.mrf.mxu1  ;;  %5521 = vmatmul.mubr.msk.f32.gmra.mxu0 %vm747_vm2, %v2754_v63 }
 0x397   :  { %v2755_v0 = vmax.f32 %v2669_v36, 0.0  ;;  %v2684_v9 = vadd.f32 %v5424_v7, %v7144_v51  ;;  %v7283_v36 = vld [vmem:[%s7869_s3 + $0x4] ss:$0 sm:$0xff] }
 0x398   :  { %v2678_v57 = vpop.f32.mrf.mxu1 }
 0x399   :  { %v2679_v10 = vadd.f32 %v7144_v51, %v2678_v57  ;;  %5523 = vmatprep.mubr.msk.f32.mxu0 %vm747_vm2, %v2755_v0  ;;  %v2758_v19 = vmax.f32 %v2684_v9, 0.0  ;;  %v8147_v9 = vmax.f32 %v6557_v28, 0.0 }
 0x39a   :  { %v5427_v11 = vpop.f32.mrf.mxu1  ;;  %5524 = vmatmul.mubr.msk.f32.gmra.mxu0 %vm747_vm2, %v2756_v39 }
 0x39b   :  { %v2757_v5 = vmax.f32 %v2679_v10, 0.0  ;;  %v2694_v45 = vadd.f32 %v5427_v11, %v7144_v51  ;;  %v8148_v11 = vmax.f32 %v6561_v22, 0.0 }
 0x39c   :  { %v2688_v48 = vpop.f32.mrf.mxu1 }
 0x39d   :  { %v2689_v60 = vadd.f32 %v7144_v51, %v2688_v48  ;;  %5526 = vmatprep.mubr.msk.f32.mxu0 %vm747_vm2, %v2757_v5  ;;  %v2760_v54 = vmax.f32 %v2694_v45, 0.0 }
 0x39e   :  { %5527 = vmatmul.mubr.msk.f32.gmra.mxu0 %vm747_vm2, %v2758_v19 }
 0x39f   :  { %v2759_v63 = vmax.f32 %v2689_v60, 0.0 }
 0x3a1   :  { %5529 = vmatprep.mubr.msk.f32.mxu0 %vm747_vm2, %v2759_v63 }
 0x3a2   :  { %5530 = vmatmul.mubr.msk.f32.gmra.mxu0 %vm747_vm2, %v2760_v54  ;;  %v8149_v54 = vmax.f32 %v6575_v15, 0.0 }
 0x3e6   :  { %v5438_v7 = vpop.f32.mrf.mxu0 }
 0x3e7   :  { %v3038_v0 = vadd.f32 %v5438_v7, %v7283_v36 }
 0x3e8   :  { %v3032_v39 = vpop.f32.mrf.mxu0 }
 0x3e9   :  { %v3033_v51 = vadd.f32 %v7283_v36, %v3032_v39  ;;  %v3352_v57 = vadd.f32 %v3038_v0, %v8147_v9  ;;  %v8150_v39 = vmax.f32 %v6579_v21, 0.0 }
 0x3ea   :  { %v5441_v10 = vpop.f32.mrf.mxu0 }
 0x3eb   :  { %v3351_v5 = vadd.f32 %v3033_v51, %v8148_v11  ;;  %v3048_v19 = vadd.f32 %v5441_v10, %v7283_v36  ;;  %v3416_v63 = vmax.f32 %v3352_v57, 0.0  ;;  %v8151_v57 = vmax.f32 %v6593_v16, 0.0 }
 0x3ec   :  { %v3042_v45 = vpop.f32.mrf.mxu0  ;;  %v8152_v11 = vmax.f32 %v6597_v46, 0.0 }
 0x3ed   :  { %v3415_v48 = vmax.f32 %v3351_v5, 0.0  ;;  %v3043_v60 = vadd.f32 %v7283_v36, %v3042_v45  ;;  %v3354_v7 = vadd.f32 %v3048_v19, %v8149_v54 }
 0x3ee   :  { %v5444_v40 = vpop.f32.mrf.mxu0 }
 0x3ef   :  { %v3353_v18 = vadd.f32 %v3043_v60, %v8150_v39  ;;  %v3058_v28 = vadd.f32 %v5444_v40, %v7283_v36  ;;  %5540 = vmatprep.mubr.msk.f32.mxu1 %vm747_vm2, %v3415_v48  ;;  %v3418_v9 = vmax.f32 %v3354_v7, 0.0  ;;  %v8153_v48 = vmax.f32 %v6611_v33, 0.0 }
 0x3f0   :  { %v3052_v22 = vpop.f32.mrf.mxu0  ;;  %5541 = vmatmul.mubr.msk.f32.vlgmr.msra.gmra.mxu1 %vm747_vm2, %v3416_v63  ;;  %v8154_v63 = vmax.f32 %v6615_v27, 0.0 }
 0x3f1   :  { %v3417_v0 = vmax.f32 %v3353_v18, 0.0  ;;  %v3053_v51 = vadd.f32 %v7283_v36, %v3052_v22  ;;  %v3356_v10 = vadd.f32 %v3058_v28, %v8151_v57 }
 0x3f2   :  { %v5447_v15 = vpop.f32.mrf.mxu0 }
 0x3f3   :  { %v3355_v5 = vadd.f32 %v3053_v51, %v8152_v11  ;;  %v3068_v21 = vadd.f32 %v5447_v15, %v7283_v36  ;;  %5543 = vmatprep.mubr.msk.f32.mxu1 %vm747_vm2, %v3417_v0  ;;  %v3420_v45 = vmax.f32 %v3356_v10, 0.0  ;;  %v8155_v0 = vmax.f32 %v6629_v52, 0.0 }
 0x3f4   :  { %v3062_v40 = vpop.f32.mrf.mxu0  ;;  %5544 = vmatmul.mubr.msk.f32.gmra.mxu1 %vm747_vm2, %v3418_v9  ;;  %v8156_v9 = vmax.f32 %v6633_v58, 0.0 }
 0x3f5   :  { %v3419_v19 = vmax.f32 %v3355_v5, 0.0  ;;  %v3063_v18 = vadd.f32 %v7283_v36, %v3062_v40  ;;  %v3358_v60 = vadd.f32 %v3068_v21, %v8153_v48  ;;  %v8157_v21 = vmax.f32 %v6647_v6, 0.0 }
 0x3f6   :  { %v5450_v16 = vpop.f32.mrf.mxu0 }
 0x3f7   :  { %v3357_v54 = vadd.f32 %v3063_v18, %v8154_v63  ;;  %v3078_v46 = vadd.f32 %v5450_v16, %v7283_v36  ;;  %5546 = vmatprep.mubr.msk.f32.mxu1 %vm747_vm2, %v3419_v19  ;;  %v3422_v22 = vmax.f32 %v3358_v60, 0.0  ;;  %v8158_v19 = vmax.f32 %v6651_v34, 0.0 }
 0x3f8   :  { %v3072_v7 = vpop.f32.mrf.mxu0  ;;  %5547 = vmatmul.mubr.msk.f32.gmra.mxu1 %vm747_vm2, %v3420_v45  ;;  %v8159_v63 = vmax.f32 %v6665_v17, 0.0 }
 0x3f9   :  { %v3421_v39 = vmax.f32 %v3357_v54, 0.0  ;;  %v3073_v28 = vadd.f32 %v7283_v36, %v3072_v7  ;;  %v3360_v51 = vadd.f32 %v3078_v46, %v8155_v0  ;;  %v8160_v46 = vmax.f32 %v6669_v25, 0.0 }
 0x3fa   :  { %v5453_v33 = vpop.f32.mrf.mxu0 }
 0x3fb   :  { %v3359_v57 = vadd.f32 %v3073_v28, %v8156_v9  ;;  %v3088_v27 = vadd.f32 %v5453_v33, %v7283_v36  ;;  %5549 = vmatprep.mubr.msk.f32.mxu1 %vm747_vm2, %v3421_v39  ;;  %v3424_v5 = vmax.f32 %v3360_v51, 0.0  ;;  %v8161_v51 = vmax.f32 %v6683_v23, 0.0 }
 0x3fc   :  { %v3082_v10 = vpop.f32.mrf.mxu0  ;;  %5550 = vmatmul.mubr.msk.f32.gmra.mxu1 %vm747_vm2, %v3422_v22  ;;  %v8162_v9 = vmax.f32 %v6687_v31, 0.0 }
 0x3fd   :  { %v3423_v15 = vmax.f32 %v3359_v57, 0.0  ;;  %v3083_v11 = vadd.f32 %v7283_v36, %v3082_v10  ;;  %v3362_v40 = vadd.f32 %v3088_v27, %v8157_v21 }
 0x3fe   :  { %v5456_v52 = vpop.f32.mrf.mxu0 }
 0x3ff   :  { %v3361_v18 = vadd.f32 %v3083_v11, %v8158_v19  ;;  %v3098_v58 = vadd.f32 %v5456_v52, %v7283_v36  ;;  %5552 = vmatprep.mubr.msk.f32.mxu1 %vm747_vm2, %v3423_v15  ;;  %v3426_v16 = vmax.f32 %v3362_v40, 0.0  ;;  %v8164_v40 = vmax.f32 %v6705_v37, 0.0 }
 0x400   :  { %v3092_v45 = vpop.f32.mrf.mxu0  ;;  %5553 = vmatmul.mubr.msk.f32.gmra.mxu1 %vm747_vm2, %v3424_v5  ;;  %v8163_v5 = vmax.f32 %v6701_v29, 0.0 }
 0x401   :  { %v3425_v48 = vmax.f32 %v3361_v18, 0.0  ;;  %v3093_v60 = vadd.f32 %v7283_v36, %v3092_v45  ;;  %v3364_v54 = vadd.f32 %v3098_v58, %v8159_v63 }
 0x402   :  { %v5459_v6 = vpop.f32.mrf.mxu0 }
 0x403   :  { %v3363_v7 = vadd.f32 %v3093_v60, %v8160_v46  ;;  %v3108_v34 = vadd.f32 %v5459_v6, %v7283_v36  ;;  %5555 = vmatprep.mubr.msk.f32.mxu1 %vm747_vm2, %v3425_v48  ;;  %v3428_v0 = vmax.f32 %v3364_v54, 0.0  ;;  %v8165_v48 = vmax.f32 %v6719_v35, 0.0 }
 0x404   :  { %v3102_v39 = vpop.f32.mrf.mxu0  ;;  %5556 = vmatmul.mubr.msk.f32.gmra.mxu1 %vm747_vm2, %v3426_v16  ;;  %v8166_v16 = vmax.f32 %v6723_v43, 0.0 }
 0x405   :  { %v3427_v28 = vmax.f32 %v3363_v7, 0.0  ;;  %v3103_v22 = vadd.f32 %v7283_v36, %v3102_v39  ;;  %v3366_v33 = vadd.f32 %v3108_v34, %v8161_v51  ;;  %v8167_v34 = vmax.f32 %v6737_v41, 0.0 }
 0x406   :  { %v5462_v17 = vpop.f32.mrf.mxu0 }
 0x407   :  { %v3365_v57 = vadd.f32 %v3103_v22, %v8162_v9  ;;  %v3118_v25 = vadd.f32 %v5462_v17, %v7283_v36  ;;  %5558 = vmatprep.mubr.msk.f32.mxu1 %vm747_vm2, %v3427_v28  ;;  %v3430_v11 = vmax.f32 %v3366_v33, 0.0  ;;  %v8168_v28 = vmax.f32 %v6741_v49, 0.0 }
 0x408   :  { %v3112_v27 = vpop.f32.mrf.mxu0  ;;  %5559 = vmatmul.mubr.msk.f32.gmra.mxu1 %vm747_vm2, %v3428_v0  ;;  %v8169_v9 = vmax.f32 %v6755_v47, 0.0 }
 0x409   :  { %v3429_v10 = vmax.f32 %v3365_v57, 0.0  ;;  %v3113_v15 = vadd.f32 %v7283_v36, %v3112_v27  ;;  %v3368_v21 = vadd.f32 %v3118_v25, %v8163_v5  ;;  %v8170_v25 = vmax.f32 %v6759_v55, 0.0 }
 0x40a   :  { %v5465_v23 = vpop.f32.mrf.mxu0 }
 0x40b   :  { %v3367_v52 = vadd.f32 %v3113_v15, %v8164_v40  ;;  %v3128_v31 = vadd.f32 %v5465_v23, %v7283_v36  ;;  %5561 = vmatprep.mubr.msk.f32.mxu1 %vm747_vm2, %v3429_v10  ;;  %v3432_v45 = vmax.f32 %v3368_v21, 0.0  ;;  %v8171_v21 = vmax.f32 %v6773_v53, 0.0 }
 0x40c   :  { %v3122_v19 = vpop.f32.mrf.mxu0  ;;  %5562 = vmatmul.mubr.msk.f32.gmra.mxu1 %vm747_vm2, %v3430_v11  ;;  %v8172_v40 = vmax.f32 %v6777_v61, 0.0 }
 0x40d   :  { %v3431_v18 = vmax.f32 %v3367_v52, 0.0  ;;  %v3123_v58 = vadd.f32 %v7283_v36, %v3122_v19  ;;  %v3370_v60 = vadd.f32 %v3128_v31, %v8165_v48 }
 0x40e   :  { %v5468_v29 = vpop.f32.mrf.mxu0 }
 0x40f   :  { %v3369_v63 = vadd.f32 %v3123_v58, %v8166_v16  ;;  %v3138_v37 = vadd.f32 %v5468_v29, %v7283_v36  ;;  %5564 = vmatprep.mubr.msk.f32.mxu1 %vm747_vm2, %v3431_v18  ;;  %v3434_v7 = vmax.f32 %v3370_v60, 0.0  ;;  %v8174_v60 = vmax.f32 %v6795_v3, 0.0 }
 0x410   :  { %v3132_v54 = vpop.f32.mrf.mxu0  ;;  %5565 = vmatmul.mubr.msk.f32.gmra.mxu1 %vm747_vm2, %v3432_v45  ;;  %v8173_v45 = vmax.f32 %v6791_v59, 0.0 }
 0x411   :  { %v3433_v6 = vmax.f32 %v3369_v63, 0.0  ;;  %v3133_v46 = vadd.f32 %v7283_v36, %v3132_v54  ;;  %v3372_v39 = vadd.f32 %v3138_v37, %v8167_v34 }
 0x412   :  { %v5471_v35 = vpop.f32.mrf.mxu0 }
 0x413   :  { %v3371_v22 = vadd.f32 %v3133_v46, %v8168_v28  ;;  %v3148_v43 = vadd.f32 %v5471_v35, %v7283_v36  ;;  %5567 = vmatprep.mubr.msk.f32.mxu1 %vm747_vm2, %v3433_v6  ;;  %v3436_v17 = vmax.f32 %v3372_v39, 0.0  ;;  %v8175_v6 = vmax.f32 %v6809_v1, 0.0 }
 0x414   :  { %v3142_v0 = vpop.f32.mrf.mxu0  ;;  %5568 = vmatmul.mubr.msk.f32.gmra.mxu1 %vm747_vm2, %v3434_v7  ;;  %v8176_v7 = vmax.f32 %v6813_v12, 0.0 }
 0x415   :  { %v3435_v51 = vmax.f32 %v3371_v22, 0.0  ;;  %v3143_v33 = vadd.f32 %v7283_v36, %v3142_v0  ;;  %v3374_v57 = vadd.f32 %v3148_v43, %v8169_v9  ;;  %v8177_v43 = vmax.f32 %v6827_v8, 0.0 }
 0x416   :  { %v5474_v41 = vpop.f32.mrf.mxu0 }
 0x417   :  { %v3373_v27 = vadd.f32 %v3143_v33, %v8170_v25  ;;  %v3158_v49 = vadd.f32 %v5474_v41, %v7283_v36  ;;  %5570 = vmatprep.mubr.msk.f32.mxu1 %vm747_vm2, %v3435_v51  ;;  %v3438_v5 = vmax.f32 %v3374_v57, 0.0  ;;  %v8178_v51 = vmax.f32 %v6831_v26, 0.0 }
 0x418   :  { %v3152_v10 = vpop.f32.mrf.mxu0  ;;  %5571 = vmatmul.mubr.msk.f32.gmra.mxu1 %vm747_vm2, %v3436_v17  ;;  %v8179_v25 = vmax.f32 %v6845_v20, 0.0 }
 0x419   :  { %v3437_v15 = vmax.f32 %v3373_v27, 0.0  ;;  %v3153_v11 = vadd.f32 %v7283_v36, %v3152_v10  ;;  %v3376_v23 = vadd.f32 %v3158_v49, %v8171_v21  ;;  %v8180_v49 = vmax.f32 %v6849_v44, 0.0 }
 0x41a   :  { %v5477_v47 = vpop.f32.mrf.mxu0 }
 0x41b   :  { %v3375_v52 = vadd.f32 %v3153_v11, %v8172_v40  ;;  %v3168_v55 = vadd.f32 %v5477_v47, %v7283_v36  ;;  %5573 = vmatprep.mubr.msk.f32.mxu1 %vm747_vm2, %v3437_v15  ;;  %v3440_v58 = vmax.f32 %v3376_v23, 0.0  ;;  %v8181_v23 = vmax.f32 %v6863_v38, 0.0 }
 0x41c   :  { %v3162_v31 = vpop.f32.mrf.mxu0  ;;  %5574 = vmatmul.mubr.msk.f32.gmra.mxu1 %vm747_vm2, %v3438_v5  ;;  %v8182_v40 = vmax.f32 %v6867_v62, 0.0 }
 0x41d   :  { %v3439_v19 = vmax.f32 %v3375_v52, 0.0  ;;  %v3163_v18 = vadd.f32 %v7283_v36, %v3162_v31  ;;  %v3378_v48 = vadd.f32 %v3168_v55, %v8173_v45 }
 0x41e   :  { %v5480_v53 = vpop.f32.mrf.mxu0 }
 0x41f   :  { %v3377_v29 = vadd.f32 %v3163_v18, %v8174_v60  ;;  %v3178_v61 = vadd.f32 %v5480_v53, %v7283_v36  ;;  %5576 = vmatprep.mubr.msk.f32.mxu1 %vm747_vm2, %v3439_v19  ;;  %v3442_v54 = vmax.f32 %v3378_v48, 0.0  ;;  %v8184_v48 = vmax.f32 %v6885_v30, 0.0 }
 0x420   :  { %v3172_v16 = vpop.f32.mrf.mxu0  ;;  %5577 = vmatmul.mubr.msk.f32.gmra.mxu1 %vm747_vm2, %v3440_v58  ;;  %v8183_v58 = vmax.f32 %v6881_v56, 0.0 }
 0x421   :  { %v3441_v63 = vmax.f32 %v3377_v29, 0.0  ;;  %v3173_v37 = vadd.f32 %v7283_v36, %v3172_v16  ;;  %v3380_v46 = vadd.f32 %v3178_v61, %v8175_v6 }
 0x422   :  { %v5483_v59 = vpop.f32.mrf.mxu0 }
 0x423   :  { %v3379_v34 = vadd.f32 %v3173_v37, %v8176_v7  ;;  %v3188_v3 = vadd.f32 %v5483_v59, %v7283_v36  ;;  %5579 = vmatprep.mubr.msk.f32.mxu1 %vm747_vm2, %v3441_v63  ;;  %v3444_v22 = vmax.f32 %v3380_v46, 0.0  ;;  %v8185_v63 = vmax.f32 %v6899_v13, 0.0 }
 0x424   :  { %v3182_v39 = vpop.f32.mrf.mxu0  ;;  %5580 = vmatmul.mubr.msk.f32.gmra.mxu1 %vm747_vm2, %v3442_v54  ;;  %v8186_v54 = vmax.f32 %v6903_v24, 0.0 }
 0x425   :  { %v3443_v35 = vmax.f32 %v3379_v34, 0.0  ;;  %v3183_v28 = vadd.f32 %v7283_v36, %v3182_v39  ;;  %v3382_v0 = vadd.f32 %v3188_v3, %v8177_v43  ;;  %v8187_v3 = vmax.f32 %v6917_v2, 0.0 }
 0x426   :  { %v5486_v1 = vpop.f32.mrf.mxu0 }
 0x427   :  { %v3381_v33 = vadd.f32 %v3183_v28, %v8178_v51  ;;  %v3198_v12 = vadd.f32 %v5486_v1, %v7283_v36  ;;  %5582 = vmatprep.mubr.msk.f32.mxu1 %vm747_vm2, %v3443_v35  ;;  %v3446_v41 = vmax.f32 %v3382_v0, 0.0  ;;  %v8188_v35 = vmax.f32 %v6921_v50, 0.0 }
 0x428   :  { %v3192_v17 = vpop.f32.mrf.mxu0  ;;  %5583 = vmatmul.mubr.msk.f32.gmra.mxu1 %vm747_vm2, %v3444_v22  ;;  %v8189_v51 = vmax.f32 %v6935_v42, 0.0 }
 0x429   :  { %v3445_v9 = vmax.f32 %v3381_v33, 0.0  ;;  %v3193_v57 = vadd.f32 %v7283_v36, %v3192_v17  ;;  %v3384_v27 = vadd.f32 %v3198_v12, %v8179_v25  ;;  %v8190_v12 = vmax.f32 %v6939_v32, 0.0 }
 0x42a   :  { %v5489_v8 = vpop.f32.mrf.mxu0 }
 0x42b   :  { %v3383_v10 = vadd.f32 %v3193_v57, %v8180_v49  ;;  %v3208_v26 = vadd.f32 %v5489_v8, %v7283_v36  ;;  %5585 = vmatprep.mubr.msk.f32.mxu1 %vm747_vm2, %v3445_v9  ;;  %v3448_v21 = vmax.f32 %v3384_v27, 0.0  ;;  %v8191_v27 = vmax.f32 %v6953_v4, 0.0 }
 0x42c   :  { %v3202_v15 = vpop.f32.mrf.mxu0  ;;  %5586 = vmatmul.mubr.msk.f32.gmra.mxu1 %vm747_vm2, %v3446_v41  ;;  %v8192_v49 = vmax.f32 %v6957_v14, 0.0 }
 0x42d   :  { %v3447_v11 = vmax.f32 %v3383_v10, 0.0  ;;  %v3203_v5 = vadd.f32 %v7283_v36, %v3202_v15  ;;  %v3386_v47 = vadd.f32 %v3208_v26, %v8181_v23 }
 0x42e   :  { %v5492_v20 = vpop.f32.mrf.mxu0 }
 0x42f   :  { %v3385_v52 = vadd.f32 %v3203_v5, %v8182_v40  ;;  %v3218_v44 = vadd.f32 %v5492_v20, %v7283_v36  ;;  %5588 = vmatprep.mubr.msk.f32.mxu1 %vm747_vm2, %v3447_v11  ;;  %v3450_v18 = vmax.f32 %v3386_v47, 0.0  ;;  %v8195_v20 = vld [vmem:[#allocation19_spill] sm:$0xff] }
 0x430   :  { %v3212_v55 = vpop.f32.mrf.mxu0  ;;  %5589 = vmatmul.mubr.msk.f32.gmra.mxu1 %vm747_vm2, %v3448_v21  ;;  %v8193_v21 = vld [vmem:[#allocation18_spill] sm:$0xff]  ;;  %v8196_v40 = vmax.f32 %v8195_v20, 0.0 }
 0x431   :  { %v3449_v31 = vmax.f32 %v3385_v52, 0.0  ;;  %v3213_v19 = vadd.f32 %v7283_v36, %v3212_v55  ;;  %v3388_v45 = vadd.f32 %v3218_v44, %v8183_v58  ;;  %v8194_v23 = vmax.f32 %v8193_v21, 0.0 }
 0x432   :  { %v5495_v38 = vpop.f32.mrf.mxu0 }
 0x433   :  { %v3387_v53 = vadd.f32 %v3213_v19, %v8184_v48  ;;  %v3228_v62 = vadd.f32 %v5495_v38, %v7283_v36  ;;  %5591 = vmatprep.mubr.msk.f32.mxu1 %vm747_vm2, %v3449_v31  ;;  %v3452_v16 = vmax.f32 %v3388_v45, 0.0  ;;  %v8199_v48 = vld [vmem:[#allocation3_spill] sm:$0xff] }
 0x434   :  { %v3222_v60 = vpop.f32.mrf.mxu0  ;;  %5592 = vmatmul.mubr.msk.f32.gmra.mxu1 %vm747_vm2, %v3450_v18  ;;  %v8197_v18 = vld [vmem:[#allocation2_spill] sm:$0xff] }
 0x435   :  { %v3451_v29 = vmax.f32 %v3387_v53, 0.0  ;;  %v3223_v61 = vadd.f32 %v7283_v36, %v3222_v60  ;;  %v3390_v37 = vadd.f32 %v3228_v62, %v8185_v63  ;;  %v8198_v58 = vmax.f32 %v8197_v18, 0.0 }
 0x436   :  { %v5498_v56 = vpop.f32.mrf.mxu0  ;;  %v8200_v53 = vmax.f32 %v8199_v48, 0.0 }
 0x437   :  { %v3389_v6 = vadd.f32 %v3223_v61, %v8186_v54  ;;  %v3238_v30 = vadd.f32 %v5498_v56, %v7283_v36  ;;  %5594 = vmatprep.mubr.msk.f32.mxu1 %vm747_vm2, %v3451_v29  ;;  %v3454_v34 = vmax.f32 %v3390_v37, 0.0  ;;  %v8201_v37 = vld [vmem:[#allocation4_spill] sm:$0xff] }
 0x438   :  { %v3232_v46 = vpop.f32.mrf.mxu0  ;;  %5595 = vmatmul.mubr.msk.f32.gmra.mxu1 %vm747_vm2, %v3452_v16  ;;  %v8202_v56 = vmax.f32 %v8201_v37, 0.0 }
 0x439   :  { %v3453_v59 = vmax.f32 %v3389_v6, 0.0  ;;  %v3233_v7 = vadd.f32 %v7283_v36, %v3232_v46  ;;  %v3392_v39 = vadd.f32 %v3238_v30, %v8187_v3  ;;  %v8203_v30 = vld [vmem:[#allocation5_spill] sm:$0xff] }
 0x43a   :  { %v5501_v13 = vpop.f32.mrf.mxu0  ;;  %v8204_v46 = vmax.f32 %v8203_v30, 0.0 }
 0x43b   :  { %v3391_v28 = vadd.f32 %v3233_v7, %v8188_v35  ;;  %v3248_v24 = vadd.f32 %v5501_v13, %v7283_v36  ;;  %5597 = vmatprep.mubr.msk.f32.mxu1 %vm747_vm2, %v3453_v59  ;;  %v3456_v1 = vmax.f32 %v3392_v39, 0.0  ;;  %v8205_v35 = vld [vmem:[#allocation6_spill] sm:$0xff] }
 0x43c   :  { %v3242_v22 = vpop.f32.mrf.mxu0  ;;  %5598 = vmatmul.mubr.msk.f32.gmra.mxu1 %vm747_vm2, %v3454_v34 }
 0x43d   :  { %v3455_v43 = vmax.f32 %v3391_v28, 0.0  ;;  %v3243_v0 = vadd.f32 %v7283_v36, %v3242_v22  ;;  %v3394_v33 = vadd.f32 %v3248_v24, %v8189_v51  ;;  %v8206_v28 = vmax.f32 %v8205_v35, 0.0  ;;  %v8227_v35 = vld [vmem:[#allocation17_spill] sm:$0xff] }
 0x43e   :  { %v5504_v2 = vpop.f32.mrf.mxu0 }
 0x43f   :  { %v3393_v17 = vadd.f32 %v3243_v0, %v8190_v12  ;;  %v3258_v50 = vadd.f32 %v5504_v2, %v7283_v36  ;;  %5600 = vmatprep.mubr.msk.f32.mxu1 %vm747_vm2, %v3455_v43  ;;  %v3458_v25 = vmax.f32 %v3394_v33, 0.0  ;;  %v8207_v43 = vld [vmem:[#allocation7_spill] sm:$0xff] }
 0x440   :  { %v3252_v9 = vpop.f32.mrf.mxu0  ;;  %5601 = vmatmul.mubr.msk.f32.gmra.mxu1 %vm747_vm2, %v3456_v1  ;;  %v8208_v0 = vmax.f32 %v8207_v43, 0.0 }
 0x441   :  { %v3457_v57 = vmax.f32 %v3393_v17, 0.0  ;;  %v3253_v41 = vadd.f32 %v7283_v36, %v3252_v9  ;;  %v3396_v8 = vadd.f32 %v3258_v50, %v8191_v27  ;;  %v8209_v50 = vld [vmem:[#allocation8_spill] sm:$0xff] }
 0x442   :  { %v5507_v42 = vpop.f32.mrf.mxu0  ;;  %v8210_v9 = vmax.f32 %v8209_v50, 0.0 }
 0x443   :  { %v3395_v10 = vadd.f32 %v3253_v41, %v8192_v49  ;;  %v3268_v32 = vadd.f32 %v5507_v42, %v7283_v36  ;;  %5603 = vmatprep.mubr.msk.f32.mxu1 %vm747_vm2, %v3457_v57  ;;  %v3460_v5 = vmax.f32 %v3396_v8, 0.0 }
 0x444   :  { %v3262_v26 = vpop.f32.mrf.mxu0  ;;  %5604 = vmatmul.mubr.msk.f32.gmra.mxu1 %vm747_vm2, %v3458_v25  ;;  %v8211_v25 = vld [vmem:[#allocation9_spill] sm:$0xff] }
 0x445   :  { %v3459_v15 = vmax.f32 %v3395_v10, 0.0  ;;  %v3263_v11 = vadd.f32 %v7283_v36, %v3262_v26  ;;  %v3398_v47 = vadd.f32 %v3268_v32, %v8194_v23  ;;  %v8212_v27 = vmax.f32 %v8211_v25, 0.0  ;;  %v8215_v23 = vld [vmem:[#allocation11_spill] sm:$0xff] }
 0x446   :  { %v5510_v4 = vpop.f32.mrf.mxu0 }
 0x447   :  { %v3397_v52 = vadd.f32 %v3263_v11, %v8196_v40  ;;  %v3278_v14 = vadd.f32 %v5510_v4, %v7283_v36  ;;  %5606 = vmatprep.mubr.msk.f32.mxu1 %vm747_vm2, %v3459_v15  ;;  %v3462_v19 = vmax.f32 %v3398_v47, 0.0  ;;  %v8213_v15 = vld [vmem:[#allocation10_spill] sm:$0xff]  ;;  %v8216_v47 = vmax.f32 %v8215_v23, 0.0 }
 0x448   :  { %v3272_v44 = vpop.f32.mrf.mxu0  ;;  %5607 = vmatmul.mubr.msk.f32.gmra.mxu1 %vm747_vm2, %v3460_v5  ;;  %v8214_v11 = vmax.f32 %v8213_v15, 0.0 }
 0x449   :  { %v3461_v55 = vmax.f32 %v3397_v52, 0.0  ;;  %v3273_v31 = vadd.f32 %v7283_v36, %v3272_v44  ;;  %v3400_v45 = vadd.f32 %v3278_v14, %v8198_v58  ;;  %v8219_v58 = vld [vmem:[#allocation13_spill] sm:$0xff] }
 0x44a   :  { %v5513_v38 = vpop.f32.mrf.mxu0 }
 0x44b   :  { %v3399_v62 = vadd.f32 %v3273_v31, %v8200_v53  ;;  %v3288_v60 = vadd.f32 %v5513_v38, %v7283_v36  ;;  %5609 = vmatprep.mubr.msk.f32.mxu1 %vm747_vm2, %v3461_v55  ;;  %v3464_v63 = vmax.f32 %v3400_v45, 0.0  ;;  %v8217_v55 = vld [vmem:[#allocation12_spill] sm:$0xff]  ;;  %v8220_v45 = vmax.f32 %v8219_v58, 0.0 }
 0x44c   :  { %v3282_v29 = vpop.f32.mrf.mxu0  ;;  %5610 = vmatmul.mubr.msk.f32.gmra.mxu1 %vm747_vm2, %v3462_v19  ;;  %v8218_v31 = vmax.f32 %v8217_v55, 0.0 }
 0x44d   :  { %v3463_v61 = vmax.f32 %v3399_v62, 0.0  ;;  %v3283_v16 = vadd.f32 %v7283_v36, %v3282_v29  ;;  %v3402_v54 = vadd.f32 %v3288_v60, %v8202_v56  ;;  %v8223_v56 = vld [vmem:[#allocation15_spill] sm:$0xff] }
 0x44e   :  { %v5516_v6 = vpop.f32.mrf.mxu0 }
 0x44f   :  { %v3401_v59 = vadd.f32 %v3283_v16, %v8204_v46  ;;  %v3298_v7 = vadd.f32 %v5516_v6, %v7283_v36  ;;  %5612 = vmatprep.mubr.msk.f32.mxu1 %vm747_vm2, %v3463_v61  ;;  %v3466_v13 = vmax.f32 %v3402_v54, 0.0  ;;  %v8221_v61 = vld [vmem:[#allocation14_spill] sm:$0xff]  ;;  %v8224_v54 = vmax.f32 %v8223_v56, 0.0 }
 0x450   :  { %v3292_v34 = vpop.f32.mrf.mxu0  ;;  %5613 = vmatmul.mubr.msk.f32.gmra.mxu1 %vm747_vm2, %v3464_v63  ;;  %v8222_v16 = vmax.f32 %v8221_v61, 0.0 }
 0x451   :  { %v3465_v3 = vmax.f32 %v3401_v59, 0.0  ;;  %v3293_v39 = vadd.f32 %v7283_v36, %v3292_v34  ;;  %v3404_v24 = vadd.f32 %v3298_v7, %v8206_v28  ;;  %v8228_v28 = vmax.f32 %v8227_v35, 0.0 }
 0x452   :  { %v5519_v22 = vpop.f32.mrf.mxu0 }
 0x453   :  { %v3403_v1 = vadd.f32 %v3293_v39, %v8208_v0  ;;  %v3308_v51 = vadd.f32 %v5519_v22, %v7283_v36  ;;  %5615 = vmatprep.mubr.msk.f32.mxu1 %vm747_vm2, %v3465_v3  ;;  %v3468_v17 = vmax.f32 %v3404_v24, 0.0  ;;  %v8225_v3 = vld [vmem:[#allocation16_spill] sm:$0xff] }
 0x454   :  { %v3302_v33 = vpop.f32.mrf.mxu0  ;;  %5616 = vmatmul.mubr.msk.f32.gmra.mxu1 %vm747_vm2, %v3466_v13  ;;  %v8226_v39 = vmax.f32 %v8225_v3, 0.0 }
 0x455   :  { %v3467_v2 = vmax.f32 %v3403_v1, 0.0  ;;  %v3303_v12 = vadd.f32 %v7283_v36, %v3302_v33  ;;  %v3406_v57 = vadd.f32 %v3308_v51, %v8210_v9 }
 0x456   :  { %v5522_v41 = vpop.f32.mrf.mxu0 }
 0x457   :  { %v3405_v8 = vadd.f32 %v3303_v12, %v8212_v27  ;;  %v3318_v42 = vadd.f32 %v5522_v41, %v7283_v36  ;;  %5618 = vmatprep.mubr.msk.f32.mxu1 %vm747_vm2, %v3467_v2  ;;  %v3470_v26 = vmax.f32 %v3406_v57, 0.0 }
 0x458   :  { %v3312_v49 = vpop.f32.mrf.mxu0  ;;  %5619 = vmatmul.mubr.msk.f32.gmra.mxu1 %vm747_vm2, %v3468_v17 }
 0x459   :  { %v3469_v10 = vmax.f32 %v3405_v8, 0.0  ;;  %v3313_v32 = vadd.f32 %v7283_v36, %v3312_v49  ;;  %v3408_v5 = vadd.f32 %v3318_v42, %v8214_v11 }
 0x45a   :  { %v5525_v21 = vpop.f32.mrf.mxu0 }
 0x45b   :  { %v3407_v4 = vadd.f32 %v3313_v32, %v8216_v47  ;;  %v3328_v20 = vadd.f32 %v5525_v21, %v7283_v36  ;;  %5621 = vmatprep.mubr.msk.f32.mxu1 %vm747_vm2, %v3469_v10  ;;  %v3472_v44 = vmax.f32 %v3408_v5, 0.0 }
 0x45c   :  { %v3322_v40 = vpop.f32.mrf.mxu0  ;;  %5622 = vmatmul.mubr.msk.f32.gmra.mxu1 %vm747_vm2, %v3470_v26 }
 0x45d   :  { %v3471_v52 = vmax.f32 %v3407_v4, 0.0  ;;  %v3323_v14 = vadd.f32 %v7283_v36, %v3322_v40  ;;  %v3410_v19 = vadd.f32 %v3328_v20, %v8218_v31 }
 0x45e   :  { %v5528_v18 = vpop.f32.mrf.mxu0 }
 0x45f   :  { %v3409_v38 = vadd.f32 %v3323_v14, %v8220_v45  ;;  %v3338_v48 = vadd.f32 %v5528_v18, %v7283_v36  ;;  %5624 = vmatprep.mubr.msk.f32.mxu1 %vm747_vm2, %v3471_v52  ;;  %v3474_v29 = vmax.f32 %v3410_v19, 0.0 }
 0x460   :  { %v3332_v53 = vpop.f32.mrf.mxu0  ;;  %5625 = vmatmul.mubr.msk.f32.gmra.mxu1 %vm747_vm2, %v3472_v44 }
 0x461   :  { %v3473_v62 = vmax.f32 %v3409_v38, 0.0  ;;  %v3333_v60 = vadd.f32 %v7283_v36, %v3332_v53  ;;  %v3412_v63 = vadd.f32 %v3338_v48, %v8222_v16 }
 0x462   :  { %v5531_v37 = vpop.f32.mrf.mxu0 }
 0x463   :  { %v3411_v6 = vadd.f32 %v3333_v60, %v8224_v54  ;;  %v3348_v30 = vadd.f32 %v5531_v37, %v7283_v36  ;;  %5627 = vmatprep.mubr.msk.f32.mxu1 %vm747_vm2, %v3473_v62  ;;  %v3476_v34 = vmax.f32 %v3412_v63, 0.0 }
 0x464   :  { %v3342_v46 = vpop.f32.mrf.mxu0  ;;  %5628 = vmatmul.mubr.msk.f32.gmra.mxu1 %vm747_vm2, %v3474_v29 }
 0x465   :  { %v3475_v59 = vmax.f32 %v3411_v6, 0.0  ;;  %v3343_v7 = vadd.f32 %v7283_v36, %v3342_v46  ;;  %v3414_v13 = vadd.f32 %v3348_v30, %v8226_v39  ;;  %v7544_v36 = vld [vmem:[%s7869_s3 + $0x5] ss:$0 sm:$0xff] }
 0x467   :  { %v3413_v24 = vadd.f32 %v3343_v7, %v8228_v28  ;;  %5630 = vmatprep.mubr.msk.f32.mxu1 %vm747_vm2, %v3475_v59  ;;  %v3478_v43 = vmax.f32 %v3414_v13, 0.0 }
 0x468   :  { %5631 = vmatmul.mubr.msk.f32.gmra.mxu1 %vm747_vm2, %v3476_v34 }
 0x469   :  { %v3477_v22 = vmax.f32 %v3413_v24, 0.0 }
 0x46b   :  { %5633 = vmatprep.mubr.msk.f32.mxu1 %vm747_vm2, %v3477_v22 }
 0x46c   :  { %5634 = vmatmul.mubr.msk.f32.gmra.mxu1 %vm747_vm2, %v3478_v43 }
 0x4b0   :  { %v5542_v0 = vpop.f32.mrf.mxu1 }
 0x4b1   :  { %v3756_v1 = vadd.f32 %v5542_v0, %v7544_v36 }
 0x4b2   :  { %v3750_v51 = vpop.f32.mrf.mxu1 }
 0x4b3   :  { %v4070_v33 = vmax.f32 %v3756_v1, 0.0  ;;  %v3751_v2 = vadd.f32 %v7544_v36, %v3750_v51 }
 0x4b4   :  { %v5545_v12 = vpop.f32.mrf.mxu1 }
 0x4b5   :  { %4134 = vst.msk [vmem:[%s7870_s4 + $0x8] sm:$0xff] %vm747_vm2, %v4070_v33  ;;  %v4069_v17 = vmax.f32 %v3751_v2, 0.0  ;;  %v3766_v50 = vadd.f32 %v5545_v12, %v7544_v36 }
 0x4b6   :  { %v3760_v9 = vpop.f32.mrf.mxu1 }
 0x4b7   :  { %4133 = vst.msk [vmem:[%s7870_s4] sm:$0xff] %vm747_vm2, %v4069_v17  ;;  %v4072_v57 = vmax.f32 %v3766_v50, 0.0  ;;  %v3761_v41 = vadd.f32 %v7544_v36, %v3760_v9 }
 0x4b8   :  { %v5548_v25 = vpop.f32.mrf.mxu1 }
 0x4b9   :  { %4136 = vst.msk [vmem:[%s7870_s4 + $0x18] sm:$0xff] %vm747_vm2, %v4072_v57  ;;  %v4071_v27 = vmax.f32 %v3761_v41, 0.0  ;;  %v3776_v8 = vadd.f32 %v5548_v25, %v7544_v36 }
 0x4ba   :  { %v3770_v42 = vpop.f32.mrf.mxu1 }
 0x4bb   :  { %4135 = vst.msk [vmem:[%s7870_s4 + $0x10] sm:$0xff] %vm747_vm2, %v4071_v27  ;;  %v4074_v49 = vmax.f32 %v3776_v8, 0.0  ;;  %v3771_v10 = vadd.f32 %v7544_v36, %v3770_v42 }
 0x4bc   :  { %v5551_v32 = vpop.f32.mrf.mxu1 }
 0x4bd   :  { %4138 = vst.msk [vmem:[%s7870_s4 + $0x28] sm:$0xff] %vm747_vm2, %v4074_v49  ;;  %v4073_v26 = vmax.f32 %v3771_v10, 0.0  ;;  %v3786_v15 = vadd.f32 %v5551_v32, %v7544_v36 }
 0x4be   :  { %v3780_v11 = vpop.f32.mrf.mxu1 }
 0x4bf   :  { %4137 = vst.msk [vmem:[%s7870_s4 + $0x20] sm:$0xff] %vm747_vm2, %v4073_v26  ;;  %v4076_v5 = vmax.f32 %v3786_v15, 0.0  ;;  %v3781_v21 = vadd.f32 %v7544_v36, %v3780_v11 }
 0x4c0   :  { %v5554_v23 = vpop.f32.mrf.mxu1 }
 0x4c1   :  { %4140 = vst.msk [vmem:[%s7870_s4 + $0x38] sm:$0xff] %vm747_vm2, %v4076_v5  ;;  %v4075_v47 = vmax.f32 %v3781_v21, 0.0  ;;  %v3796_v4 = vadd.f32 %v5554_v23, %v7544_v36 }
 0x4c2   :  { %v3790_v20 = vpop.f32.mrf.mxu1 }
 0x4c3   :  { %4139 = vst.msk [vmem:[%s7870_s4 + $0x30] sm:$0xff] %vm747_vm2, %v4075_v47  ;;  %v4078_v40 = vmax.f32 %v3796_v4, 0.0  ;;  %v3791_v52 = vadd.f32 %v7544_v36, %v3790_v20 }
 0x4c4   :  { %v5557_v14 = vpop.f32.mrf.mxu1 }
 0x4c5   :  { %4142 = vst.msk [vmem:[%s7870_s4 + $0x48] sm:$0xff] %vm747_vm2, %v4078_v40  ;;  %v4077_v44 = vmax.f32 %v3791_v52, 0.0  ;;  %v3806_v55 = vadd.f32 %v5557_v14, %v7544_v36 }
 0x4c6   :  { %v3800_v31 = vpop.f32.mrf.mxu1 }
 0x4c7   :  { %4141 = vst.msk [vmem:[%s7870_s4 + $0x40] sm:$0xff] %vm747_vm2, %v4077_v44  ;;  %v4080_v19 = vmax.f32 %v3806_v55, 0.0  ;;  %v3801_v18 = vadd.f32 %v7544_v36, %v3800_v31 }
 0x4c8   :  { %v5560_v58 = vpop.f32.mrf.mxu1 }
 0x4c9   :  { %4144 = vst.msk [vmem:[%s7870_s4 + $0x58] sm:$0xff] %vm747_vm2, %v4080_v19  ;;  %v4079_v45 = vmax.f32 %v3801_v18, 0.0  ;;  %v3816_v38 = vadd.f32 %v5560_v58, %v7544_v36 }
 0x4ca   :  { %v3810_v48 = vpop.f32.mrf.mxu1 }
 0x4cb   :  { %4143 = vst.msk [vmem:[%s7870_s4 + $0x50] sm:$0xff] %vm747_vm2, %v4079_v45  ;;  %v4082_v53 = vmax.f32 %v3816_v38, 0.0  ;;  %v3811_v62 = vadd.f32 %v7544_v36, %v3810_v48 }
 0x4cc   :  { %v5563_v60 = vpop.f32.mrf.mxu1 }
 0x4cd   :  { %4146 = vst.msk [vmem:[%s7870_s4 + $0x68] sm:$0xff] %vm747_vm2, %v4082_v53  ;;  %v4081_v29 = vmax.f32 %v3811_v62, 0.0  ;;  %v3826_v61 = vadd.f32 %v5563_v60, %v7544_v36 }
 0x4ce   :  { %v3820_v16 = vpop.f32.mrf.mxu1 }
 0x4cf   :  { %4145 = vst.msk [vmem:[%s7870_s4 + $0x60] sm:$0xff] %vm747_vm2, %v4081_v29  ;;  %v4084_v63 = vmax.f32 %v3826_v61, 0.0  ;;  %v3821_v37 = vadd.f32 %v7544_v36, %v3820_v16 }
 0x4d0   :  { %v5566_v56 = vpop.f32.mrf.mxu1 }
 0x4d1   :  { %4148 = vst.msk [vmem:[%s7870_s4 + $0x78] sm:$0xff] %vm747_vm2, %v4084_v63  ;;  %v4083_v54 = vmax.f32 %v3821_v37, 0.0  ;;  %v3836_v6 = vadd.f32 %v5566_v56, %v7544_v36 }
 0x4d2   :  { %v3830_v30 = vpop.f32.mrf.mxu1 }
 0x4d3   :  { %4147 = vst.msk [vmem:[%s7870_s4 + $0x70] sm:$0xff] %vm747_vm2, %v4083_v54  ;;  %v4086_v46 = vmax.f32 %v3836_v6, 0.0  ;;  %v3831_v59 = vadd.f32 %v7544_v36, %v3830_v30 }
 0x4d4   :  { %v5569_v7 = vpop.f32.mrf.mxu1 }
 0x4d5   :  { %4150 = vst.msk [vmem:[%s7870_s4 + $0x88] sm:$0xff] %vm747_vm2, %v4086_v46  ;;  %v4085_v34 = vmax.f32 %v3831_v59, 0.0  ;;  %v3846_v3 = vadd.f32 %v5569_v7, %v7544_v36 }
 0x4d6   :  { %v3840_v39 = vpop.f32.mrf.mxu1 }
 0x4d7   :  { %4149 = vst.msk [vmem:[%s7870_s4 + $0x80] sm:$0xff] %vm747_vm2, %v4085_v34  ;;  %v4088_v13 = vmax.f32 %v3846_v3, 0.0  ;;  %v3841_v35 = vadd.f32 %v7544_v36, %v3840_v39 }
 0x4d8   :  { %v5572_v28 = vpop.f32.mrf.mxu1 }
 0x4d9   :  { %4152 = vst.msk [vmem:[%s7870_s4 + $0x98] sm:$0xff] %vm747_vm2, %v4088_v13  ;;  %v4087_v24 = vmax.f32 %v3841_v35, 0.0  ;;  %v3856_v22 = vadd.f32 %v5572_v28, %v7544_v36 }
 0x4da   :  { %v3850_v43 = vpop.f32.mrf.mxu1 }
 0x4db   :  { %4151 = vst.msk [vmem:[%s7870_s4 + $0x90] sm:$0xff] %vm747_vm2, %v4087_v24  ;;  %v4090_v0 = vmax.f32 %v3856_v22, 0.0  ;;  %v3851_v1 = vadd.f32 %v7544_v36, %v3850_v43 }
 0x4dc   :  { %v5575_v51 = vpop.f32.mrf.mxu1 }
 0x4dd   :  { %4154 = vst.msk [vmem:[%s7870_s4 + $0xa8] sm:$0xff] %vm747_vm2, %v4090_v0  ;;  %v4089_v33 = vmax.f32 %v3851_v1, 0.0  ;;  %v3866_v2 = vadd.f32 %v5575_v51, %v7544_v36 }
 0x4de   :  { %v3860_v12 = vpop.f32.mrf.mxu1 }
 0x4df   :  { %4153 = vst.msk [vmem:[%s7870_s4 + $0xa0] sm:$0xff] %vm747_vm2, %v4089_v33  ;;  %v4092_v17 = vmax.f32 %v3866_v2, 0.0  ;;  %v3861_v50 = vadd.f32 %v7544_v36, %v3860_v12 }
 0x4e0   :  { %v5578_v9 = vpop.f32.mrf.mxu1 }
 0x4e1   :  { %4156 = vst.msk [vmem:[%s7870_s4 + $0xb8] sm:$0xff] %vm747_vm2, %v4092_v17  ;;  %v4091_v57 = vmax.f32 %v3861_v50, 0.0  ;;  %v3876_v41 = vadd.f32 %v5578_v9, %v7544_v36 }
 0x4e2   :  { %v3870_v25 = vpop.f32.mrf.mxu1 }
 0x4e3   :  { %4155 = vst.msk [vmem:[%s7870_s4 + $0xb0] sm:$0xff] %vm747_vm2, %v4091_v57  ;;  %v4094_v27 = vmax.f32 %v3876_v41, 0.0  ;;  %v3871_v8 = vadd.f32 %v7544_v36, %v3870_v25 }
 0x4e4   :  { %v5581_v42 = vpop.f32.mrf.mxu1 }
 0x4e5   :  { %4158 = vst.msk [vmem:[%s7870_s4 + $0xc8] sm:$0xff] %vm747_vm2, %v4094_v27  ;;  %v4093_v49 = vmax.f32 %v3871_v8, 0.0  ;;  %v3886_v10 = vadd.f32 %v5581_v42, %v7544_v36 }
 0x4e6   :  { %v3880_v32 = vpop.f32.mrf.mxu1 }
 0x4e7   :  { %4157 = vst.msk [vmem:[%s7870_s4 + $0xc0] sm:$0xff] %vm747_vm2, %v4093_v49  ;;  %v4096_v26 = vmax.f32 %v3886_v10, 0.0  ;;  %v3881_v15 = vadd.f32 %v7544_v36, %v3880_v32 }
 0x4e8   :  { %v5584_v11 = vpop.f32.mrf.mxu1 }
 0x4e9   :  { %4160 = vst.msk [vmem:[%s7870_s4 + $0xd8] sm:$0xff] %vm747_vm2, %v4096_v26  ;;  %v4095_v5 = vmax.f32 %v3881_v15, 0.0  ;;  %v3896_v21 = vadd.f32 %v5584_v11, %v7544_v36 }
 0x4ea   :  { %v3890_v23 = vpop.f32.mrf.mxu1 }
 0x4eb   :  { %4159 = vst.msk [vmem:[%s7870_s4 + $0xd0] sm:$0xff] %vm747_vm2, %v4095_v5  ;;  %v4098_v47 = vmax.f32 %v3896_v21, 0.0  ;;  %v3891_v4 = vadd.f32 %v7544_v36, %v3890_v23 }
 0x4ec   :  { %v5587_v20 = vpop.f32.mrf.mxu1 }
 0x4ed   :  { %4162 = vst.msk [vmem:[%s7870_s4 + $0xe8] sm:$0xff] %vm747_vm2, %v4098_v47  ;;  %v4097_v40 = vmax.f32 %v3891_v4, 0.0  ;;  %v3906_v52 = vadd.f32 %v5587_v20, %v7544_v36 }
 0x4ee   :  { %v3900_v14 = vpop.f32.mrf.mxu1 }
 0x4ef   :  { %4161 = vst.msk [vmem:[%s7870_s4 + $0xe0] sm:$0xff] %vm747_vm2, %v4097_v40  ;;  %v4100_v44 = vmax.f32 %v3906_v52, 0.0  ;;  %v3901_v55 = vadd.f32 %v7544_v36, %v3900_v14 }
 0x4f0   :  { %v5590_v31 = vpop.f32.mrf.mxu1 }
 0x4f1   :  { %4164 = vst.msk [vmem:[%s7870_s4 + $0xf8] sm:$0xff] %vm747_vm2, %v4100_v44  ;;  %v4099_v19 = vmax.f32 %v3901_v55, 0.0  ;;  %v3916_v18 = vadd.f32 %v5590_v31, %v7544_v36 }
 0x4f2   :  { %v3910_v58 = vpop.f32.mrf.mxu1 }
 0x4f3   :  { %4163 = vst.msk [vmem:[%s7870_s4 + $0xf0] sm:$0xff] %vm747_vm2, %v4099_v19  ;;  %v4102_v45 = vmax.f32 %v3916_v18, 0.0  ;;  %v3911_v38 = vadd.f32 %v7544_v36, %v3910_v58 }
 0x4f4   :  { %v5593_v48 = vpop.f32.mrf.mxu1 }
 0x4f5   :  { %4166 = vst.msk [vmem:[%s7870_s4 + $0x108] sm:$0xff] %vm747_vm2, %v4102_v45  ;;  %v4101_v53 = vmax.f32 %v3911_v38, 0.0  ;;  %v3926_v62 = vadd.f32 %v5593_v48, %v7544_v36 }
 0x4f6   :  { %v3920_v60 = vpop.f32.mrf.mxu1 }
 0x4f7   :  { %4165 = vst.msk [vmem:[%s7870_s4 + $0x100] sm:$0xff] %vm747_vm2, %v4101_v53  ;;  %v4104_v29 = vmax.f32 %v3926_v62, 0.0  ;;  %v3921_v61 = vadd.f32 %v7544_v36, %v3920_v60 }
 0x4f8   :  { %v5596_v16 = vpop.f32.mrf.mxu1 }
 0x4f9   :  { %4168 = vst.msk [vmem:[%s7870_s4 + $0x118] sm:$0xff] %vm747_vm2, %v4104_v29  ;;  %v4103_v63 = vmax.f32 %v3921_v61, 0.0  ;;  %v3936_v37 = vadd.f32 %v5596_v16, %v7544_v36 }
 0x4fa   :  { %v3930_v56 = vpop.f32.mrf.mxu1 }
 0x4fb   :  { %4167 = vst.msk [vmem:[%s7870_s4 + $0x110] sm:$0xff] %vm747_vm2, %v4103_v63  ;;  %v4106_v54 = vmax.f32 %v3936_v37, 0.0  ;;  %v3931_v6 = vadd.f32 %v7544_v36, %v3930_v56 }
 0x4fc   :  { %v5599_v30 = vpop.f32.mrf.mxu1 }
 0x4fd   :  { %4170 = vst.msk [vmem:[%s7870_s4 + $0x128] sm:$0xff] %vm747_vm2, %v4106_v54  ;;  %v4105_v46 = vmax.f32 %v3931_v6, 0.0  ;;  %v3946_v59 = vadd.f32 %v5599_v30, %v7544_v36 }
 0x4fe   :  { %v3940_v7 = vpop.f32.mrf.mxu1 }
 0x4ff   :  { %4169 = vst.msk [vmem:[%s7870_s4 + $0x120] sm:$0xff] %vm747_vm2, %v4105_v46  ;;  %v4108_v34 = vmax.f32 %v3946_v59, 0.0  ;;  %v3941_v3 = vadd.f32 %v7544_v36, %v3940_v7 }
 0x500   :  { %v5602_v39 = vpop.f32.mrf.mxu1 }
 0x501   :  { %4172 = vst.msk [vmem:[%s7870_s4 + $0x138] sm:$0xff] %vm747_vm2, %v4108_v34  ;;  %v4107_v13 = vmax.f32 %v3941_v3, 0.0  ;;  %v3956_v35 = vadd.f32 %v5602_v39, %v7544_v36 }
 0x502   :  { %v3950_v28 = vpop.f32.mrf.mxu1 }
 0x503   :  { %4171 = vst.msk [vmem:[%s7870_s4 + $0x130] sm:$0xff] %vm747_vm2, %v4107_v13  ;;  %v4110_v24 = vmax.f32 %v3956_v35, 0.0  ;;  %v3951_v22 = vadd.f32 %v7544_v36, %v3950_v28 }
 0x504   :  { %v5605_v43 = vpop.f32.mrf.mxu1 }
 0x505   :  { %4174 = vst.msk [vmem:[%s7870_s4 + $0x148] sm:$0xff] %vm747_vm2, %v4110_v24  ;;  %v4109_v0 = vmax.f32 %v3951_v22, 0.0  ;;  %v3966_v1 = vadd.f32 %v5605_v43, %v7544_v36 }
 0x506   :  { %v3960_v51 = vpop.f32.mrf.mxu1 }
 0x507   :  { %4173 = vst.msk [vmem:[%s7870_s4 + $0x140] sm:$0xff] %vm747_vm2, %v4109_v0  ;;  %v4112_v33 = vmax.f32 %v3966_v1, 0.0  ;;  %v3961_v2 = vadd.f32 %v7544_v36, %v3960_v51 }
 0x508   :  { %v5608_v12 = vpop.f32.mrf.mxu1 }
 0x509   :  { %4176 = vst.msk [vmem:[%s7870_s4 + $0x158] sm:$0xff] %vm747_vm2, %v4112_v33  ;;  %v4111_v17 = vmax.f32 %v3961_v2, 0.0  ;;  %v3976_v50 = vadd.f32 %v5608_v12, %v7544_v36 }
 0x50a   :  { %v3970_v9 = vpop.f32.mrf.mxu1 }
 0x50b   :  { %4175 = vst.msk [vmem:[%s7870_s4 + $0x150] sm:$0xff] %vm747_vm2, %v4111_v17  ;;  %v4114_v57 = vmax.f32 %v3976_v50, 0.0  ;;  %v3971_v41 = vadd.f32 %v7544_v36, %v3970_v9 }
 0x50c   :  { %v5611_v25 = vpop.f32.mrf.mxu1 }
 0x50d   :  { %4178 = vst.msk [vmem:[%s7870_s4 + $0x168] sm:$0xff] %vm747_vm2, %v4114_v57  ;;  %v4113_v27 = vmax.f32 %v3971_v41, 0.0  ;;  %v3986_v8 = vadd.f32 %v5611_v25, %v7544_v36 }
 0x50e   :  { %v3980_v42 = vpop.f32.mrf.mxu1 }
 0x50f   :  { %4177 = vst.msk [vmem:[%s7870_s4 + $0x160] sm:$0xff] %vm747_vm2, %v4113_v27  ;;  %v4116_v49 = vmax.f32 %v3986_v8, 0.0  ;;  %v3981_v10 = vadd.f32 %v7544_v36, %v3980_v42 }
 0x510   :  { %v5614_v32 = vpop.f32.mrf.mxu1 }
 0x511   :  { %4180 = vst.msk [vmem:[%s7870_s4 + $0x178] sm:$0xff] %vm747_vm2, %v4116_v49  ;;  %v4115_v26 = vmax.f32 %v3981_v10, 0.0  ;;  %v3996_v15 = vadd.f32 %v5614_v32, %v7544_v36 }
 0x512   :  { %v3990_v11 = vpop.f32.mrf.mxu1 }
 0x513   :  { %4179 = vst.msk [vmem:[%s7870_s4 + $0x170] sm:$0xff] %vm747_vm2, %v4115_v26  ;;  %v4118_v5 = vmax.f32 %v3996_v15, 0.0  ;;  %v3991_v21 = vadd.f32 %v7544_v36, %v3990_v11 }
 0x514   :  { %v5617_v23 = vpop.f32.mrf.mxu1 }
 0x515   :  { %4182 = vst.msk [vmem:[%s7870_s4 + $0x188] sm:$0xff] %vm747_vm2, %v4118_v5  ;;  %v4117_v47 = vmax.f32 %v3991_v21, 0.0  ;;  %v4006_v4 = vadd.f32 %v5617_v23, %v7544_v36 }
 0x516   :  { %v4000_v20 = vpop.f32.mrf.mxu1 }
 0x517   :  { %4181 = vst.msk [vmem:[%s7870_s4 + $0x180] sm:$0xff] %vm747_vm2, %v4117_v47  ;;  %v4120_v40 = vmax.f32 %v4006_v4, 0.0  ;;  %v4001_v52 = vadd.f32 %v7544_v36, %v4000_v20 }
 0x518   :  { %v5620_v14 = vpop.f32.mrf.mxu1 }
 0x519   :  { %4184 = vst.msk [vmem:[%s7870_s4 + $0x198] sm:$0xff] %vm747_vm2, %v4120_v40  ;;  %v4119_v44 = vmax.f32 %v4001_v52, 0.0  ;;  %v4016_v55 = vadd.f32 %v5620_v14, %v7544_v36 }
 0x51a   :  { %v4010_v31 = vpop.f32.mrf.mxu1 }
 0x51b   :  { %4183 = vst.msk [vmem:[%s7870_s4 + $0x190] sm:$0xff] %vm747_vm2, %v4119_v44  ;;  %v4122_v19 = vmax.f32 %v4016_v55, 0.0  ;;  %v4011_v18 = vadd.f32 %v7544_v36, %v4010_v31 }
 0x51c   :  { %v5623_v58 = vpop.f32.mrf.mxu1 }
 0x51d   :  { %4186 = vst.msk [vmem:[%s7870_s4 + $0x1a8] sm:$0xff] %vm747_vm2, %v4122_v19  ;;  %v4121_v45 = vmax.f32 %v4011_v18, 0.0  ;;  %v4026_v38 = vadd.f32 %v5623_v58, %v7544_v36 }
 0x51e   :  { %v4020_v48 = vpop.f32.mrf.mxu1 }
 0x51f   :  { %4185 = vst.msk [vmem:[%s7870_s4 + $0x1a0] sm:$0xff] %vm747_vm2, %v4121_v45  ;;  %v4124_v53 = vmax.f32 %v4026_v38, 0.0  ;;  %v4021_v62 = vadd.f32 %v7544_v36, %v4020_v48 }
 0x520   :  { %v5626_v60 = vpop.f32.mrf.mxu1 }
 0x521   :  { %4188 = vst.msk [vmem:[%s7870_s4 + $0x1b8] sm:$0xff] %vm747_vm2, %v4124_v53  ;;  %v4123_v29 = vmax.f32 %v4021_v62, 0.0  ;;  %v4036_v61 = vadd.f32 %v5626_v60, %v7544_v36 }
 0x522   :  { %v4030_v16 = vpop.f32.mrf.mxu1 }
 0x523   :  { %4187 = vst.msk [vmem:[%s7870_s4 + $0x1b0] sm:$0xff] %vm747_vm2, %v4123_v29  ;;  %v4126_v63 = vmax.f32 %v4036_v61, 0.0  ;;  %v4031_v37 = vadd.f32 %v7544_v36, %v4030_v16 }
 0x524   :  { %v5629_v56 = vpop.f32.mrf.mxu1 }
 0x525   :  { %4190 = vst.msk [vmem:[%s7870_s4 + $0x1c8] sm:$0xff] %vm747_vm2, %v4126_v63  ;;  %v4125_v54 = vmax.f32 %v4031_v37, 0.0  ;;  %v4046_v6 = vadd.f32 %v5629_v56, %v7544_v36 }
 0x526   :  { %v4040_v30 = vpop.f32.mrf.mxu1 }
 0x527   :  { %4189 = vst.msk [vmem:[%s7870_s4 + $0x1c0] sm:$0xff] %vm747_vm2, %v4125_v54  ;;  %v4128_v46 = vmax.f32 %v4046_v6, 0.0  ;;  %v4041_v59 = vadd.f32 %v7544_v36, %v4040_v30 }
 0x528   :  { %v5632_v7 = vpop.f32.mrf.mxu1 }
 0x529   :  { %4192 = vst.msk [vmem:[%s7870_s4 + $0x1d8] sm:$0xff] %vm747_vm2, %v4128_v46  ;;  %v4127_v34 = vmax.f32 %v4041_v59, 0.0  ;;  %v4056_v3 = vadd.f32 %v5632_v7, %v7544_v36 }
 0x52a   :  { %v4050_v39 = vpop.f32.mrf.mxu1 }
 0x52b   :  { %4191 = vst.msk [vmem:[%s7870_s4 + $0x1d0] sm:$0xff] %vm747_vm2, %v4127_v34  ;;  %v4130_v13 = vmax.f32 %v4056_v3, 0.0  ;;  %v4051_v35 = vadd.f32 %v7544_v36, %v4050_v39 }
 0x52c   :  { %v5635_v28 = vpop.f32.mrf.mxu1 }
 0x52d   :  { %4194 = vst.msk [vmem:[%s7870_s4 + $0x1e8] sm:$0xff] %vm747_vm2, %v4130_v13  ;;  %v4129_v24 = vmax.f32 %v4051_v35, 0.0  ;;  %v4066_v22 = vadd.f32 %v5635_v28, %v7544_v36 }
 0x52e   :  { %v4060_v43 = vpop.f32.mrf.mxu1 }
 0x52f   :  { %4193 = vst.msk [vmem:[%s7870_s4 + $0x1e0] sm:$0xff] %vm747_vm2, %v4129_v24  ;;  %v4132_v0 = vmax.f32 %v4066_v22, 0.0  ;;  %v4061_v1 = vadd.f32 %v7544_v36, %v4060_v43 }
 0x531   :  { %4196 = vst.msk [vmem:[%s7870_s4 + $0x1f8] sm:$0xff] %vm747_vm2, %v4132_v0  ;;  %v4131_v51 = vmax.f32 %v4061_v1, 0.0 }
 0x533   :  { %4195 = vst.msk [vmem:[%s7870_s4 + $0x1f0] sm:$0xff] %vm747_vm2, %v4131_v51 }

</bundles_post_ra>
